<compile_context>
chip_gen: v7x
topology: tpu7x:2x2x1
jax: 0.10.0
libtpu: 0.0.40
codegen_flags: <defaults>
</compile_context>

<pallas_src>
import jax
import jax.numpy as jnp
import numpy as np
from jax.experimental import pallas as pl
from jax.experimental.pallas import tpu as pltpu

LEAKY_SLOPE = 0.2
BN_EPS = 1e-5
N_CONV = 4            # four stride-2 conv layers
SUB = 2 ** N_CONV     # final subsample stride (16)


def _leaky(y):
    return jnp.where(y > 0.0, y, LEAKY_SLOPE * y)


# ----------------------------------------------------------------------------
# The single fused Pallas kernel (one sample per grid step)
# ----------------------------------------------------------------------------
def _encoder_kernel(h0_ref,
                    w1_ref, sh1_ref, w2_ref, sh2_ref,
                    w3_ref, sh3_ref, w4_ref, sh4_ref,
                    wfc_hbm, shfc_ref, whead_hbm, shhead_ref,
                    out_ref,
                    wfc_v, whead_v, sems):
    # ---- prefetch the two big fc weights; DMA overlaps the conv stack below.
    @pl.when(pl.program_id(0) == 0)
    def _():
        pltpu.make_async_copy(wfc_hbm, wfc_v, sems.at[0]).start()
        pltpu.make_async_copy(whead_hbm, whead_v, sems.at[1]).start()

    def conv_bn_lrelu(h, w_ref, sh_ref, dil):
        # "A trous" stride-2 conv: activations stay at full length L at every
        # layer; tap k (offset d=k-2) of the l-th conv reads rows shifted by
        # d * 2^(l-1).  Shift = pltpu.roll (XLU) + iota mask (VPU); the MXU
        # only does the 5 per-tap matmuls, accumulated in f32.  BN scale and
        # conv bias are folded into w_ref / sh_ref.
        L, cin = h.shape
        row = jax.lax.broadcasted_iota(jnp.int32, (L, cin), 0)
        acc = None
        for k in range(5):
            d = k - 2
            if d == 0:
                tap = h
            else:
                shifted = pltpu.roll(h, shift=(-d * dil) % L, axis=0)
                src = row + d * dil
                tap = jnp.where((src >= 0) & (src < L), shifted, 0.0)
            p = jnp.dot(tap.astype(jnp.bfloat16), w_ref[k],
                        preferred_element_type=jnp.float32)
            acc = p if acc is None else acc + p
        return _leaky(acc + sh_ref[...])

    h = h0_ref[0]                                  # (L, 1+NUM_COND) f32
    h = conv_bn_lrelu(h, w1_ref, sh1_ref, 1)       # (L, CH)
    h = conv_bn_lrelu(h, w2_ref, sh2_ref, 2)       # (L, 128)
    h = conv_bn_lrelu(h, w3_ref, sh3_ref, 4)       # (L, DLEN)
    h = conv_bn_lrelu(h, w4_ref, sh4_ref, 8)       # (L, 128)

    # ---- subsample (stride 16) + flatten, as a 128-aligned lane concat.
    # Kernel flatten order is o-major; w_fc rows were permuted to match.
    L = h.shape[0]
    l4 = L // SUB
    flat = jnp.concatenate([h[o * SUB:o * SUB + 1, :] for o in range(l4)],
                           axis=1).astype(jnp.bfloat16)        # (1, 128*l4)

    # ---- fc1 + BN + LeakyReLU, then fused mean|logvar head.
    @pl.when(pl.program_id(0) == 0)
    def _():
        pltpu.make_async_copy(wfc_hbm, wfc_v, sems.at[0]).wait()
        pltpu.make_async_copy(whead_hbm, whead_v, sems.at[1]).wait()

    hfc = jnp.dot(flat, wfc_v[...], preferred_element_type=jnp.float32)
    hfc = _leaky(hfc + shfc_ref[...]).astype(jnp.bfloat16)     # (1, 2048)
    y = jnp.dot(hfc, whead_v[...], preferred_element_type=jnp.float32)
    out_ref[0] = (y + shhead_ref[...]).astype(out_ref.dtype)   # (1, 2*DLEN)


def _const_spec(shape):
    nd = len(shape)
    return pl.BlockSpec(shape, lambda i, _nd=nd: (0,) * _nd)


def make_forward(data_length):
    dlen = data_length

    @jax.jit
    def fwd(kp, x, c):
        n, _, l = x.shape
        nc = c.shape[1]
        assert l % SUB == 0 and 128 * (l // SUB) == kp["w_fc"].shape[0], \
            "input length incompatible with fc1 (module requires L == DATA_LENGTH)"

        # channels-last per-sample input slab: h0[n, t, :] = [x[n,0,t], c[n,:]]
        h0 = jnp.concatenate(
            [jnp.transpose(x, (0, 2, 1)),
             jnp.broadcast_to(c[:, None, :], (n, l, nc))],
            axis=2).astype(jnp.float32)                        # (N, L, 1+NC)

        operands = [h0,
                    kp["w1"], kp["sh1"], kp["w2"], kp["sh2"],
                    kp["w3"], kp["sh3"], kp["w4"], kp["sh4"],
                    kp["w_fc"], kp["sh_fc"], kp["w_head"], kp["sh_head"]]

        kin, nhid = kp["w_fc"].shape            # (128*l4, 2048)
        nout = kp["w_head"].shape[1]            # 2*dlen

        in_specs = [pl.BlockSpec((1, l, 1 + nc), lambda i: (i, 0, 0))]
        for name in ("w1", "sh1", "w2", "sh2", "w3", "sh3", "w4", "sh4"):
            in_specs.append(_const_spec(kp[name].shape))
        in_specs.append(pl.BlockSpec(memory_space=pl.ANY))     # w_fc  (manual DMA)
        in_specs.append(_const_spec(kp["sh_fc"].shape))
        in_specs.append(pl.BlockSpec(memory_space=pl.ANY))     # w_head (manual DMA)
        in_specs.append(_const_spec(kp["sh_head"].shape))

        out = pl.pallas_call(
            _encoder_kernel,
            out_shape=jax.ShapeDtypeStruct((n, 1, nout), jnp.float32),
            grid=(n,),
            in_specs=in_specs,
            out_specs=pl.BlockSpec((1, 1, nout), lambda i: (i, 0, 0)),
            scratch_shapes=[pltpu.VMEM((kin, nhid), jnp.bfloat16),
                            pltpu.VMEM((nhid, nout), jnp.bfloat16),
                            pltpu.SemaphoreType.DMA((2,))],
            compiler_params=pltpu.CompilerParams(
                dimension_semantics=("arbitrary",)),
        )(*operands)

        out = out[:, 0, :]
        return out[:, :dlen], out[:, dlen:2 * dlen]

    return fwd


# ----------------------------------------------------------------------------
# One-time parameter preparation (fold BN + bias, transpose, cast to bf16)
# ----------------------------------------------------------------------------
def _bn_fold(gamma, beta, rmean, rvar):
    scale = gamma / jnp.sqrt(rvar + BN_EPS)
    shift = beta - rmean * scale
    return scale, shift


def _prep_conv(conv_w, conv_b, bn):
    scale, shift = _bn_fold(*bn)
    shift = shift + conv_b * scale
    w = jnp.transpose(conv_w, (2, 1, 0)) * scale[None, None, :]   # (5, Cin, Cout)
    return w.astype(jnp.bfloat16), shift.reshape(1, -1).astype(jnp.float32)


def prepare_params(params):
    w1, sh1 = _prep_conv(params["conv1_w"], params["conv1_b"], params["bn1"])
    w2, sh2 = _prep_conv(params["conv2_w"], params["conv2_b"], params["bn2"])
    w3, sh3 = _prep_conv(params["conv3_w"], params["conv3_b"], params["bn3"])
    w4, sh4 = _prep_conv(params["conv4_w"], params["conv4_b"], params["bn4"])

    # fc1 over PyTorch's C-major flatten, re-expressed for the kernel's o-major
    # flatten: wfc[o*128 + c, j] = fc1_w[j, c*l4 + o]; BN5 + bias folded.
    scale5, shift5 = _bn_fold(*params["bn5"])
    shift5 = shift5 + params["fc1_b"] * scale5
    nhid, kin = params["fc1_w"].shape                   # (2048, 128*l4)
    l4 = kin // 128
    wfc = params["fc1_w"].reshape(nhid, 128, l4)        # (j, c, o)
    wfc = jnp.transpose(wfc, (2, 1, 0)).reshape(l4 * 128, nhid)
    wfc = wfc * scale5[None, :]

    # fc_mean / fc_logvar fused into one (2048, 2*dlen) head (no lane padding).
    whead = jnp.concatenate([params["fcm_w"].T, params["fcv_w"].T], axis=1)
    shhead = jnp.concatenate([params["fcm_b"], params["fcv_b"]]).reshape(1, -1)

    return {
        "w1": w1, "sh1": sh1, "w2": w2, "sh2": sh2,
        "w3": w3, "sh3": sh3, "w4": w4, "sh4": sh4,
        "w_fc": wfc.astype(jnp.bfloat16),
        "sh_fc": shift5.reshape(1, -1).astype(jnp.float32),
        "w_head": whead.astype(jnp.bfloat16),
        "sh_head": shhead.astype(jnp.float32),
    }


# ----------------------------------------------------------------------------
# Pure-JAX reference (correctness check)
# ----------------------------------------------------------------------------
def ref_forward(params, x, c):
    def bn(v, p):
        scale, shift = _bn_fold(*p)
        if v.ndim == 3:
            return v * scale[None, :, None] + shift[None, :, None]
        return v * scale[None, :] + shift[None, :]

    def conv(v, w, b):
        y = jax.lax.conv_general_dilated(
            v, w, window_strides=(2,), padding=[(2, 2)],
            dimension_numbers=("NCH", "OIH", "NCH"))
        return y + b[None, :, None]

    n = x.shape[0]
    c_r = jnp.broadcast_to(c[:, :, None], (n, c.shape[1], x.shape[2]))
    h = jnp.concatenate([x, c_r], axis=1)
    h = _leaky(bn(conv(h, params["conv1_w"], params["conv1_b"]), params["bn1"]))
    h = _leaky(bn(conv(h, params["conv2_w"], params["conv2_b"]), params["bn2"]))
    h = _leaky(bn(conv(h, params["conv3_w"], params["conv3_b"]), params["bn3"]))
    h = _leaky(bn(conv(h, params["conv4_w"], params["conv4_b"]), params["bn4"]))
    flat = h.reshape(n, -1)
    h = _leaky(bn(flat @ params["fc1_w"].T + params["fc1_b"], params["bn5"]))
    mean = h @ params["fcm_w"].T + params["fcm_b"]
    logvar = h @ params["fcv_w"].T + params["fcv_b"]
    return mean, logvar


# ----------------------------------------------------------------------------
# Deterministic synthetic parameters (shapes follow Encoder.__init__)
# ----------------------------------------------------------------------------
def init_params(key, num_cond, ch, data_len):
    ks = jax.random.split(key, 20)

    def w(k, shape, scale=0.05):
        return scale * jax.random.normal(k, shape, dtype=jnp.float32)

    def bn_params(k, cch):
        k1, k2, k3, k4 = jax.random.split(k, 4)
        gamma = 1.0 + 0.1 * jax.random.normal(k1, (cch,), jnp.float32)
        beta = 0.1 * jax.random.normal(k2, (cch,), jnp.float32)
        rmean = 0.1 * jax.random.normal(k3, (cch,), jnp.float32)
        rvar = 1.0 + 0.1 * jax.random.uniform(k4, (cch,), jnp.float32)
        return gamma, beta, rmean, rvar

    return {
        "conv1_w": w(ks[0], (ch, 1 + num_cond, 5)),   "conv1_b": w(ks[1], (ch,)),
        "bn1": bn_params(ks[2], ch),
        "conv2_w": w(ks[3], (128, ch, 5)),            "conv2_b": w(ks[4], (128,)),
        "bn2": bn_params(ks[5], 128),
        "conv3_w": w(ks[6], (data_len, 128, 5)),      "conv3_b": w(ks[7], (data_len,)),
        "bn3": bn_params(ks[8], data_len),
        "conv4_w": w(ks[9], (128, data_len, 5)),      "conv4_b": w(ks[10], (128,)),
        "bn4": bn_params(ks[11], 128),
        "fc1_w": w(ks[12], (2048, data_len * 8)),     "fc1_b": w(ks[13], (2048,)),
        "bn5": bn_params(ks[14], 2048),
        "fcm_w": w(ks[15], (data_len, 2048)),         "fcm_b": w(ks[16], (data_len,)),
        "fcv_w": w(ks[17], (data_len, 2048)),         "fcv_b": w(ks[18], (data_len,)),
    }


if __name__ == "__main__":
    NUM_CONDITIONS = 6
    CH = 16            # "BATCH_SIZE" ctor arg of the PyTorch module = conv1 out-channels
    DATA_LENGTH = 32   # forces input length L == DATA_LENGTH
    N = 2
    L = DATA_LENGTH

    key = jax.random.PRNGKey(0)
    kprm, kx, kc = jax.random.split(key, 3)
    params = init_params(kprm, NUM_CONDITIONS, CH, DATA_LENGTH)
    x = jax.random.normal(kx, (N, 1, L), dtype=jnp.float32)
    c = jax.random.normal(kc, (N, NUM_CONDITIONS), dtype=jnp.float32)

    kparams = prepare_params(params)          # fold BN/bias, permute, cast to bf16
    fwd = make_forward(DATA_LENGTH)

    mean, logvar = fwd(kparams, x, c)
    jax.block_until_ready((mean, logvar))

    assert mean.shape == (N, DATA_LENGTH) and logvar.shape == (N, DATA_LENGTH)

    mean_ref, logvar_ref = jax.jit(ref_forward)(params, x, c)
    np.testing.assert_allclose(np.asarray(mean), np.asarray(mean_ref),
                               rtol=1e-2, atol=1e-2)
    np.testing.assert_allclose(np.asarray(logvar), np.asarray(logvar_ref),
                               rtol=1e-2, atol=1e-2)

    print("KERNEL_OK")
</pallas_src>

<mosaic_0001>
module attributes {stable_mosaic.version = 11 : i64} {
  func.func @_encoder_kernel(%arg0: i32, %arg1: memref<1x32x7xf32, #tpu.memory_space<vmem>>, %arg2: memref<5x7x16xbf16, #tpu.memory_space<vmem>>, %arg3: memref<1x16xf32, #tpu.memory_space<vmem>>, %arg4: memref<5x16x128xbf16, #tpu.memory_space<vmem>>, %arg5: memref<1x128xf32, #tpu.memory_space<vmem>>, %arg6: memref<5x128x32xbf16, #tpu.memory_space<vmem>>, %arg7: memref<1x32xf32, #tpu.memory_space<vmem>>, %arg8: memref<5x32x128xbf16, #tpu.memory_space<vmem>>, %arg9: memref<1x128xf32, #tpu.memory_space<vmem>>, %arg10: memref<256x2048xbf16, #tpu.memory_space<any>>, %arg11: memref<1x2048xf32, #tpu.memory_space<vmem>>, %arg12: memref<2048x64xbf16, #tpu.memory_space<any>>, %arg13: memref<1x64xf32, #tpu.memory_space<vmem>>, %arg14: memref<1x1x64xf32, #tpu.memory_space<vmem>>, %arg15: memref<256x2048xbf16, #tpu.memory_space<vmem>>, %arg16: memref<2048x64xbf16, #tpu.memory_space<vmem>>, %arg17: memref<2x!tpu.dma_semaphore, #tpu.memory_space<semaphore_mem>>) attributes {dimension_semantics = [#tpu.dimension_semantics<arbitrary>], iteration_bounds = array<i64: 2>, scalar_prefetch = 0 : i64, scratch_operands = 3 : i64, tpu.core_type = #tpu.core_type<tc>, window_params = [{transform_indices = @transform_0, window_bounds = array<i64: 1, 32, 7>}, {pipeline_mode = #tpu.pipeline_mode<synchronous>, transform_indices = @transform_1, window_bounds = array<i64: 5, 7, 16>}, {pipeline_mode = #tpu.pipeline_mode<synchronous>, transform_indices = @transform_2, window_bounds = array<i64: 1, 16>}, {pipeline_mode = #tpu.pipeline_mode<synchronous>, transform_indices = @transform_3, window_bounds = array<i64: 5, 16, 128>}, {pipeline_mode = #tpu.pipeline_mode<synchronous>, transform_indices = @transform_4, window_bounds = array<i64: 1, 128>}, {pipeline_mode = #tpu.pipeline_mode<synchronous>, transform_indices = @transform_5, window_bounds = array<i64: 5, 128, 32>}, {pipeline_mode = #tpu.pipeline_mode<synchronous>, transform_indices = @transform_6, window_bounds = array<i64: 1, 32>}, {pipeline_mode = #tpu.pipeline_mode<synchronous>, transform_indices = @transform_7, window_bounds = array<i64: 5, 32, 128>}, {pipeline_mode = #tpu.pipeline_mode<synchronous>, transform_indices = @transform_8, window_bounds = array<i64: 1, 128>}, {}, {pipeline_mode = #tpu.pipeline_mode<synchronous>, transform_indices = @transform_10, window_bounds = array<i64: 1, 2048>}, {}, {pipeline_mode = #tpu.pipeline_mode<synchronous>, transform_indices = @transform_12, window_bounds = array<i64: 1, 64>}, {transform_indices = @transform_13, window_bounds = array<i64: 1, 1, 64>}]} {
    %c0_i32 = arith.constant 0 : i32
    %0 = arith.cmpi eq, %arg0, %c0_i32 : i32
    %1 = arith.extui %0 : i1 to i32
    %c0_i32_0 = arith.constant 0 : i32
    %2 = arith.cmpi ne, %1, %c0_i32_0 : i32
    scf.if %2 {
      %c0_i32_176 = arith.constant 0 : i32
      %321 = tpu.memref_slice %arg17[%c0_i32_176] : memref<2x!tpu.dma_semaphore, #tpu.memory_space<semaphore_mem>> -> memref<1x!tpu.dma_semaphore, #tpu.memory_space<semaphore_mem>>
      %322 = tpu.memref_squeeze %321 : memref<1x!tpu.dma_semaphore, #tpu.memory_space<semaphore_mem>> -> memref<!tpu.dma_semaphore, #tpu.memory_space<semaphore_mem>>
      tpu.enqueue_dma source(%arg10 : memref<256x2048xbf16, #tpu.memory_space<any>>) target(%arg15 : memref<256x2048xbf16, #tpu.memory_space<vmem>>) target_semaphore(%322 : memref<!tpu.dma_semaphore, #tpu.memory_space<semaphore_mem>>)
      %c1_i32_177 = arith.constant 1 : i32
      %323 = tpu.memref_slice %arg17[%c1_i32_177] : memref<2x!tpu.dma_semaphore, #tpu.memory_space<semaphore_mem>> -> memref<1x!tpu.dma_semaphore, #tpu.memory_space<semaphore_mem>>
      %324 = tpu.memref_squeeze %323 : memref<1x!tpu.dma_semaphore, #tpu.memory_space<semaphore_mem>> -> memref<!tpu.dma_semaphore, #tpu.memory_space<semaphore_mem>>
      tpu.enqueue_dma source(%arg12 : memref<2048x64xbf16, #tpu.memory_space<any>>) target(%arg16 : memref<2048x64xbf16, #tpu.memory_space<vmem>>) target_semaphore(%324 : memref<!tpu.dma_semaphore, #tpu.memory_space<semaphore_mem>>)
    } else {
    }
    %c0 = arith.constant 0 : index
    %c0_1 = arith.constant 0 : index
    %c0_2 = arith.constant 0 : index
    %3 = vector.load %arg1[%c0, %c0_1, %c0_2] : memref<1x32x7xf32, #tpu.memory_space<vmem>>, vector<1x32x7xf32>
    %4 = vector.shape_cast %3 : vector<1x32x7xf32> to vector<32x7xf32>
    %5 = tpu.iota {dimensions = array<i32: 0>} : vector<32x7xi32>
    %c2_i32 = arith.constant 2 : i32
    %6 = tpu.dynamic_rotate %4 by %c2_i32 dim 0 : vector<32x7xf32>, i32 -> vector<32x7xf32>
    %c-2_i32 = arith.constant -2 : i32
    %7 = vector.broadcast %c-2_i32 : i32 to vector<32x7xi32>
    %8 = arith.addi %5, %7 : vector<32x7xi32>
    %c0_i32_3 = arith.constant 0 : i32
    %9 = vector.broadcast %c0_i32_3 : i32 to vector<32x7xi32>
    %10 = arith.cmpi sge, %8, %9 : vector<32x7xi32>
    %c32_i32 = arith.constant 32 : i32
    %11 = vector.broadcast %c32_i32 : i32 to vector<32x7xi32>
    %12 = arith.cmpi slt, %8, %11 : vector<32x7xi32>
    %13 = arith.andi %10, %12 : vector<32x7xi1>
    %cst = arith.constant 0.000000e+00 : f32
    %14 = vector.broadcast %cst : f32 to vector<32x7xf32>
    %15 = arith.select %13, %6, %14 : vector<32x7xi1>, vector<32x7xf32>
    %16 = arith.truncf %15 : vector<32x7xf32> to vector<32x7xbf16>
    %c0_4 = arith.constant 0 : index
    %c0_5 = arith.constant 0 : index
    %c0_6 = arith.constant 0 : index
    %17 = vector.load %arg2[%c0_4, %c0_5, %c0_6] : memref<5x7x16xbf16, #tpu.memory_space<vmem>>, vector<1x7x16xbf16>
    %18 = vector.shape_cast %17 : vector<1x7x16xbf16> to vector<7x16xbf16>
    %cst_7 = arith.constant dense<0.000000e+00> : vector<32x16xf32>
    %19 = tpu.matmul %16, %18, %cst_7 {dimension_numbers = #tpu.dot_dimension_numbers<[1], [0], [0], [1], [0, 0, 1, 1], [], []>} : vector<32x7xbf16>, vector<7x16xbf16>, vector<32x16xf32> -> vector<32x16xf32>
    %c1_i32 = arith.constant 1 : i32
    %20 = tpu.dynamic_rotate %4 by %c1_i32 dim 0 : vector<32x7xf32>, i32 -> vector<32x7xf32>
    %c-1_i32 = arith.constant -1 : i32
    %21 = vector.broadcast %c-1_i32 : i32 to vector<32x7xi32>
    %22 = arith.addi %5, %21 : vector<32x7xi32>
    %c0_i32_8 = arith.constant 0 : i32
    %23 = vector.broadcast %c0_i32_8 : i32 to vector<32x7xi32>
    %24 = arith.cmpi sge, %22, %23 : vector<32x7xi32>
    %c32_i32_9 = arith.constant 32 : i32
    %25 = vector.broadcast %c32_i32_9 : i32 to vector<32x7xi32>
    %26 = arith.cmpi slt, %22, %25 : vector<32x7xi32>
    %27 = arith.andi %24, %26 : vector<32x7xi1>
    %cst_10 = arith.constant 0.000000e+00 : f32
    %28 = vector.broadcast %cst_10 : f32 to vector<32x7xf32>
    %29 = arith.select %27, %20, %28 : vector<32x7xi1>, vector<32x7xf32>
    %30 = arith.truncf %29 : vector<32x7xf32> to vector<32x7xbf16>
    %c1 = arith.constant 1 : index
    %c0_11 = arith.constant 0 : index
    %c0_12 = arith.constant 0 : index
    %31 = vector.load %arg2[%c1, %c0_11, %c0_12] : memref<5x7x16xbf16, #tpu.memory_space<vmem>>, vector<1x7x16xbf16>
    %32 = vector.shape_cast %31 : vector<1x7x16xbf16> to vector<7x16xbf16>
    %cst_13 = arith.constant dense<0.000000e+00> : vector<32x16xf32>
    %33 = tpu.matmul %30, %32, %cst_13 {dimension_numbers = #tpu.dot_dimension_numbers<[1], [0], [0], [1], [0, 0, 1, 1], [], []>} : vector<32x7xbf16>, vector<7x16xbf16>, vector<32x16xf32> -> vector<32x16xf32>
    %34 = arith.addf %19, %33 : vector<32x16xf32>
    %35 = arith.truncf %4 : vector<32x7xf32> to vector<32x7xbf16>
    %c2 = arith.constant 2 : index
    %c0_14 = arith.constant 0 : index
    %c0_15 = arith.constant 0 : index
    %36 = vector.load %arg2[%c2, %c0_14, %c0_15] : memref<5x7x16xbf16, #tpu.memory_space<vmem>>, vector<1x7x16xbf16>
    %37 = vector.shape_cast %36 : vector<1x7x16xbf16> to vector<7x16xbf16>
    %cst_16 = arith.constant dense<0.000000e+00> : vector<32x16xf32>
    %38 = tpu.matmul %35, %37, %cst_16 {dimension_numbers = #tpu.dot_dimension_numbers<[1], [0], [0], [1], [0, 0, 1, 1], [], []>} : vector<32x7xbf16>, vector<7x16xbf16>, vector<32x16xf32> -> vector<32x16xf32>
    %39 = arith.addf %34, %38 : vector<32x16xf32>
    %c31_i32 = arith.constant 31 : i32
    %40 = tpu.dynamic_rotate %4 by %c31_i32 dim 0 : vector<32x7xf32>, i32 -> vector<32x7xf32>
    %c1_i32_17 = arith.constant 1 : i32
    %41 = vector.broadcast %c1_i32_17 : i32 to vector<32x7xi32>
    %42 = arith.addi %5, %41 : vector<32x7xi32>
    %c0_i32_18 = arith.constant 0 : i32
    %43 = vector.broadcast %c0_i32_18 : i32 to vector<32x7xi32>
    %44 = arith.cmpi sge, %42, %43 : vector<32x7xi32>
    %c32_i32_19 = arith.constant 32 : i32
    %45 = vector.broadcast %c32_i32_19 : i32 to vector<32x7xi32>
    %46 = arith.cmpi slt, %42, %45 : vector<32x7xi32>
    %47 = arith.andi %44, %46 : vector<32x7xi1>
    %cst_20 = arith.constant 0.000000e+00 : f32
    %48 = vector.broadcast %cst_20 : f32 to vector<32x7xf32>
    %49 = arith.select %47, %40, %48 : vector<32x7xi1>, vector<32x7xf32>
    %50 = arith.truncf %49 : vector<32x7xf32> to vector<32x7xbf16>
    %c3 = arith.constant 3 : index
    %c0_21 = arith.constant 0 : index
    %c0_22 = arith.constant 0 : index
    %51 = vector.load %arg2[%c3, %c0_21, %c0_22] : memref<5x7x16xbf16, #tpu.memory_space<vmem>>, vector<1x7x16xbf16>
    %52 = vector.shape_cast %51 : vector<1x7x16xbf16> to vector<7x16xbf16>
    %cst_23 = arith.constant dense<0.000000e+00> : vector<32x16xf32>
    %53 = tpu.matmul %50, %52, %cst_23 {dimension_numbers = #tpu.dot_dimension_numbers<[1], [0], [0], [1], [0, 0, 1, 1], [], []>} : vector<32x7xbf16>, vector<7x16xbf16>, vector<32x16xf32> -> vector<32x16xf32>
    %54 = arith.addf %39, %53 : vector<32x16xf32>
    %c30_i32 = arith.constant 30 : i32
    %55 = tpu.dynamic_rotate %4 by %c30_i32 dim 0 : vector<32x7xf32>, i32 -> vector<32x7xf32>
    %c2_i32_24 = arith.constant 2 : i32
    %56 = vector.broadcast %c2_i32_24 : i32 to vector<32x7xi32>
    %57 = arith.addi %5, %56 : vector<32x7xi32>
    %c0_i32_25 = arith.constant 0 : i32
    %58 = vector.broadcast %c0_i32_25 : i32 to vector<32x7xi32>
    %59 = arith.cmpi sge, %57, %58 : vector<32x7xi32>
    %c32_i32_26 = arith.constant 32 : i32
    %60 = vector.broadcast %c32_i32_26 : i32 to vector<32x7xi32>
    %61 = arith.cmpi slt, %57, %60 : vector<32x7xi32>
    %62 = arith.andi %59, %61 : vector<32x7xi1>
    %cst_27 = arith.constant 0.000000e+00 : f32
    %63 = vector.broadcast %cst_27 : f32 to vector<32x7xf32>
    %64 = arith.select %62, %55, %63 : vector<32x7xi1>, vector<32x7xf32>
    %65 = arith.truncf %64 : vector<32x7xf32> to vector<32x7xbf16>
    %c4 = arith.constant 4 : index
    %c0_28 = arith.constant 0 : index
    %c0_29 = arith.constant 0 : index
    %66 = vector.load %arg2[%c4, %c0_28, %c0_29] : memref<5x7x16xbf16, #tpu.memory_space<vmem>>, vector<1x7x16xbf16>
    %67 = vector.shape_cast %66 : vector<1x7x16xbf16> to vector<7x16xbf16>
    %cst_30 = arith.constant dense<0.000000e+00> : vector<32x16xf32>
    %68 = tpu.matmul %65, %67, %cst_30 {dimension_numbers = #tpu.dot_dimension_numbers<[1], [0], [0], [1], [0, 0, 1, 1], [], []>} : vector<32x7xbf16>, vector<7x16xbf16>, vector<32x16xf32> -> vector<32x16xf32>
    %69 = arith.addf %54, %68 : vector<32x16xf32>
    %c0_31 = arith.constant 0 : index
    %c0_32 = arith.constant 0 : index
    %70 = vector.load %arg3[%c0_31, %c0_32] : memref<1x16xf32, #tpu.memory_space<vmem>>, vector<1x16xf32>
    %71 = vector.broadcast %70 : vector<1x16xf32> to vector<32x16xf32>
    %72 = arith.addf %69, %71 : vector<32x16xf32>
    %cst_33 = arith.constant 0.000000e+00 : f32
    %73 = vector.broadcast %cst_33 : f32 to vector<32x16xf32>
    %74 = arith.cmpf ogt, %72, %73 : vector<32x16xf32>
    %cst_34 = arith.constant 2.000000e-01 : f32
    %75 = vector.broadcast %cst_34 : f32 to vector<32x16xf32>
    %76 = arith.mulf %75, %72 : vector<32x16xf32>
    %77 = arith.select %74, %72, %76 : vector<32x16xi1>, vector<32x16xf32>
    %78 = tpu.iota {dimensions = array<i32: 0>} : vector<32x16xi32>
    %c4_i32 = arith.constant 4 : i32
    %79 = tpu.dynamic_rotate %77 by %c4_i32 dim 0 : vector<32x16xf32>, i32 -> vector<32x16xf32>
    %c-4_i32 = arith.constant -4 : i32
    %80 = vector.broadcast %c-4_i32 : i32 to vector<32x16xi32>
    %81 = arith.addi %78, %80 : vector<32x16xi32>
    %c0_i32_35 = arith.constant 0 : i32
    %82 = vector.broadcast %c0_i32_35 : i32 to vector<32x16xi32>
    %83 = arith.cmpi sge, %81, %82 : vector<32x16xi32>
    %c32_i32_36 = arith.constant 32 : i32
    %84 = vector.broadcast %c32_i32_36 : i32 to vector<32x16xi32>
    %85 = arith.cmpi slt, %81, %84 : vector<32x16xi32>
    %86 = arith.andi %83, %85 : vector<32x16xi1>
    %cst_37 = arith.constant 0.000000e+00 : f32
    %87 = vector.broadcast %cst_37 : f32 to vector<32x16xf32>
    %88 = arith.select %86, %79, %87 : vector<32x16xi1>, vector<32x16xf32>
    %89 = arith.truncf %88 : vector<32x16xf32> to vector<32x16xbf16>
    %c0_38 = arith.constant 0 : index
    %c0_39 = arith.constant 0 : index
    %c0_40 = arith.constant 0 : index
    %90 = vector.load %arg4[%c0_38, %c0_39, %c0_40] : memref<5x16x128xbf16, #tpu.memory_space<vmem>>, vector<1x16x128xbf16>
    %91 = vector.shape_cast %90 : vector<1x16x128xbf16> to vector<16x128xbf16>
    %cst_41 = arith.constant dense<0.000000e+00> : vector<32x128xf32>
    %92 = tpu.matmul %89, %91, %cst_41 {dimension_numbers = #tpu.dot_dimension_numbers<[1], [0], [0], [1], [0, 0, 1, 1], [], []>} : vector<32x16xbf16>, vector<16x128xbf16>, vector<32x128xf32> -> vector<32x128xf32>
    %c2_i32_42 = arith.constant 2 : i32
    %93 = tpu.dynamic_rotate %77 by %c2_i32_42 dim 0 : vector<32x16xf32>, i32 -> vector<32x16xf32>
    %c-2_i32_43 = arith.constant -2 : i32
    %94 = vector.broadcast %c-2_i32_43 : i32 to vector<32x16xi32>
    %95 = arith.addi %78, %94 : vector<32x16xi32>
    %c0_i32_44 = arith.constant 0 : i32
    %96 = vector.broadcast %c0_i32_44 : i32 to vector<32x16xi32>
    %97 = arith.cmpi sge, %95, %96 : vector<32x16xi32>
    %c32_i32_45 = arith.constant 32 : i32
    %98 = vector.broadcast %c32_i32_45 : i32 to vector<32x16xi32>
    %99 = arith.cmpi slt, %95, %98 : vector<32x16xi32>
    %100 = arith.andi %97, %99 : vector<32x16xi1>
    %cst_46 = arith.constant 0.000000e+00 : f32
    %101 = vector.broadcast %cst_46 : f32 to vector<32x16xf32>
    %102 = arith.select %100, %93, %101 : vector<32x16xi1>, vector<32x16xf32>
    %103 = arith.truncf %102 : vector<32x16xf32> to vector<32x16xbf16>
    %c1_47 = arith.constant 1 : index
    %c0_48 = arith.constant 0 : index
    %c0_49 = arith.constant 0 : index
    %104 = vector.load %arg4[%c1_47, %c0_48, %c0_49] : memref<5x16x128xbf16, #tpu.memory_space<vmem>>, vector<1x16x128xbf16>
    %105 = vector.shape_cast %104 : vector<1x16x128xbf16> to vector<16x128xbf16>
    %cst_50 = arith.constant dense<0.000000e+00> : vector<32x128xf32>
    %106 = tpu.matmul %103, %105, %cst_50 {dimension_numbers = #tpu.dot_dimension_numbers<[1], [0], [0], [1], [0, 0, 1, 1], [], []>} : vector<32x16xbf16>, vector<16x128xbf16>, vector<32x128xf32> -> vector<32x128xf32>
    %107 = arith.addf %92, %106 : vector<32x128xf32>
    %108 = arith.truncf %77 : vector<32x16xf32> to vector<32x16xbf16>
    %c2_51 = arith.constant 2 : index
    %c0_52 = arith.constant 0 : index
    %c0_53 = arith.constant 0 : index
    %109 = vector.load %arg4[%c2_51, %c0_52, %c0_53] : memref<5x16x128xbf16, #tpu.memory_space<vmem>>, vector<1x16x128xbf16>
    %110 = vector.shape_cast %109 : vector<1x16x128xbf16> to vector<16x128xbf16>
    %cst_54 = arith.constant dense<0.000000e+00> : vector<32x128xf32>
    %111 = tpu.matmul %108, %110, %cst_54 {dimension_numbers = #tpu.dot_dimension_numbers<[1], [0], [0], [1], [0, 0, 1, 1], [], []>} : vector<32x16xbf16>, vector<16x128xbf16>, vector<32x128xf32> -> vector<32x128xf32>
    %112 = arith.addf %107, %111 : vector<32x128xf32>
    %c30_i32_55 = arith.constant 30 : i32
    %113 = tpu.dynamic_rotate %77 by %c30_i32_55 dim 0 : vector<32x16xf32>, i32 -> vector<32x16xf32>
    %c2_i32_56 = arith.constant 2 : i32
    %114 = vector.broadcast %c2_i32_56 : i32 to vector<32x16xi32>
    %115 = arith.addi %78, %114 : vector<32x16xi32>
    %c0_i32_57 = arith.constant 0 : i32
    %116 = vector.broadcast %c0_i32_57 : i32 to vector<32x16xi32>
    %117 = arith.cmpi sge, %115, %116 : vector<32x16xi32>
    %c32_i32_58 = arith.constant 32 : i32
    %118 = vector.broadcast %c32_i32_58 : i32 to vector<32x16xi32>
    %119 = arith.cmpi slt, %115, %118 : vector<32x16xi32>
    %120 = arith.andi %117, %119 : vector<32x16xi1>
    %cst_59 = arith.constant 0.000000e+00 : f32
    %121 = vector.broadcast %cst_59 : f32 to vector<32x16xf32>
    %122 = arith.select %120, %113, %121 : vector<32x16xi1>, vector<32x16xf32>
    %123 = arith.truncf %122 : vector<32x16xf32> to vector<32x16xbf16>
    %c3_60 = arith.constant 3 : index
    %c0_61 = arith.constant 0 : index
    %c0_62 = arith.constant 0 : index
    %124 = vector.load %arg4[%c3_60, %c0_61, %c0_62] : memref<5x16x128xbf16, #tpu.memory_space<vmem>>, vector<1x16x128xbf16>
    %125 = vector.shape_cast %124 : vector<1x16x128xbf16> to vector<16x128xbf16>
    %cst_63 = arith.constant dense<0.000000e+00> : vector<32x128xf32>
    %126 = tpu.matmul %123, %125, %cst_63 {dimension_numbers = #tpu.dot_dimension_numbers<[1], [0], [0], [1], [0, 0, 1, 1], [], []>} : vector<32x16xbf16>, vector<16x128xbf16>, vector<32x128xf32> -> vector<32x128xf32>
    %127 = arith.addf %112, %126 : vector<32x128xf32>
    %c28_i32 = arith.constant 28 : i32
    %128 = tpu.dynamic_rotate %77 by %c28_i32 dim 0 : vector<32x16xf32>, i32 -> vector<32x16xf32>
    %c4_i32_64 = arith.constant 4 : i32
    %129 = vector.broadcast %c4_i32_64 : i32 to vector<32x16xi32>
    %130 = arith.addi %78, %129 : vector<32x16xi32>
    %c0_i32_65 = arith.constant 0 : i32
    %131 = vector.broadcast %c0_i32_65 : i32 to vector<32x16xi32>
    %132 = arith.cmpi sge, %130, %131 : vector<32x16xi32>
    %c32_i32_66 = arith.constant 32 : i32
    %133 = vector.broadcast %c32_i32_66 : i32 to vector<32x16xi32>
    %134 = arith.cmpi slt, %130, %133 : vector<32x16xi32>
    %135 = arith.andi %132, %134 : vector<32x16xi1>
    %cst_67 = arith.constant 0.000000e+00 : f32
    %136 = vector.broadcast %cst_67 : f32 to vector<32x16xf32>
    %137 = arith.select %135, %128, %136 : vector<32x16xi1>, vector<32x16xf32>
    %138 = arith.truncf %137 : vector<32x16xf32> to vector<32x16xbf16>
    %c4_68 = arith.constant 4 : index
    %c0_69 = arith.constant 0 : index
    %c0_70 = arith.constant 0 : index
    %139 = vector.load %arg4[%c4_68, %c0_69, %c0_70] : memref<5x16x128xbf16, #tpu.memory_space<vmem>>, vector<1x16x128xbf16>
    %140 = vector.shape_cast %139 : vector<1x16x128xbf16> to vector<16x128xbf16>
    %cst_71 = arith.constant dense<0.000000e+00> : vector<32x128xf32>
    %141 = tpu.matmul %138, %140, %cst_71 {dimension_numbers = #tpu.dot_dimension_numbers<[1], [0], [0], [1], [0, 0, 1, 1], [], []>} : vector<32x16xbf16>, vector<16x128xbf16>, vector<32x128xf32> -> vector<32x128xf32>
    %142 = arith.addf %127, %141 : vector<32x128xf32>
    %c0_72 = arith.constant 0 : index
    %c0_73 = arith.constant 0 : index
    %143 = vector.load %arg5[%c0_72, %c0_73] : memref<1x128xf32, #tpu.memory_space<vmem>>, vector<1x128xf32>
    %144 = vector.broadcast %143 : vector<1x128xf32> to vector<32x128xf32>
    %145 = arith.addf %142, %144 : vector<32x128xf32>
    %cst_74 = arith.constant 0.000000e+00 : f32
    %146 = vector.broadcast %cst_74 : f32 to vector<32x128xf32>
    %147 = arith.cmpf ogt, %145, %146 : vector<32x128xf32>
    %cst_75 = arith.constant 2.000000e-01 : f32
    %148 = vector.broadcast %cst_75 : f32 to vector<32x128xf32>
    %149 = arith.mulf %148, %145 : vector<32x128xf32>
    %150 = arith.select %147, %145, %149 : vector<32x128xi1>, vector<32x128xf32>
    %151 = tpu.iota {dimensions = array<i32: 0>} : vector<32x128xi32>
    %c8_i32 = arith.constant 8 : i32
    %152 = tpu.dynamic_rotate %150 by %c8_i32 dim 0 : vector<32x128xf32>, i32 -> vector<32x128xf32>
    %c-8_i32 = arith.constant -8 : i32
    %153 = vector.broadcast %c-8_i32 : i32 to vector<32x128xi32>
    %154 = arith.addi %151, %153 : vector<32x128xi32>
    %c0_i32_76 = arith.constant 0 : i32
    %155 = vector.broadcast %c0_i32_76 : i32 to vector<32x128xi32>
    %156 = arith.cmpi sge, %154, %155 : vector<32x128xi32>
    %c32_i32_77 = arith.constant 32 : i32
    %157 = vector.broadcast %c32_i32_77 : i32 to vector<32x128xi32>
    %158 = arith.cmpi slt, %154, %157 : vector<32x128xi32>
    %159 = arith.andi %156, %158 : vector<32x128xi1>
    %cst_78 = arith.constant 0.000000e+00 : f32
    %160 = vector.broadcast %cst_78 : f32 to vector<32x128xf32>
    %161 = arith.select %159, %152, %160 : vector<32x128xi1>, vector<32x128xf32>
    %162 = arith.truncf %161 : vector<32x128xf32> to vector<32x128xbf16>
    %c0_79 = arith.constant 0 : index
    %c0_80 = arith.constant 0 : index
    %c0_81 = arith.constant 0 : index
    %163 = vector.load %arg6[%c0_79, %c0_80, %c0_81] : memref<5x128x32xbf16, #tpu.memory_space<vmem>>, vector<1x128x32xbf16>
    %164 = vector.shape_cast %163 : vector<1x128x32xbf16> to vector<128x32xbf16>
    %cst_82 = arith.constant dense<0.000000e+00> : vector<32x32xf32>
    %165 = tpu.matmul %162, %164, %cst_82 {dimension_numbers = #tpu.dot_dimension_numbers<[1], [0], [0], [1], [0, 0, 1, 1], [], []>} : vector<32x128xbf16>, vector<128x32xbf16>, vector<32x32xf32> -> vector<32x32xf32>
    %c4_i32_83 = arith.constant 4 : i32
    %166 = tpu.dynamic_rotate %150 by %c4_i32_83 dim 0 : vector<32x128xf32>, i32 -> vector<32x128xf32>
    %c-4_i32_84 = arith.constant -4 : i32
    %167 = vector.broadcast %c-4_i32_84 : i32 to vector<32x128xi32>
    %168 = arith.addi %151, %167 : vector<32x128xi32>
    %c0_i32_85 = arith.constant 0 : i32
    %169 = vector.broadcast %c0_i32_85 : i32 to vector<32x128xi32>
    %170 = arith.cmpi sge, %168, %169 : vector<32x128xi32>
    %c32_i32_86 = arith.constant 32 : i32
    %171 = vector.broadcast %c32_i32_86 : i32 to vector<32x128xi32>
    %172 = arith.cmpi slt, %168, %171 : vector<32x128xi32>
    %173 = arith.andi %170, %172 : vector<32x128xi1>
    %cst_87 = arith.constant 0.000000e+00 : f32
    %174 = vector.broadcast %cst_87 : f32 to vector<32x128xf32>
    %175 = arith.select %173, %166, %174 : vector<32x128xi1>, vector<32x128xf32>
    %176 = arith.truncf %175 : vector<32x128xf32> to vector<32x128xbf16>
    %c1_88 = arith.constant 1 : index
    %c0_89 = arith.constant 0 : index
    %c0_90 = arith.constant 0 : index
    %177 = vector.load %arg6[%c1_88, %c0_89, %c0_90] : memref<5x128x32xbf16, #tpu.memory_space<vmem>>, vector<1x128x32xbf16>
    %178 = vector.shape_cast %177 : vector<1x128x32xbf16> to vector<128x32xbf16>
    %cst_91 = arith.constant dense<0.000000e+00> : vector<32x32xf32>
    %179 = tpu.matmul %176, %178, %cst_91 {dimension_numbers = #tpu.dot_dimension_numbers<[1], [0], [0], [1], [0, 0, 1, 1], [], []>} : vector<32x128xbf16>, vector<128x32xbf16>, vector<32x32xf32> -> vector<32x32xf32>
    %180 = arith.addf %165, %179 : vector<32x32xf32>
    %181 = arith.truncf %150 : vector<32x128xf32> to vector<32x128xbf16>
    %c2_92 = arith.constant 2 : index
    %c0_93 = arith.constant 0 : index
    %c0_94 = arith.constant 0 : index
    %182 = vector.load %arg6[%c2_92, %c0_93, %c0_94] : memref<5x128x32xbf16, #tpu.memory_space<vmem>>, vector<1x128x32xbf16>
    %183 = vector.shape_cast %182 : vector<1x128x32xbf16> to vector<128x32xbf16>
    %cst_95 = arith.constant dense<0.000000e+00> : vector<32x32xf32>
    %184 = tpu.matmul %181, %183, %cst_95 {dimension_numbers = #tpu.dot_dimension_numbers<[1], [0], [0], [1], [0, 0, 1, 1], [], []>} : vector<32x128xbf16>, vector<128x32xbf16>, vector<32x32xf32> -> vector<32x32xf32>
    %185 = arith.addf %180, %184 : vector<32x32xf32>
    %c28_i32_96 = arith.constant 28 : i32
    %186 = tpu.dynamic_rotate %150 by %c28_i32_96 dim 0 : vector<32x128xf32>, i32 -> vector<32x128xf32>
    %c4_i32_97 = arith.constant 4 : i32
    %187 = vector.broadcast %c4_i32_97 : i32 to vector<32x128xi32>
    %188 = arith.addi %151, %187 : vector<32x128xi32>
    %c0_i32_98 = arith.constant 0 : i32
    %189 = vector.broadcast %c0_i32_98 : i32 to vector<32x128xi32>
    %190 = arith.cmpi sge, %188, %189 : vector<32x128xi32>
    %c32_i32_99 = arith.constant 32 : i32
    %191 = vector.broadcast %c32_i32_99 : i32 to vector<32x128xi32>
    %192 = arith.cmpi slt, %188, %191 : vector<32x128xi32>
    %193 = arith.andi %190, %192 : vector<32x128xi1>
    %cst_100 = arith.constant 0.000000e+00 : f32
    %194 = vector.broadcast %cst_100 : f32 to vector<32x128xf32>
    %195 = arith.select %193, %186, %194 : vector<32x128xi1>, vector<32x128xf32>
    %196 = arith.truncf %195 : vector<32x128xf32> to vector<32x128xbf16>
    %c3_101 = arith.constant 3 : index
    %c0_102 = arith.constant 0 : index
    %c0_103 = arith.constant 0 : index
    %197 = vector.load %arg6[%c3_101, %c0_102, %c0_103] : memref<5x128x32xbf16, #tpu.memory_space<vmem>>, vector<1x128x32xbf16>
    %198 = vector.shape_cast %197 : vector<1x128x32xbf16> to vector<128x32xbf16>
    %cst_104 = arith.constant dense<0.000000e+00> : vector<32x32xf32>
    %199 = tpu.matmul %196, %198, %cst_104 {dimension_numbers = #tpu.dot_dimension_numbers<[1], [0], [0], [1], [0, 0, 1, 1], [], []>} : vector<32x128xbf16>, vector<128x32xbf16>, vector<32x32xf32> -> vector<32x32xf32>
    %200 = arith.addf %185, %199 : vector<32x32xf32>
    %c24_i32 = arith.constant 24 : i32
    %201 = tpu.dynamic_rotate %150 by %c24_i32 dim 0 : vector<32x128xf32>, i32 -> vector<32x128xf32>
    %c8_i32_105 = arith.constant 8 : i32
    %202 = vector.broadcast %c8_i32_105 : i32 to vector<32x128xi32>
    %203 = arith.addi %151, %202 : vector<32x128xi32>
    %c0_i32_106 = arith.constant 0 : i32
    %204 = vector.broadcast %c0_i32_106 : i32 to vector<32x128xi32>
    %205 = arith.cmpi sge, %203, %204 : vector<32x128xi32>
    %c32_i32_107 = arith.constant 32 : i32
    %206 = vector.broadcast %c32_i32_107 : i32 to vector<32x128xi32>
    %207 = arith.cmpi slt, %203, %206 : vector<32x128xi32>
    %208 = arith.andi %205, %207 : vector<32x128xi1>
    %cst_108 = arith.constant 0.000000e+00 : f32
    %209 = vector.broadcast %cst_108 : f32 to vector<32x128xf32>
    %210 = arith.select %208, %201, %209 : vector<32x128xi1>, vector<32x128xf32>
    %211 = arith.truncf %210 : vector<32x128xf32> to vector<32x128xbf16>
    %c4_109 = arith.constant 4 : index
    %c0_110 = arith.constant 0 : index
    %c0_111 = arith.constant 0 : index
    %212 = vector.load %arg6[%c4_109, %c0_110, %c0_111] : memref<5x128x32xbf16, #tpu.memory_space<vmem>>, vector<1x128x32xbf16>
    %213 = vector.shape_cast %212 : vector<1x128x32xbf16> to vector<128x32xbf16>
    %cst_112 = arith.constant dense<0.000000e+00> : vector<32x32xf32>
    %214 = tpu.matmul %211, %213, %cst_112 {dimension_numbers = #tpu.dot_dimension_numbers<[1], [0], [0], [1], [0, 0, 1, 1], [], []>} : vector<32x128xbf16>, vector<128x32xbf16>, vector<32x32xf32> -> vector<32x32xf32>
    %215 = arith.addf %200, %214 : vector<32x32xf32>
    %c0_113 = arith.constant 0 : index
    %c0_114 = arith.constant 0 : index
    %216 = vector.load %arg7[%c0_113, %c0_114] : memref<1x32xf32, #tpu.memory_space<vmem>>, vector<1x32xf32>
    %217 = vector.broadcast %216 : vector<1x32xf32> to vector<32x32xf32>
    %218 = arith.addf %215, %217 : vector<32x32xf32>
    %cst_115 = arith.constant 0.000000e+00 : f32
    %219 = vector.broadcast %cst_115 : f32 to vector<32x32xf32>
    %220 = arith.cmpf ogt, %218, %219 : vector<32x32xf32>
    %cst_116 = arith.constant 2.000000e-01 : f32
    %221 = vector.broadcast %cst_116 : f32 to vector<32x32xf32>
    %222 = arith.mulf %221, %218 : vector<32x32xf32>
    %223 = arith.select %220, %218, %222 : vector<32x32xi1>, vector<32x32xf32>
    %224 = tpu.iota {dimensions = array<i32: 0>} : vector<32x32xi32>
    %c16_i32 = arith.constant 16 : i32
    %225 = tpu.dynamic_rotate %223 by %c16_i32 dim 0 : vector<32x32xf32>, i32 -> vector<32x32xf32>
    %c-16_i32 = arith.constant -16 : i32
    %226 = vector.broadcast %c-16_i32 : i32 to vector<32x32xi32>
    %227 = arith.addi %224, %226 : vector<32x32xi32>
    %c0_i32_117 = arith.constant 0 : i32
    %228 = vector.broadcast %c0_i32_117 : i32 to vector<32x32xi32>
    %229 = arith.cmpi sge, %227, %228 : vector<32x32xi32>
    %c32_i32_118 = arith.constant 32 : i32
    %230 = vector.broadcast %c32_i32_118 : i32 to vector<32x32xi32>
    %231 = arith.cmpi slt, %227, %230 : vector<32x32xi32>
    %232 = arith.andi %229, %231 : vector<32x32xi1>
    %cst_119 = arith.constant 0.000000e+00 : f32
    %233 = vector.broadcast %cst_119 : f32 to vector<32x32xf32>
    %234 = arith.select %232, %225, %233 : vector<32x32xi1>, vector<32x32xf32>
    %235 = arith.truncf %234 : vector<32x32xf32> to vector<32x32xbf16>
    %c0_120 = arith.constant 0 : index
    %c0_121 = arith.constant 0 : index
    %c0_122 = arith.constant 0 : index
    %236 = vector.load %arg8[%c0_120, %c0_121, %c0_122] : memref<5x32x128xbf16, #tpu.memory_space<vmem>>, vector<1x32x128xbf16>
    %237 = vector.shape_cast %236 : vector<1x32x128xbf16> to vector<32x128xbf16>
    %cst_123 = arith.constant dense<0.000000e+00> : vector<32x128xf32>
    %238 = tpu.matmul %235, %237, %cst_123 {dimension_numbers = #tpu.dot_dimension_numbers<[1], [0], [0], [1], [0, 0, 1, 1], [], []>} : vector<32x32xbf16>, vector<32x128xbf16>, vector<32x128xf32> -> vector<32x128xf32>
    %c8_i32_124 = arith.constant 8 : i32
    %239 = tpu.dynamic_rotate %223 by %c8_i32_124 dim 0 : vector<32x32xf32>, i32 -> vector<32x32xf32>
    %c-8_i32_125 = arith.constant -8 : i32
    %240 = vector.broadcast %c-8_i32_125 : i32 to vector<32x32xi32>
    %241 = arith.addi %224, %240 : vector<32x32xi32>
    %c0_i32_126 = arith.constant 0 : i32
    %242 = vector.broadcast %c0_i32_126 : i32 to vector<32x32xi32>
    %243 = arith.cmpi sge, %241, %242 : vector<32x32xi32>
    %c32_i32_127 = arith.constant 32 : i32
    %244 = vector.broadcast %c32_i32_127 : i32 to vector<32x32xi32>
    %245 = arith.cmpi slt, %241, %244 : vector<32x32xi32>
    %246 = arith.andi %243, %245 : vector<32x32xi1>
    %cst_128 = arith.constant 0.000000e+00 : f32
    %247 = vector.broadcast %cst_128 : f32 to vector<32x32xf32>
    %248 = arith.select %246, %239, %247 : vector<32x32xi1>, vector<32x32xf32>
    %249 = arith.truncf %248 : vector<32x32xf32> to vector<32x32xbf16>
    %c1_129 = arith.constant 1 : index
    %c0_130 = arith.constant 0 : index
    %c0_131 = arith.constant 0 : index
    %250 = vector.load %arg8[%c1_129, %c0_130, %c0_131] : memref<5x32x128xbf16, #tpu.memory_space<vmem>>, vector<1x32x128xbf16>
    %251 = vector.shape_cast %250 : vector<1x32x128xbf16> to vector<32x128xbf16>
    %cst_132 = arith.constant dense<0.000000e+00> : vector<32x128xf32>
    %252 = tpu.matmul %249, %251, %cst_132 {dimension_numbers = #tpu.dot_dimension_numbers<[1], [0], [0], [1], [0, 0, 1, 1], [], []>} : vector<32x32xbf16>, vector<32x128xbf16>, vector<32x128xf32> -> vector<32x128xf32>
    %253 = arith.addf %238, %252 : vector<32x128xf32>
    %254 = arith.truncf %223 : vector<32x32xf32> to vector<32x32xbf16>
    %c2_133 = arith.constant 2 : index
    %c0_134 = arith.constant 0 : index
    %c0_135 = arith.constant 0 : index
    %255 = vector.load %arg8[%c2_133, %c0_134, %c0_135] : memref<5x32x128xbf16, #tpu.memory_space<vmem>>, vector<1x32x128xbf16>
    %256 = vector.shape_cast %255 : vector<1x32x128xbf16> to vector<32x128xbf16>
    %cst_136 = arith.constant dense<0.000000e+00> : vector<32x128xf32>
    %257 = tpu.matmul %254, %256, %cst_136 {dimension_numbers = #tpu.dot_dimension_numbers<[1], [0], [0], [1], [0, 0, 1, 1], [], []>} : vector<32x32xbf16>, vector<32x128xbf16>, vector<32x128xf32> -> vector<32x128xf32>
    %258 = arith.addf %253, %257 : vector<32x128xf32>
    %c24_i32_137 = arith.constant 24 : i32
    %259 = tpu.dynamic_rotate %223 by %c24_i32_137 dim 0 : vector<32x32xf32>, i32 -> vector<32x32xf32>
    %c8_i32_138 = arith.constant 8 : i32
    %260 = vector.broadcast %c8_i32_138 : i32 to vector<32x32xi32>
    %261 = arith.addi %224, %260 : vector<32x32xi32>
    %c0_i32_139 = arith.constant 0 : i32
    %262 = vector.broadcast %c0_i32_139 : i32 to vector<32x32xi32>
    %263 = arith.cmpi sge, %261, %262 : vector<32x32xi32>
    %c32_i32_140 = arith.constant 32 : i32
    %264 = vector.broadcast %c32_i32_140 : i32 to vector<32x32xi32>
    %265 = arith.cmpi slt, %261, %264 : vector<32x32xi32>
    %266 = arith.andi %263, %265 : vector<32x32xi1>
    %cst_141 = arith.constant 0.000000e+00 : f32
    %267 = vector.broadcast %cst_141 : f32 to vector<32x32xf32>
    %268 = arith.select %266, %259, %267 : vector<32x32xi1>, vector<32x32xf32>
    %269 = arith.truncf %268 : vector<32x32xf32> to vector<32x32xbf16>
    %c3_142 = arith.constant 3 : index
    %c0_143 = arith.constant 0 : index
    %c0_144 = arith.constant 0 : index
    %270 = vector.load %arg8[%c3_142, %c0_143, %c0_144] : memref<5x32x128xbf16, #tpu.memory_space<vmem>>, vector<1x32x128xbf16>
    %271 = vector.shape_cast %270 : vector<1x32x128xbf16> to vector<32x128xbf16>
    %cst_145 = arith.constant dense<0.000000e+00> : vector<32x128xf32>
    %272 = tpu.matmul %269, %271, %cst_145 {dimension_numbers = #tpu.dot_dimension_numbers<[1], [0], [0], [1], [0, 0, 1, 1], [], []>} : vector<32x32xbf16>, vector<32x128xbf16>, vector<32x128xf32> -> vector<32x128xf32>
    %273 = arith.addf %258, %272 : vector<32x128xf32>
    %c16_i32_146 = arith.constant 16 : i32
    %274 = tpu.dynamic_rotate %223 by %c16_i32_146 dim 0 : vector<32x32xf32>, i32 -> vector<32x32xf32>
    %c16_i32_147 = arith.constant 16 : i32
    %275 = vector.broadcast %c16_i32_147 : i32 to vector<32x32xi32>
    %276 = arith.addi %224, %275 : vector<32x32xi32>
    %c0_i32_148 = arith.constant 0 : i32
    %277 = vector.broadcast %c0_i32_148 : i32 to vector<32x32xi32>
    %278 = arith.cmpi sge, %276, %277 : vector<32x32xi32>
    %c32_i32_149 = arith.constant 32 : i32
    %279 = vector.broadcast %c32_i32_149 : i32 to vector<32x32xi32>
    %280 = arith.cmpi slt, %276, %279 : vector<32x32xi32>
    %281 = arith.andi %278, %280 : vector<32x32xi1>
    %cst_150 = arith.constant 0.000000e+00 : f32
    %282 = vector.broadcast %cst_150 : f32 to vector<32x32xf32>
    %283 = arith.select %281, %274, %282 : vector<32x32xi1>, vector<32x32xf32>
    %284 = arith.truncf %283 : vector<32x32xf32> to vector<32x32xbf16>
    %c4_151 = arith.constant 4 : index
    %c0_152 = arith.constant 0 : index
    %c0_153 = arith.constant 0 : index
    %285 = vector.load %arg8[%c4_151, %c0_152, %c0_153] : memref<5x32x128xbf16, #tpu.memory_space<vmem>>, vector<1x32x128xbf16>
    %286 = vector.shape_cast %285 : vector<1x32x128xbf16> to vector<32x128xbf16>
    %cst_154 = arith.constant dense<0.000000e+00> : vector<32x128xf32>
    %287 = tpu.matmul %284, %286, %cst_154 {dimension_numbers = #tpu.dot_dimension_numbers<[1], [0], [0], [1], [0, 0, 1, 1], [], []>} : vector<32x32xbf16>, vector<32x128xbf16>, vector<32x128xf32> -> vector<32x128xf32>
    %288 = arith.addf %273, %287 : vector<32x128xf32>
    %c0_155 = arith.constant 0 : index
    %c0_156 = arith.constant 0 : index
    %289 = vector.load %arg9[%c0_155, %c0_156] : memref<1x128xf32, #tpu.memory_space<vmem>>, vector<1x128xf32>
    %290 = vector.broadcast %289 : vector<1x128xf32> to vector<32x128xf32>
    %291 = arith.addf %288, %290 : vector<32x128xf32>
    %cst_157 = arith.constant 0.000000e+00 : f32
    %292 = vector.broadcast %cst_157 : f32 to vector<32x128xf32>
    %293 = arith.cmpf ogt, %291, %292 : vector<32x128xf32>
    %cst_158 = arith.constant 2.000000e-01 : f32
    %294 = vector.broadcast %cst_158 : f32 to vector<32x128xf32>
    %295 = arith.mulf %294, %291 : vector<32x128xf32>
    %296 = arith.select %293, %291, %295 : vector<32x128xi1>, vector<32x128xf32>
    %297 = vector.extract_strided_slice %296 {offsets = [0, 0], sizes = [1, 128], strides = [1, 1]} : vector<32x128xf32> to vector<1x128xf32>
    %298 = vector.extract_strided_slice %296 {offsets = [16, 0], sizes = [1, 128], strides = [1, 1]} : vector<32x128xf32> to vector<1x128xf32>
    %299 = tpu.concatenate %297, %298 in 1 : vector<1x128xf32>, vector<1x128xf32> -> vector<1x256xf32>
    %300 = arith.truncf %299 : vector<1x256xf32> to vector<1x256xbf16>
    %c0_i32_159 = arith.constant 0 : i32
    %301 = arith.cmpi eq, %arg0, %c0_i32_159 : i32
    %302 = arith.extui %301 : i1 to i32
    %c0_i32_160 = arith.constant 0 : i32
    %303 = arith.cmpi ne, %302, %c0_i32_160 : i32
    scf.if %303 {
      %c0_i32_176 = arith.constant 0 : i32
      %321 = tpu.memref_slice %arg17[%c0_i32_176] : memref<2x!tpu.dma_semaphore, #tpu.memory_space<semaphore_mem>> -> memref<1x!tpu.dma_semaphore, #tpu.memory_space<semaphore_mem>>
      %322 = tpu.memref_squeeze %321 : memref<1x!tpu.dma_semaphore, #tpu.memory_space<semaphore_mem>> -> memref<!tpu.dma_semaphore, #tpu.memory_space<semaphore_mem>>
      tpu.wait_dma2 semaphore(%322 : memref<!tpu.dma_semaphore, #tpu.memory_space<semaphore_mem>>) src(%arg10 : memref<256x2048xbf16, #tpu.memory_space<any>>) dst(%arg15 : memref<256x2048xbf16, #tpu.memory_space<vmem>>)
      %c1_i32_177 = arith.constant 1 : i32
      %323 = tpu.memref_slice %arg17[%c1_i32_177] : memref<2x!tpu.dma_semaphore, #tpu.memory_space<semaphore_mem>> -> memref<1x!tpu.dma_semaphore, #tpu.memory_space<semaphore_mem>>
      %324 = tpu.memref_squeeze %323 : memref<1x!tpu.dma_semaphore, #tpu.memory_space<semaphore_mem>> -> memref<!tpu.dma_semaphore, #tpu.memory_space<semaphore_mem>>
      tpu.wait_dma2 semaphore(%324 : memref<!tpu.dma_semaphore, #tpu.memory_space<semaphore_mem>>) src(%arg12 : memref<2048x64xbf16, #tpu.memory_space<any>>) dst(%arg16 : memref<2048x64xbf16, #tpu.memory_space<vmem>>)
    } else {
    }
    %c0_161 = arith.constant 0 : index
    %c0_162 = arith.constant 0 : index
    %304 = vector.load %arg15[%c0_161, %c0_162] : memref<256x2048xbf16, #tpu.memory_space<vmem>>, vector<256x2048xbf16>
    %cst_163 = arith.constant dense<0.000000e+00> : vector<1x2048xf32>
    %305 = tpu.matmul %300, %304, %cst_163 {dimension_numbers = #tpu.dot_dimension_numbers<[1], [0], [0], [1], [0, 0, 1, 1], [], []>} : vector<1x256xbf16>, vector<256x2048xbf16>, vector<1x2048xf32> -> vector<1x2048xf32>
    %c0_164 = arith.constant 0 : index
    %c0_165 = arith.constant 0 : index
    %306 = vector.load %arg11[%c0_164, %c0_165] : memref<1x2048xf32, #tpu.memory_space<vmem>>, vector<1x2048xf32>
    %307 = arith.addf %305, %306 : vector<1x2048xf32>
    %cst_166 = arith.constant 0.000000e+00 : f32
    %308 = vector.broadcast %cst_166 : f32 to vector<1x2048xf32>
    %309 = arith.cmpf ogt, %307, %308 : vector<1x2048xf32>
    %cst_167 = arith.constant 2.000000e-01 : f32
    %310 = vector.broadcast %cst_167 : f32 to vector<1x2048xf32>
    %311 = arith.mulf %310, %307 : vector<1x2048xf32>
    %312 = arith.select %309, %307, %311 : vector<1x2048xi1>, vector<1x2048xf32>
    %313 = arith.truncf %312 : vector<1x2048xf32> to vector<1x2048xbf16>
    %c0_168 = arith.constant 0 : index
    %c0_169 = arith.constant 0 : index
    %314 = vector.load %arg16[%c0_168, %c0_169] : memref<2048x64xbf16, #tpu.memory_space<vmem>>, vector<2048x64xbf16>
    %cst_170 = arith.constant dense<0.000000e+00> : vector<1x64xf32>
    %315 = tpu.matmul %313, %314, %cst_170 {dimension_numbers = #tpu.dot_dimension_numbers<[1], [0], [0], [1], [0, 0, 1, 1], [], []>} : vector<1x2048xbf16>, vector<2048x64xbf16>, vector<1x64xf32> -> vector<1x64xf32>
    %c0_171 = arith.constant 0 : index
    %c0_172 = arith.constant 0 : index
    %316 = vector.load %arg13[%c0_171, %c0_172] : memref<1x64xf32, #tpu.memory_space<vmem>>, vector<1x64xf32>
    %317 = arith.addf %315, %316 : vector<1x64xf32>
    %c0_173 = arith.constant 0 : index
    %c0_174 = arith.constant 0 : index
    %c0_175 = arith.constant 0 : index
    %318 = vector.load %arg14[%c0_173, %c0_174, %c0_175] : memref<1x1x64xf32, #tpu.memory_space<vmem>>, vector<1x1x64xf32>
    %319 = vector.shape_cast %318 : vector<1x1x64xf32> to vector<1x64xf32>
    %320 = vector.shape_cast %317 : vector<1x64xf32> to vector<1x1x64xf32>
    tpu.vector_store %arg14[%c0_173, %c0_174, %c0_175], %320 {strides = array<i32>} : memref<1x1x64xf32, #tpu.memory_space<vmem>>, vector<1x1x64xf32>,
    return
  }
  func.func @transform_0(%arg0: i32) -> (i32, i32, i32) {
    %c0_i32 = arith.constant 0 : i32
    %c0_i32_0 = arith.constant 0 : i32
    %c0_i32_1 = arith.constant 0 : i32
    return %arg0, %c0_i32, %c0_i32_0 : i32, i32, i32
  }
  func.func @transform_1(%arg0: i32) -> (i32, i32, i32) {
    %c0_i32 = arith.constant 0 : i32
    %c0_i32_0 = arith.constant 0 : i32
    %c0_i32_1 = arith.constant 0 : i32
    %c0_i32_2 = arith.constant 0 : i32
    return %c0_i32, %c0_i32_0, %c0_i32_1 : i32, i32, i32
  }
  func.func @transform_2(%arg0: i32) -> (i32, i32) {
    %c0_i32 = arith.constant 0 : i32
    %c0_i32_0 = arith.constant 0 : i32
    %c0_i32_1 = arith.constant 0 : i32
    return %c0_i32, %c0_i32_0 : i32, i32
  }
  func.func @transform_3(%arg0: i32) -> (i32, i32, i32) {
    %c0_i32 = arith.constant 0 : i32
    %c0_i32_0 = arith.constant 0 : i32
    %c0_i32_1 = arith.constant 0 : i32
    %c0_i32_2 = arith.constant 0 : i32
    return %c0_i32, %c0_i32_0, %c0_i32_1 : i32, i32, i32
  }
  func.func @transform_4(%arg0: i32) -> (i32, i32) {
    %c0_i32 = arith.constant 0 : i32
    %c0_i32_0 = arith.constant 0 : i32
    %c0_i32_1 = arith.constant 0 : i32
    return %c0_i32, %c0_i32_0 : i32, i32
  }
  func.func @transform_5(%arg0: i32) -> (i32, i32, i32) {
    %c0_i32 = arith.constant 0 : i32
    %c0_i32_0 = arith.constant 0 : i32
    %c0_i32_1 = arith.constant 0 : i32
    %c0_i32_2 = arith.constant 0 : i32
    return %c0_i32, %c0_i32_0, %c0_i32_1 : i32, i32, i32
  }
  func.func @transform_6(%arg0: i32) -> (i32, i32) {
    %c0_i32 = arith.constant 0 : i32
    %c0_i32_0 = arith.constant 0 : i32
    %c0_i32_1 = arith.constant 0 : i32
    return %c0_i32, %c0_i32_0 : i32, i32
  }
  func.func @transform_7(%arg0: i32) -> (i32, i32, i32) {
    %c0_i32 = arith.constant 0 : i32
    %c0_i32_0 = arith.constant 0 : i32
    %c0_i32_1 = arith.constant 0 : i32
    %c0_i32_2 = arith.constant 0 : i32
    return %c0_i32, %c0_i32_0, %c0_i32_1 : i32, i32, i32
  }
  func.func @transform_8(%arg0: i32) -> (i32, i32) {
    %c0_i32 = arith.constant 0 : i32
    %c0_i32_0 = arith.constant 0 : i32
    %c0_i32_1 = arith.constant 0 : i32
    return %c0_i32, %c0_i32_0 : i32, i32
  }
  func.func @transform_10(%arg0: i32) -> (i32, i32) {
    %c0_i32 = arith.constant 0 : i32
    %c0_i32_0 = arith.constant 0 : i32
    %c0_i32_1 = arith.constant 0 : i32
    return %c0_i32, %c0_i32_0 : i32, i32
  }
  func.func @transform_12(%arg0: i32) -> (i32, i32) {
    %c0_i32 = arith.constant 0 : i32
    %c0_i32_0 = arith.constant 0 : i32
    %c0_i32_1 = arith.constant 0 : i32
    return %c0_i32, %c0_i32_0 : i32, i32
  }
  func.func @transform_13(%arg0: i32) -> (i32, i32, i32) {
    %c0_i32 = arith.constant 0 : i32
    %c0_i32_0 = arith.constant 0 : i32
    %c0_i32_1 = arith.constant 0 : i32
    return %arg0, %c0_i32, %c0_i32_0 : i32, i32, i32
  }
}

</mosaic_0001>

<bundles_post_ra>
// kernel: fwd.1
= control target key start
LH: loop header
LB: loop body
LE: loop exit
PB: predicated region body
PF: predicated region fallthrough
CT: control target
= control target key end

     0   :  { %18 = vsyncpa [#allocation6], 0  ;;  %s11649_s0 = inlined_call_operand.vmem [shape: f32[2,32,7], index: 0, kind: input, shape index: {}]   ;;  %s11650_s1 = inlined_call_operand.vmem [shape: bf16[5,7,16], index: 1, kind: input, shape index: {}]   ;;  %s11651_s2 = inlined_call_operand.vmem [shape: f32[1,16], index: 2, kind: input, shape index: {}]   ;;  %s11652_s3 = inlined_call_operand.vmem [shape: bf16[5,16,128], index: 3, kind: input, shape index: {}]   ;;  %s11653_s4 = inlined_call_operand.vmem [shape: f32[1,128], index: 4, kind: input, shape index: {}]   ;;  %s11654_s5 = inlined_call_operand.vmem [shape: bf16[5,128,32], index: 5, kind: input, shape index: {}]   ;;  %s11655_s6 = inlined_call_operand.vmem [shape: f32[1,32], index: 6, kind: input, shape index: {}]   ;;  %s11656_s7 = inlined_call_operand.hbm [shape: bf16[5,32,128], index: 7, kind: input, shape index: {}]   ;;  %s11657_s8 = inlined_call_operand.vmem [shape: f32[1,128], index: 8, kind: input, shape index: {}]   ;;  %s11658_s9 = inlined_call_operand.vmem [shape: bf16[256,2048], index: 9, kind: input, shape index: {}]   ;;  %s11659_s10 = inlined_call_operand.hbm [shape: f32[1,2048], index: 10, kind: input, shape index: {}]   ;;  %s11660_s11 = inlined_call_operand.vmem [shape: bf16[2048,64], index: 11, kind: input, shape index: {}]   ;;  %s11661_s12 = inlined_call_operand.vmem [shape: f32[1,64], index: 12, kind: input, shape index: {}]   ;;  %s11662_s13 = inlined_call_operand.vmem [shape: f32[2,1,64], index: 13, kind: output, shape index: {}]  }
   0x1   :  { %19 = vsyncpa [#allocation8], 0  ;;  %s9201_s25 = smov 0  }
   0x2 LB: > { %s9207_s26 = sadd.s32 4294967295, %s9121_s25   ;;  %p8236_p0 = scmp.ge.s32.totalorder %s9121_s25, 1  ;;  %s9121_s25 = sphi %s9201_s25, %s25_s25  }
   0x3   : > { %p292_p1 = scmp.lt.s32.totalorder %s9121_s25, 3  ;;  %s9123_s27 = smov [#allocation5]  }
   0x4   : > { %s322_s28 = sshll.u32 %s9123_s27, 4  ;;  %p11663_p4 = scmp.eq.s32.totalorder %s9207_s26, 0  ;;  %s323_s28 = int_to_ptr.vmem [resolvable:$true] %s322_s28 }
   0x5   : > { %p9212_p3 = pnand %p8236_p0, %p292_p1  ;;  %s9124_s30 = smov [#allocation7]  }
   0x6   : > { %s339_s14 = sshll.u32 %s9124_s30, 4  ;;  %s9043_s18 = scalar_lea.hbm %s11656_s7, 1280  ;;  %s9225_s14 = int_to_ptr.vmem [resolvable:$true] %s339_s14 }
   0x7   : > { %s11665_s29 = scalar_select %p9212_p3, 1, 0 }
   0x8   : > { %p8960_p5 = pneg %p9212_p3  ;;  %p9044_p7 = scmp.ne.s32.totalorder %s11656_s7, %s9043_s18 }
   0x9   : > { %p9050_p11 = scmp.lt.u32.totalorder %s9043_s18, %s11656_s7 }
   0xa   : > { %p9221_p6 = pnand %p11663_p4, %p8960_p5 }
   0xc   : > { %p9045_p8 = pneg %p9221_p6 }
   0xe   : > { %p9046_p9 = pnand %p9045_p8, %p9044_p7 }
  0x10   : > { %p9047_p10 = pneg %p9046_p9 }
  0x12   : > { %p9052_p12 = pnand %p9050_p11, %p9047_p10 }
  0x14   : > { %9055 = shalt.err (!%p9052_p12)
}
  0x15   : > { %s9056_s23 = scalar_lea.vmem %s323_s28, 1280  ;;  %p9064_p5 = scmp.lt.s32.totalorder %s323_s28, %s323_s28 }
  0x16   : > { %p9057_p13 = scmp.ne.s32.totalorder %s323_s28, %s9056_s23  ;;  %p9065_p2 = scmp.lt.s32.totalorder %s9056_s23, %s9056_s23 }
  0x18   : > { %p9059_p0 = pnand %p9057_p13, %p9045_p8  ;;  %p9066_p4 = por %p9065_p2, %p9064_p5 }
  0x1a   : > { %p9060_p1 = pneg %p9059_p0 }
  0x1c   : > { %p9067_p3 = pnand %p9066_p4, %p9060_p1 }
  0x1e   : > { %9070 = shalt.err (!%p9067_p3)
}
  0x1f   : > { %s9125_s24 = smov 64   ;;  %s9126_s27 = smov 4  }
  0x20   : > { %8963 = dma.hbm_to_vmem [thread:$0]  (!%p9221_p6), %s11656_s7, 1280, %s323_s28, [#allocation6], %s9125_s24, %s9125_s24, %s9126_s27  }
  0x21   : > { %s9071_s19 = scalar_lea.hbm %s11659_s10, 256 }
  0x22   : > { %p9072_p7 = scmp.ne.s32.totalorder %s11659_s10, %s9071_s19  ;;  %p9078_p4 = scmp.lt.u32.totalorder %s9071_s19, %s11659_s10 }
  0x24   : > { %p9074_p2 = pnand %p9072_p7, %p9045_p8 }
  0x26   : > { %p9075_p3 = pneg %p9074_p2 }
  0x28   : > { %p9080_p9 = pnand %p9078_p4, %p9075_p3 }
  0x2a   : > { %9083 = shalt.err (!%p9080_p9)
}
  0x2b   : > { %s9084_s28 = scalar_lea.vmem %s9225_s14, 256  ;;  %p9092_p13 = scmp.lt.s32.totalorder %s9225_s14, %s9225_s14 }
  0x2c   : > { %p9085_p10 = scmp.ne.s32.totalorder %s9225_s14, %s9084_s28  ;;  %p9093_p0 = scmp.lt.s32.totalorder %s9084_s28, %s9084_s28 }
  0x2e   : > { %p9087_p11 = pnand %p9085_p10, %p9045_p8  ;;  %p9094_p1 = por %p9093_p0, %p9092_p13 }
  0x30   : > { %p9088_p12 = pneg %p9087_p11 }
  0x32   : > { %p9095_p5 = pnand %p9094_p1, %p9088_p12 }
  0x34   : > { %9098 = shalt.err (!%p9095_p5)
}
  0x35   : > { %8966 = dma.hbm_to_vmem [thread:$0]  (!%p9221_p6), %s11659_s10, 256, %s9225_s14, [#allocation8]  }
  0x36   : > { %p11667_p7 = scmp.ne.s32.totalorder %s11665_s29, 0 }
  0x37   : > { %p11668_p2 = scmp.eq.s32.totalorder (!%p11667_p7), %s9207_s26, 0 }
  0x38   : > { %363 = sbr.rel (%p11667_p7) target bundleno = 2392 (0x958), region = 64 }
  0x3f   : > { %9104 = dma.done.wait (%p11668_p2), [#allocation6], 1280   ;;  %p11669_p8 = pmov %p11668_p2 }
  0x40   : > { %p11670_p3 = pmov %p11668_p2 }
  0x41   : > { %9106 = vsyncadd (%p11669_p8), [#allocation6], 4294966016 }
  0x42   : > { %9108 = dma.done.wait (%p11670_p3), [#allocation8], 256   ;;  %p11671_p4 = pmov %p11668_p2 }
  0x43   : > { %p405_p9 = scmp.lt.s32.totalorder %s9207_s26, 1  ;;  %p11672_p6 = scmp.ne.s32.totalorder %s9207_s26, 0 }
  0x44   : > { %9110 = vsyncadd (%p11671_p4), [#allocation8], 4294967040  ;;  %v435_v0 = vld [vmem:[%s11658_s9] sm:$0xf] (!%p11672_p6)  ;;  %v439_v2 = vld [vmem:[%s11658_s9 + $0x4] sm:$0xf] (!%p11672_p6) }
  0x45   : > { %s9286_s15 = scalar_select %p405_p9, %s9207_s26, 1 }
  0x46   : > { %417 = sbr.rel (%p11672_p6) target bundleno = 464 (0x1d0), region = 76  ;;  %v437_v1 = vld [vmem:[%s11658_s9 + $0x40] sm:$0xf] (!%p11672_p6)  ;;  %436 = vst [vmem:[#allocation2] sm:$0xf] (!%p11672_p6), %v435_v0 }
  0x47   : > { %s8424_s29 = sshll.u32 %s9286_s15, 5  ;;  %s412_s16 = scalar_lea.vmem %s11662_s13, %s9286_s15  ;;  %438 = vst [vmem:[#allocation2 + $0x4] sm:$0xf] (!%p11672_p6), %v437_v1  ;;  %440 = vst [vmem:[#allocation2 + $0x8] sm:$0xf] (!%p11672_p6), %v439_v2  ;;  %v497_v31 = vld [vmem:[%s11658_s9 + $0x7c] sm:$0xff] (!%p11672_p6)  }
  0x48   : > { %s9296_s19 = scalar_lea.vmem %s11649_s0, %s8424_s29  ;;  %v441_v3 = vld [vmem:[%s11658_s9 + $0x44] sm:$0xf] (!%p11672_p6)  ;;  %v443_v4 = vld [vmem:[%s11658_s9 + $0x8] sm:$0xf] (!%p11672_p6)  ;;  %v447_v6 = vld [vmem:[%s11658_s9 + $0xc] sm:$0xf] (!%p11672_p6) }
  0x49   : > { %v445_v5 = vld [vmem:[%s11658_s9 + $0x48] sm:$0xf] (!%p11672_p6)  ;;  %442 = vst [vmem:[#allocation2 + $0xc] sm:$0xf] (!%p11672_p6), %v441_v3  ;;  %444 = vst [vmem:[#allocation2 + $0x10] sm:$0xf] (!%p11672_p6), %v443_v4 }
  0x4a   : > { %446 = vst [vmem:[#allocation2 + $0x14] sm:$0xf] (!%p11672_p6), %v445_v5  ;;  %v449_v7 = vld [vmem:[%s11658_s9 + $0x4c] sm:$0xf] (!%p11672_p6)  ;;  %v451_v8 = vld [vmem:[%s11658_s9 + $0x10] sm:$0xf] (!%p11672_p6) }
  0x4b   : > { %448 = vst [vmem:[#allocation2 + $0x18] sm:$0xf] (!%p11672_p6), %v447_v6  ;;  %450 = vst [vmem:[#allocation2 + $0x1c] sm:$0xf] (!%p11672_p6), %v449_v7  ;;  %v453_v9 = vld [vmem:[%s11658_s9 + $0x50] sm:$0xf] (!%p11672_p6) }
  0x4c   : > { %452 = vst [vmem:[#allocation2 + $0x20] sm:$0xf] (!%p11672_p6), %v451_v8  ;;  %v455_v10 = vld [vmem:[%s11658_s9 + $0x14] sm:$0xf] (!%p11672_p6)  ;;  %454 = vst [vmem:[#allocation2 + $0x24] sm:$0xf] (!%p11672_p6), %v453_v9 }
  0x4d   : > { %v457_v11 = vld [vmem:[%s11658_s9 + $0x54] sm:$0xf]  ;;  %456 = vst [vmem:[#allocation2 + $0x28] sm:$0xf] %v455_v10  ;;  %v459_v12 = vld [vmem:[%s11658_s9 + $0x18] sm:$0xf] }
  0x4e   : > { %458 = vst [vmem:[#allocation2 + $0x2c] sm:$0xf] %v457_v11  ;;  %v461_v13 = vld [vmem:[%s11658_s9 + $0x58] sm:$0xf]  ;;  %v463_v14 = vld [vmem:[%s11658_s9 + $0x1c] sm:$0xf] }
  0x4f   : > { %460 = vst [vmem:[#allocation2 + $0x30] sm:$0xf] %v459_v12  ;;  %462 = vst [vmem:[#allocation2 + $0x34] sm:$0xf] %v461_v13  ;;  %v465_v15 = vld [vmem:[%s11658_s9 + $0x5c] sm:$0xf] }
  0x50   : > { %464 = vst [vmem:[#allocation2 + $0x38] sm:$0xf] %v463_v14  ;;  %v467_v16 = vld [vmem:[%s11658_s9 + $0x20] sm:$0xf]  ;;  %466 = vst [vmem:[#allocation2 + $0x3c] sm:$0xf] %v465_v15 }
  0x51   : > { %v469_v17 = vld [vmem:[%s11658_s9 + $0x60] sm:$0xf]  ;;  %468 = vst [vmem:[#allocation2 + $0x40] sm:$0xf] %v467_v16  ;;  %v471_v18 = vld [vmem:[%s11658_s9 + $0x24] sm:$0xf] }
  0x52   : > { %470 = vst [vmem:[#allocation2 + $0x44] sm:$0xf] %v469_v17  ;;  %v473_v19 = vld [vmem:[%s11658_s9 + $0x64] sm:$0xf]  ;;  %v475_v20 = vld [vmem:[%s11658_s9 + $0x28] sm:$0xf] }
  0x53   : > { %472 = vst [vmem:[#allocation2 + $0x48] sm:$0xf] %v471_v18  ;;  %474 = vst [vmem:[#allocation2 + $0x4c] sm:$0xf] %v473_v19  ;;  %v477_v21 = vld [vmem:[%s11658_s9 + $0x68] sm:$0xf] }
  0x54   : > { %476 = vst [vmem:[#allocation2 + $0x50] sm:$0xf] %v475_v20  ;;  %v479_v22 = vld [vmem:[%s11658_s9 + $0x2c] sm:$0xf]  ;;  %478 = vst [vmem:[#allocation2 + $0x54] sm:$0xf] %v477_v21 }
  0x55   : > { %v481_v23 = vld [vmem:[%s11658_s9 + $0x6c] sm:$0xf]  ;;  %480 = vst [vmem:[#allocation2 + $0x58] sm:$0xf] %v479_v22  ;;  %v483_v24 = vld [vmem:[%s11658_s9 + $0x30] sm:$0xf] }
  0x56   : > { %482 = vst [vmem:[#allocation2 + $0x5c] sm:$0xf] %v481_v23  ;;  %v485_v25 = vld [vmem:[%s11658_s9 + $0x70] sm:$0xf]  ;;  %v487_v26 = vld [vmem:[%s11658_s9 + $0x34] sm:$0xf] }
  0x57   : > { %484 = vst [vmem:[#allocation2 + $0x60] sm:$0xf] %v483_v24  ;;  %486 = vst [vmem:[#allocation2 + $0x64] sm:$0xf] %v485_v25  ;;  %v489_v27 = vld [vmem:[%s11658_s9 + $0x74] sm:$0xf] }
  0x58   : > { %488 = vst [vmem:[#allocation2 + $0x68] sm:$0xf] %v487_v26  ;;  %v491_v28 = vld [vmem:[%s11658_s9 + $0x38] sm:$0xf]  ;;  %490 = vst [vmem:[#allocation2 + $0x6c] sm:$0xf] %v489_v27 }
  0x59   : > { %v493_v29 = vld [vmem:[%s11658_s9 + $0x78] sm:$0xf]  ;;  %492 = vst [vmem:[#allocation2 + $0x70] sm:$0xf] %v491_v28  ;;  %v495_v30 = vld [vmem:[%s11658_s9 + $0x3c] sm:$0xf] }
  0x5a   : > { %494 = vst [vmem:[#allocation2 + $0x74] sm:$0xf] %v493_v29  ;;  %v501_v32 = vld [vmem:[%s11658_s9 + $0xc0] sm:$0xf]  ;;  %496 = vst [vmem:[#allocation2 + $0x78] sm:$0xf] %v495_v30 }
  0x5b   : > { %498 = vst [vmem:[#allocation2 + $0x7c] sm:$0xff] %v497_v31   ;;  %502 = vst [vmem:[#allocation2 + $0x84] sm:$0xf] %v501_v32  ;;  %v503_v33 = vld [vmem:[%s11658_s9 + $0x84] sm:$0xf]  ;;  %v561_v62 = vld [vmem:[%s11658_s9 + $0xfc] sm:$0xff]  }
  0x5c   : > { %v505_v34 = vld [vmem:[%s11658_s9 + $0xc4] sm:$0xf]  ;;  %v507_v35 = vld [vmem:[%s11658_s9 + $0x88] sm:$0xf]  ;;  %504 = vst [vmem:[#allocation2 + $0x88] sm:$0xf] %v503_v33 }
  0x5d   : > { %506 = vst [vmem:[#allocation2 + $0x8c] sm:$0xf] %v505_v34  ;;  %508 = vst [vmem:[#allocation2 + $0x90] sm:$0xf] %v507_v35  ;;  %v509_v36 = vld [vmem:[%s11658_s9 + $0xc8] sm:$0xf] }
  0x5e   : > { %v511_v37 = vld [vmem:[%s11658_s9 + $0x8c] sm:$0xf]  ;;  %510 = vst [vmem:[#allocation2 + $0x94] sm:$0xf] %v509_v36  ;;  %v515_v39 = vld [vmem:[%s11658_s9 + $0x90] sm:$0xf] }
  0x5f   : > { %v513_v38 = vld [vmem:[%s11658_s9 + $0xcc] sm:$0xf]  ;;  %512 = vst [vmem:[#allocation2 + $0x98] sm:$0xf] %v511_v37  ;;  %v517_v40 = vld [vmem:[%s11658_s9 + $0xd0] sm:$0xf] }
  0x60   : > { %514 = vst [vmem:[#allocation2 + $0x9c] sm:$0xf] %v513_v38  ;;  %v519_v41 = vld [vmem:[%s11658_s9 + $0x94] sm:$0xf]  ;;  %516 = vst [vmem:[#allocation2 + $0xa0] sm:$0xf] %v515_v39 }
  0x61   : > { %518 = vst [vmem:[#allocation2 + $0xa4] sm:$0xf] %v517_v40  ;;  %520 = vst [vmem:[#allocation2 + $0xa8] sm:$0xf] %v519_v41  ;;  %v521_v42 = vld [vmem:[%s11658_s9 + $0xd4] sm:$0xf] }
  0x62   : > { %v523_v43 = vld [vmem:[%s11658_s9 + $0x98] sm:$0xf]  ;;  %522 = vst [vmem:[#allocation2 + $0xac] sm:$0xf] %v521_v42  ;;  %v527_v45 = vld [vmem:[%s11658_s9 + $0x9c] sm:$0xf] }
  0x63   : > { %v525_v44 = vld [vmem:[%s11658_s9 + $0xd8] sm:$0xf]  ;;  %524 = vst [vmem:[#allocation2 + $0xb0] sm:$0xf] %v523_v43  ;;  %v529_v46 = vld [vmem:[%s11658_s9 + $0xdc] sm:$0xf] }
  0x64   : > { %526 = vst [vmem:[#allocation2 + $0xb4] sm:$0xf] %v525_v44  ;;  %v531_v47 = vld [vmem:[%s11658_s9 + $0xa0] sm:$0xf]  ;;  %528 = vst [vmem:[#allocation2 + $0xb8] sm:$0xf] %v527_v45 }
  0x65   : > { %530 = vst [vmem:[#allocation2 + $0xbc] sm:$0xf] %v529_v46  ;;  %532 = vst [vmem:[#allocation2 + $0xc0] sm:$0xf] %v531_v47  ;;  %v533_v48 = vld [vmem:[%s11658_s9 + $0xe0] sm:$0xf] }
  0x66   : > { %v535_v49 = vld [vmem:[%s11658_s9 + $0xa4] sm:$0xf]  ;;  %534 = vst [vmem:[#allocation2 + $0xc4] sm:$0xf] %v533_v48  ;;  %v539_v51 = vld [vmem:[%s11658_s9 + $0xa8] sm:$0xf] }
  0x67   : > { %v537_v50 = vld [vmem:[%s11658_s9 + $0xe4] sm:$0xf]  ;;  %536 = vst [vmem:[#allocation2 + $0xc8] sm:$0xf] %v535_v49  ;;  %v541_v52 = vld [vmem:[%s11658_s9 + $0xe8] sm:$0xf] }
  0x68   : > { %538 = vst [vmem:[#allocation2 + $0xcc] sm:$0xf] %v537_v50  ;;  %v543_v53 = vld [vmem:[%s11658_s9 + $0xac] sm:$0xf]  ;;  %540 = vst [vmem:[#allocation2 + $0xd0] sm:$0xf] %v539_v51 }
  0x69   : > { %542 = vst [vmem:[#allocation2 + $0xd4] sm:$0xf] %v541_v52  ;;  %544 = vst [vmem:[#allocation2 + $0xd8] sm:$0xf] %v543_v53  ;;  %v545_v54 = vld [vmem:[%s11658_s9 + $0xec] sm:$0xf] }
  0x6a   : > { %v547_v55 = vld [vmem:[%s11658_s9 + $0xb0] sm:$0xf]  ;;  %546 = vst [vmem:[#allocation2 + $0xdc] sm:$0xf] %v545_v54  ;;  %v551_v57 = vld [vmem:[%s11658_s9 + $0xb4] sm:$0xf] }
  0x6b   : > { %v549_v56 = vld [vmem:[%s11658_s9 + $0xf0] sm:$0xf]  ;;  %548 = vst [vmem:[#allocation2 + $0xe0] sm:$0xf] %v547_v55  ;;  %v553_v58 = vld [vmem:[%s11658_s9 + $0xf4] sm:$0xf] }
  0x6c   : > { %550 = vst [vmem:[#allocation2 + $0xe4] sm:$0xf] %v549_v56  ;;  %v555_v59 = vld [vmem:[%s11658_s9 + $0xb8] sm:$0xf]  ;;  %552 = vst [vmem:[#allocation2 + $0xe8] sm:$0xf] %v551_v57 }
  0x6d   : > { %554 = vst [vmem:[#allocation2 + $0xec] sm:$0xf] %v553_v58  ;;  %556 = vst [vmem:[#allocation2 + $0xf0] sm:$0xf] %v555_v59  ;;  %v557_v60 = vld [vmem:[%s11658_s9 + $0xf8] sm:$0xf] }
  0x6e   : > { %v559_v61 = vld [vmem:[%s11658_s9 + $0xbc] sm:$0xf]  ;;  %558 = vst [vmem:[#allocation2 + $0xf4] sm:$0xf] %v557_v60  ;;  %562 = vst [vmem:[#allocation2 + $0xfc] sm:$0xff] %v561_v62  }
  0x6f   : > { %560 = vst [vmem:[#allocation2 + $0xf8] sm:$0xf] %v559_v61  ;;  %v565_v63 = vld [vmem:[%s11658_s9 + $0x140] sm:$0xf]  ;;  %v567_v0 = vld [vmem:[%s11658_s9 + $0x104] sm:$0xf] }
  0x70   : > { %v569_v1 = vld [vmem:[%s11658_s9 + $0x144] sm:$0xf]  ;;  %566 = vst [vmem:[#allocation2 + $0x104] sm:$0xf] %v565_v63  ;;  %568 = vst [vmem:[#allocation2 + $0x108] sm:$0xf] %v567_v0 }
  0x71   : > { %570 = vst [vmem:[#allocation2 + $0x10c] sm:$0xf] %v569_v1  ;;  %v571_v2 = vld [vmem:[%s11658_s9 + $0x108] sm:$0xf]  ;;  %v575_v4 = vld [vmem:[%s11658_s9 + $0x10c] sm:$0xf] }
  0x72   : > { %v573_v3 = vld [vmem:[%s11658_s9 + $0x148] sm:$0xf]  ;;  %572 = vst [vmem:[#allocation2 + $0x110] sm:$0xf] %v571_v2  ;;  %576 = vst [vmem:[#allocation2 + $0x118] sm:$0xf] %v575_v4 }
  0x73   : > { %574 = vst [vmem:[#allocation2 + $0x114] sm:$0xf] %v573_v3  ;;  %v577_v5 = vld [vmem:[%s11658_s9 + $0x14c] sm:$0xf]  ;;  %v579_v6 = vld [vmem:[%s11658_s9 + $0x110] sm:$0xf] }
  0x74   : > { %v581_v7 = vld [vmem:[%s11658_s9 + $0x150] sm:$0xf]  ;;  %578 = vst [vmem:[#allocation2 + $0x11c] sm:$0xf] %v577_v5  ;;  %580 = vst [vmem:[#allocation2 + $0x120] sm:$0xf] %v579_v6 }
  0x75   : > { %582 = vst [vmem:[#allocation2 + $0x124] sm:$0xf] %v581_v7  ;;  %v583_v8 = vld [vmem:[%s11658_s9 + $0x114] sm:$0xf]  ;;  %v587_v10 = vld [vmem:[%s11658_s9 + $0x118] sm:$0xf] }
  0x76   : > { %v585_v9 = vld [vmem:[%s11658_s9 + $0x154] sm:$0xf]  ;;  %584 = vst [vmem:[#allocation2 + $0x128] sm:$0xf] %v583_v8  ;;  %588 = vst [vmem:[#allocation2 + $0x130] sm:$0xf] %v587_v10 }
  0x77   : > { %586 = vst [vmem:[#allocation2 + $0x12c] sm:$0xf] %v585_v9  ;;  %v589_v11 = vld [vmem:[%s11658_s9 + $0x158] sm:$0xf]  ;;  %v591_v12 = vld [vmem:[%s11658_s9 + $0x11c] sm:$0xf] }
  0x78   : > { %v593_v13 = vld [vmem:[%s11658_s9 + $0x15c] sm:$0xf]  ;;  %590 = vst [vmem:[#allocation2 + $0x134] sm:$0xf] %v589_v11  ;;  %592 = vst [vmem:[#allocation2 + $0x138] sm:$0xf] %v591_v12 }
  0x79   : > { %594 = vst [vmem:[#allocation2 + $0x13c] sm:$0xf] %v593_v13  ;;  %v595_v14 = vld [vmem:[%s11658_s9 + $0x120] sm:$0xf]  ;;  %v599_v16 = vld [vmem:[%s11658_s9 + $0x124] sm:$0xf] }
  0x7a   : > { %v597_v15 = vld [vmem:[%s11658_s9 + $0x160] sm:$0xf]  ;;  %596 = vst [vmem:[#allocation2 + $0x140] sm:$0xf] %v595_v14  ;;  %600 = vst [vmem:[#allocation2 + $0x148] sm:$0xf] %v599_v16 }
  0x7b   : > { %598 = vst [vmem:[#allocation2 + $0x144] sm:$0xf] %v597_v15  ;;  %v601_v17 = vld [vmem:[%s11658_s9 + $0x164] sm:$0xf]  ;;  %v603_v18 = vld [vmem:[%s11658_s9 + $0x128] sm:$0xf] }
  0x7c   : > { %v605_v19 = vld [vmem:[%s11658_s9 + $0x168] sm:$0xf]  ;;  %602 = vst [vmem:[#allocation2 + $0x14c] sm:$0xf] %v601_v17  ;;  %604 = vst [vmem:[#allocation2 + $0x150] sm:$0xf] %v603_v18 }
  0x7d   : > { %606 = vst [vmem:[#allocation2 + $0x154] sm:$0xf] %v605_v19  ;;  %v607_v20 = vld [vmem:[%s11658_s9 + $0x12c] sm:$0xf]  ;;  %v611_v22 = vld [vmem:[%s11658_s9 + $0x130] sm:$0xf] }
  0x7e   : > { %v609_v21 = vld [vmem:[%s11658_s9 + $0x16c] sm:$0xf]  ;;  %608 = vst [vmem:[#allocation2 + $0x158] sm:$0xf] %v607_v20  ;;  %612 = vst [vmem:[#allocation2 + $0x160] sm:$0xf] %v611_v22 }
  0x7f   : > { %610 = vst [vmem:[#allocation2 + $0x15c] sm:$0xf] %v609_v21  ;;  %v613_v23 = vld [vmem:[%s11658_s9 + $0x170] sm:$0xf]  ;;  %v615_v24 = vld [vmem:[%s11658_s9 + $0x134] sm:$0xf] }
  0x80   : > { %v617_v25 = vld [vmem:[%s11658_s9 + $0x174] sm:$0xf]  ;;  %614 = vst [vmem:[#allocation2 + $0x164] sm:$0xf] %v613_v23  ;;  %616 = vst [vmem:[#allocation2 + $0x168] sm:$0xf] %v615_v24 }
  0x81   : > { %618 = vst [vmem:[#allocation2 + $0x16c] sm:$0xf] %v617_v25  ;;  %v619_v26 = vld [vmem:[%s11658_s9 + $0x138] sm:$0xf]  ;;  %v623_v28 = vld [vmem:[%s11658_s9 + $0x13c] sm:$0xf] }
  0x82   : > { %v621_v27 = vld [vmem:[%s11658_s9 + $0x178] sm:$0xf]  ;;  %620 = vst [vmem:[#allocation2 + $0x170] sm:$0xf] %v619_v26  ;;  %624 = vst [vmem:[#allocation2 + $0x178] sm:$0xf] %v623_v28 }
  0x83   : > { %622 = vst [vmem:[#allocation2 + $0x174] sm:$0xf] %v621_v27  ;;  %v625_v29 = vld [vmem:[%s11658_s9 + $0x17c] sm:$0xff]   ;;  %v631_v31 = vld [vmem:[%s11658_s9 + $0x184] sm:$0xf] }
  0x84   : > { %v629_v30 = vld [vmem:[%s11658_s9 + $0x1c0] sm:$0xf]  ;;  %626 = vst [vmem:[#allocation2 + $0x17c] sm:$0xff] %v625_v29   ;;  %632 = vst [vmem:[#allocation2 + $0x188] sm:$0xf] %v631_v31 }
  0x85   : > { %630 = vst [vmem:[#allocation2 + $0x184] sm:$0xf] %v629_v30  ;;  %v633_v32 = vld [vmem:[%s11658_s9 + $0x1c4] sm:$0xf]  ;;  %v635_v33 = vld [vmem:[%s11658_s9 + $0x188] sm:$0xf] }
  0x86   : > { %v637_v34 = vld [vmem:[%s11658_s9 + $0x1c8] sm:$0xf]  ;;  %634 = vst [vmem:[#allocation2 + $0x18c] sm:$0xf] %v633_v32  ;;  %636 = vst [vmem:[#allocation2 + $0x190] sm:$0xf] %v635_v33 }
  0x87   : > { %638 = vst [vmem:[#allocation2 + $0x194] sm:$0xf] %v637_v34  ;;  %v639_v35 = vld [vmem:[%s11658_s9 + $0x18c] sm:$0xf]  ;;  %v643_v37 = vld [vmem:[%s11658_s9 + $0x190] sm:$0xf] }
  0x88   : > { %v641_v36 = vld [vmem:[%s11658_s9 + $0x1cc] sm:$0xf]  ;;  %640 = vst [vmem:[#allocation2 + $0x198] sm:$0xf] %v639_v35  ;;  %644 = vst [vmem:[#allocation2 + $0x1a0] sm:$0xf] %v643_v37 }
  0x89   : > { %642 = vst [vmem:[#allocation2 + $0x19c] sm:$0xf] %v641_v36  ;;  %v645_v38 = vld [vmem:[%s11658_s9 + $0x1d0] sm:$0xf]  ;;  %v647_v39 = vld [vmem:[%s11658_s9 + $0x194] sm:$0xf] }
  0x8a   : > { %v649_v40 = vld [vmem:[%s11658_s9 + $0x1d4] sm:$0xf]  ;;  %646 = vst [vmem:[#allocation2 + $0x1a4] sm:$0xf] %v645_v38  ;;  %648 = vst [vmem:[#allocation2 + $0x1a8] sm:$0xf] %v647_v39 }
  0x8b   : > { %650 = vst [vmem:[#allocation2 + $0x1ac] sm:$0xf] %v649_v40  ;;  %v651_v41 = vld [vmem:[%s11658_s9 + $0x198] sm:$0xf]  ;;  %v655_v43 = vld [vmem:[%s11658_s9 + $0x19c] sm:$0xf] }
  0x8c   : > { %v653_v42 = vld [vmem:[%s11658_s9 + $0x1d8] sm:$0xf]  ;;  %652 = vst [vmem:[#allocation2 + $0x1b0] sm:$0xf] %v651_v41  ;;  %656 = vst [vmem:[#allocation2 + $0x1b8] sm:$0xf] %v655_v43 }
  0x8d   : > { %654 = vst [vmem:[#allocation2 + $0x1b4] sm:$0xf] %v653_v42  ;;  %v657_v44 = vld [vmem:[%s11658_s9 + $0x1dc] sm:$0xf]  ;;  %v659_v45 = vld [vmem:[%s11658_s9 + $0x1a0] sm:$0xf] }
  0x8e   : > { %v661_v46 = vld [vmem:[%s11658_s9 + $0x1e0] sm:$0xf]  ;;  %658 = vst [vmem:[#allocation2 + $0x1bc] sm:$0xf] %v657_v44  ;;  %660 = vst [vmem:[#allocation2 + $0x1c0] sm:$0xf] %v659_v45 }
  0x8f   : > { %662 = vst [vmem:[#allocation2 + $0x1c4] sm:$0xf] %v661_v46  ;;  %v663_v47 = vld [vmem:[%s11658_s9 + $0x1a4] sm:$0xf]  ;;  %v667_v49 = vld [vmem:[%s11658_s9 + $0x1a8] sm:$0xf] }
  0x90   : > { %v665_v48 = vld [vmem:[%s11658_s9 + $0x1e4] sm:$0xf]  ;;  %664 = vst [vmem:[#allocation2 + $0x1c8] sm:$0xf] %v663_v47  ;;  %668 = vst [vmem:[#allocation2 + $0x1d0] sm:$0xf] %v667_v49 }
  0x91   : > { %666 = vst [vmem:[#allocation2 + $0x1cc] sm:$0xf] %v665_v48  ;;  %v669_v50 = vld [vmem:[%s11658_s9 + $0x1e8] sm:$0xf]  ;;  %v671_v51 = vld [vmem:[%s11658_s9 + $0x1ac] sm:$0xf] }
  0x92   : > { %v673_v52 = vld [vmem:[%s11658_s9 + $0x1ec] sm:$0xf]  ;;  %670 = vst [vmem:[#allocation2 + $0x1d4] sm:$0xf] %v669_v50  ;;  %672 = vst [vmem:[#allocation2 + $0x1d8] sm:$0xf] %v671_v51 }
  0x93   : > { %674 = vst [vmem:[#allocation2 + $0x1dc] sm:$0xf] %v673_v52  ;;  %v675_v53 = vld [vmem:[%s11658_s9 + $0x1b0] sm:$0xf]  ;;  %v679_v55 = vld [vmem:[%s11658_s9 + $0x1b4] sm:$0xf] }
  0x94   : > { %v677_v54 = vld [vmem:[%s11658_s9 + $0x1f0] sm:$0xf]  ;;  %676 = vst [vmem:[#allocation2 + $0x1e0] sm:$0xf] %v675_v53  ;;  %680 = vst [vmem:[#allocation2 + $0x1e8] sm:$0xf] %v679_v55 }
  0x95   : > { %678 = vst [vmem:[#allocation2 + $0x1e4] sm:$0xf] %v677_v54  ;;  %v681_v56 = vld [vmem:[%s11658_s9 + $0x1f4] sm:$0xf]  ;;  %v683_v57 = vld [vmem:[%s11658_s9 + $0x1b8] sm:$0xf] }
  0x96   : > { %v685_v58 = vld [vmem:[%s11658_s9 + $0x1f8] sm:$0xf]  ;;  %682 = vst [vmem:[#allocation2 + $0x1ec] sm:$0xf] %v681_v56  ;;  %684 = vst [vmem:[#allocation2 + $0x1f0] sm:$0xf] %v683_v57 }
  0x97   : > { %686 = vst [vmem:[#allocation2 + $0x1f4] sm:$0xf] %v685_v58  ;;  %v687_v59 = vld [vmem:[%s11658_s9 + $0x1bc] sm:$0xf]  ;;  %v693_v61 = vld [vmem:[%s11658_s9 + $0x240] sm:$0xf] }
  0x98   : > { %v689_v60 = vld [vmem:[%s11658_s9 + $0x1fc] sm:$0xff]   ;;  %688 = vst [vmem:[#allocation2 + $0x1f8] sm:$0xf] %v687_v59  ;;  %694 = vst [vmem:[#allocation2 + $0x204] sm:$0xf] %v693_v61 }
  0x99   : > { %690 = vst [vmem:[#allocation2 + $0x1fc] sm:$0xff] %v689_v60   ;;  %v695_v62 = vld [vmem:[%s11658_s9 + $0x204] sm:$0xf]  ;;  %v699_v0 = vld [vmem:[%s11658_s9 + $0x208] sm:$0xf]  ;;  %v753_v27 = vld [vmem:[%s11658_s9 + $0x27c] sm:$0xff]  }
  0x9a   : > { %v697_v63 = vld [vmem:[%s11658_s9 + $0x244] sm:$0xf]  ;;  %696 = vst [vmem:[#allocation2 + $0x208] sm:$0xf] %v695_v62  ;;  %700 = vst [vmem:[#allocation2 + $0x210] sm:$0xf] %v699_v0 }
  0x9b   : > { %698 = vst [vmem:[#allocation2 + $0x20c] sm:$0xf] %v697_v63  ;;  %v701_v1 = vld [vmem:[%s11658_s9 + $0x248] sm:$0xf]  ;;  %v703_v2 = vld [vmem:[%s11658_s9 + $0x20c] sm:$0xf] }
  0x9c   : > { %v705_v3 = vld [vmem:[%s11658_s9 + $0x24c] sm:$0xf]  ;;  %702 = vst [vmem:[#allocation2 + $0x214] sm:$0xf] %v701_v1  ;;  %704 = vst [vmem:[#allocation2 + $0x218] sm:$0xf] %v703_v2 }
  0x9d   : > { %706 = vst [vmem:[#allocation2 + $0x21c] sm:$0xf] %v705_v3  ;;  %v707_v4 = vld [vmem:[%s11658_s9 + $0x210] sm:$0xf]  ;;  %v711_v6 = vld [vmem:[%s11658_s9 + $0x214] sm:$0xf] }
  0x9e   : > { %v709_v5 = vld [vmem:[%s11658_s9 + $0x250] sm:$0xf]  ;;  %708 = vst [vmem:[#allocation2 + $0x220] sm:$0xf] %v707_v4  ;;  %712 = vst [vmem:[#allocation2 + $0x228] sm:$0xf] %v711_v6 }
  0x9f   : > { %710 = vst [vmem:[#allocation2 + $0x224] sm:$0xf] %v709_v5  ;;  %v713_v7 = vld [vmem:[%s11658_s9 + $0x254] sm:$0xf]  ;;  %v715_v8 = vld [vmem:[%s11658_s9 + $0x218] sm:$0xf] }
  0xa0   : > { %v717_v9 = vld [vmem:[%s11658_s9 + $0x258] sm:$0xf]  ;;  %714 = vst [vmem:[#allocation2 + $0x22c] sm:$0xf] %v713_v7  ;;  %716 = vst [vmem:[#allocation2 + $0x230] sm:$0xf] %v715_v8 }
  0xa1   : > { %718 = vst [vmem:[#allocation2 + $0x234] sm:$0xf] %v717_v9  ;;  %v719_v10 = vld [vmem:[%s11658_s9 + $0x21c] sm:$0xf]  ;;  %v723_v12 = vld [vmem:[%s11658_s9 + $0x220] sm:$0xf] }
  0xa2   : > { %v721_v11 = vld [vmem:[%s11658_s9 + $0x25c] sm:$0xf]  ;;  %720 = vst [vmem:[#allocation2 + $0x238] sm:$0xf] %v719_v10  ;;  %724 = vst [vmem:[#allocation2 + $0x240] sm:$0xf] %v723_v12 }
  0xa3   : > { %722 = vst [vmem:[#allocation2 + $0x23c] sm:$0xf] %v721_v11  ;;  %v725_v13 = vld [vmem:[%s11658_s9 + $0x260] sm:$0xf]  ;;  %v727_v14 = vld [vmem:[%s11658_s9 + $0x224] sm:$0xf] }
  0xa4   : > { %v729_v15 = vld [vmem:[%s11658_s9 + $0x264] sm:$0xf]  ;;  %726 = vst [vmem:[#allocation2 + $0x244] sm:$0xf] %v725_v13  ;;  %728 = vst [vmem:[#allocation2 + $0x248] sm:$0xf] %v727_v14 }
  0xa5   : > { %730 = vst [vmem:[#allocation2 + $0x24c] sm:$0xf] %v729_v15  ;;  %v731_v16 = vld [vmem:[%s11658_s9 + $0x228] sm:$0xf]  ;;  %v735_v18 = vld [vmem:[%s11658_s9 + $0x22c] sm:$0xf] }
  0xa6   : > { %v733_v17 = vld [vmem:[%s11658_s9 + $0x268] sm:$0xf]  ;;  %732 = vst [vmem:[#allocation2 + $0x250] sm:$0xf] %v731_v16  ;;  %736 = vst [vmem:[#allocation2 + $0x258] sm:$0xf] %v735_v18 }
  0xa7   : > { %734 = vst [vmem:[#allocation2 + $0x254] sm:$0xf] %v733_v17  ;;  %v737_v19 = vld [vmem:[%s11658_s9 + $0x26c] sm:$0xf]  ;;  %v739_v20 = vld [vmem:[%s11658_s9 + $0x230] sm:$0xf] }
  0xa8   : > { %v741_v21 = vld [vmem:[%s11658_s9 + $0x270] sm:$0xf]  ;;  %738 = vst [vmem:[#allocation2 + $0x25c] sm:$0xf] %v737_v19  ;;  %740 = vst [vmem:[#allocation2 + $0x260] sm:$0xf] %v739_v20 }
  0xa9   : > { %742 = vst [vmem:[#allocation2 + $0x264] sm:$0xf] %v741_v21  ;;  %v743_v22 = vld [vmem:[%s11658_s9 + $0x234] sm:$0xf]  ;;  %v747_v24 = vld [vmem:[%s11658_s9 + $0x238] sm:$0xf] }
  0xaa   : > { %v745_v23 = vld [vmem:[%s11658_s9 + $0x274] sm:$0xf]  ;;  %744 = vst [vmem:[#allocation2 + $0x268] sm:$0xf] %v743_v22  ;;  %748 = vst [vmem:[#allocation2 + $0x270] sm:$0xf] %v747_v24 }
  0xab   : > { %746 = vst [vmem:[#allocation2 + $0x26c] sm:$0xf] %v745_v23  ;;  %v749_v25 = vld [vmem:[%s11658_s9 + $0x278] sm:$0xf]  ;;  %v751_v26 = vld [vmem:[%s11658_s9 + $0x23c] sm:$0xf] }
  0xac   : > { %750 = vst [vmem:[#allocation2 + $0x274] sm:$0xf] %v749_v25  ;;  %752 = vst [vmem:[#allocation2 + $0x278] sm:$0xf] %v751_v26  ;;  %v757_v28 = vld [vmem:[%s11658_s9 + $0x2c0] sm:$0xf] }
  0xad   : > { %754 = vst [vmem:[#allocation2 + $0x27c] sm:$0xff] %v753_v27   ;;  %v759_v29 = vld [vmem:[%s11658_s9 + $0x284] sm:$0xf]  ;;  %758 = vst [vmem:[#allocation2 + $0x284] sm:$0xf] %v757_v28  ;;  %v817_v58 = vld [vmem:[%s11658_s9 + $0x2fc] sm:$0xff]  }
  0xae   : > { %v761_v30 = vld [vmem:[%s11658_s9 + $0x2c4] sm:$0xf]  ;;  %760 = vst [vmem:[#allocation2 + $0x288] sm:$0xf] %v759_v29  ;;  %v763_v31 = vld [vmem:[%s11658_s9 + $0x288] sm:$0xf] }
  0xaf   : > { %762 = vst [vmem:[#allocation2 + $0x28c] sm:$0xf] %v761_v30  ;;  %v765_v32 = vld [vmem:[%s11658_s9 + $0x2c8] sm:$0xf]  ;;  %v767_v33 = vld [vmem:[%s11658_s9 + $0x28c] sm:$0xf] }
  0xb0   : > { %764 = vst [vmem:[#allocation2 + $0x290] sm:$0xf] %v763_v31  ;;  %766 = vst [vmem:[#allocation2 + $0x294] sm:$0xf] %v765_v32  ;;  %v769_v34 = vld [vmem:[%s11658_s9 + $0x2cc] sm:$0xf] }
  0xb1   : > { %768 = vst [vmem:[#allocation2 + $0x298] sm:$0xf] %v767_v33  ;;  %v771_v35 = vld [vmem:[%s11658_s9 + $0x290] sm:$0xf]  ;;  %770 = vst [vmem:[#allocation2 + $0x29c] sm:$0xf] %v769_v34 }
  0xb2   : > { %v773_v36 = vld [vmem:[%s11658_s9 + $0x2d0] sm:$0xf]  ;;  %772 = vst [vmem:[#allocation2 + $0x2a0] sm:$0xf] %v771_v35  ;;  %v775_v37 = vld [vmem:[%s11658_s9 + $0x294] sm:$0xf] }
  0xb3   : > { %774 = vst [vmem:[#allocation2 + $0x2a4] sm:$0xf] %v773_v36  ;;  %v777_v38 = vld [vmem:[%s11658_s9 + $0x2d4] sm:$0xf]  ;;  %v779_v39 = vld [vmem:[%s11658_s9 + $0x298] sm:$0xf] }
  0xb4   : > { %776 = vst [vmem:[#allocation2 + $0x2a8] sm:$0xf] %v775_v37  ;;  %778 = vst [vmem:[#allocation2 + $0x2ac] sm:$0xf] %v777_v38  ;;  %v781_v40 = vld [vmem:[%s11658_s9 + $0x2d8] sm:$0xf] }
  0xb5   : > { %780 = vst [vmem:[#allocation2 + $0x2b0] sm:$0xf] %v779_v39  ;;  %v783_v41 = vld [vmem:[%s11658_s9 + $0x29c] sm:$0xf]  ;;  %782 = vst [vmem:[#allocation2 + $0x2b4] sm:$0xf] %v781_v40 }
  0xb6   : > { %v785_v42 = vld [vmem:[%s11658_s9 + $0x2dc] sm:$0xf]  ;;  %784 = vst [vmem:[#allocation2 + $0x2b8] sm:$0xf] %v783_v41  ;;  %v787_v43 = vld [vmem:[%s11658_s9 + $0x2a0] sm:$0xf] }
  0xb7   : > { %786 = vst [vmem:[#allocation2 + $0x2bc] sm:$0xf] %v785_v42  ;;  %v789_v44 = vld [vmem:[%s11658_s9 + $0x2e0] sm:$0xf]  ;;  %v791_v45 = vld [vmem:[%s11658_s9 + $0x2a4] sm:$0xf] }
  0xb8   : > { %788 = vst [vmem:[#allocation2 + $0x2c0] sm:$0xf] %v787_v43  ;;  %790 = vst [vmem:[#allocation2 + $0x2c4] sm:$0xf] %v789_v44  ;;  %v793_v46 = vld [vmem:[%s11658_s9 + $0x2e4] sm:$0xf] }
  0xb9   : > { %792 = vst [vmem:[#allocation2 + $0x2c8] sm:$0xf] %v791_v45  ;;  %v795_v47 = vld [vmem:[%s11658_s9 + $0x2a8] sm:$0xf]  ;;  %794 = vst [vmem:[#allocation2 + $0x2cc] sm:$0xf] %v793_v46 }
  0xba   : > { %v797_v48 = vld [vmem:[%s11658_s9 + $0x2e8] sm:$0xf]  ;;  %796 = vst [vmem:[#allocation2 + $0x2d0] sm:$0xf] %v795_v47  ;;  %v799_v49 = vld [vmem:[%s11658_s9 + $0x2ac] sm:$0xf] }
  0xbb   : > { %798 = vst [vmem:[#allocation2 + $0x2d4] sm:$0xf] %v797_v48  ;;  %v801_v50 = vld [vmem:[%s11658_s9 + $0x2ec] sm:$0xf]  ;;  %v803_v51 = vld [vmem:[%s11658_s9 + $0x2b0] sm:$0xf] }
  0xbc   : > { %800 = vst [vmem:[#allocation2 + $0x2d8] sm:$0xf] %v799_v49  ;;  %802 = vst [vmem:[#allocation2 + $0x2dc] sm:$0xf] %v801_v50  ;;  %v805_v52 = vld [vmem:[%s11658_s9 + $0x2f0] sm:$0xf] }
  0xbd   : > { %804 = vst [vmem:[#allocation2 + $0x2e0] sm:$0xf] %v803_v51  ;;  %v807_v53 = vld [vmem:[%s11658_s9 + $0x2b4] sm:$0xf]  ;;  %806 = vst [vmem:[#allocation2 + $0x2e4] sm:$0xf] %v805_v52 }
  0xbe   : > { %v809_v54 = vld [vmem:[%s11658_s9 + $0x2f4] sm:$0xf]  ;;  %808 = vst [vmem:[#allocation2 + $0x2e8] sm:$0xf] %v807_v53  ;;  %v811_v55 = vld [vmem:[%s11658_s9 + $0x2b8] sm:$0xf] }
  0xbf   : > { %810 = vst [vmem:[#allocation2 + $0x2ec] sm:$0xf] %v809_v54  ;;  %v813_v56 = vld [vmem:[%s11658_s9 + $0x2f8] sm:$0xf]  ;;  %v815_v57 = vld [vmem:[%s11658_s9 + $0x2bc] sm:$0xf] }
  0xc0   : > { %812 = vst [vmem:[#allocation2 + $0x2f0] sm:$0xf] %v811_v55  ;;  %814 = vst [vmem:[#allocation2 + $0x2f4] sm:$0xf] %v813_v56  ;;  %v821_v59 = vld [vmem:[%s11658_s9 + $0x340] sm:$0xf] }
  0xc1   : > { %816 = vst [vmem:[#allocation2 + $0x2f8] sm:$0xf] %v815_v57  ;;  %v823_v60 = vld [vmem:[%s11658_s9 + $0x304] sm:$0xf]  ;;  %818 = vst [vmem:[#allocation2 + $0x2fc] sm:$0xff] %v817_v58   ;;  %v881_v25 = vld [vmem:[%s11658_s9 + $0x37c] sm:$0xff]  }
  0xc2   : > { %822 = vst [vmem:[#allocation2 + $0x304] sm:$0xf] %v821_v59  ;;  %824 = vst [vmem:[#allocation2 + $0x308] sm:$0xf] %v823_v60  ;;  %v825_v61 = vld [vmem:[%s11658_s9 + $0x344] sm:$0xf] }
  0xc3   : > { %v827_v62 = vld [vmem:[%s11658_s9 + $0x308] sm:$0xf]  ;;  %826 = vst [vmem:[#allocation2 + $0x30c] sm:$0xf] %v825_v61  ;;  %v831_v0 = vld [vmem:[%s11658_s9 + $0x30c] sm:$0xf] }
  0xc4   : > { %v829_v63 = vld [vmem:[%s11658_s9 + $0x348] sm:$0xf]  ;;  %828 = vst [vmem:[#allocation2 + $0x310] sm:$0xf] %v827_v62  ;;  %v833_v1 = vld [vmem:[%s11658_s9 + $0x34c] sm:$0xf] }
  0xc5   : > { %830 = vst [vmem:[#allocation2 + $0x314] sm:$0xf] %v829_v63  ;;  %v835_v2 = vld [vmem:[%s11658_s9 + $0x310] sm:$0xf]  ;;  %832 = vst [vmem:[#allocation2 + $0x318] sm:$0xf] %v831_v0 }
  0xc6   : > { %834 = vst [vmem:[#allocation2 + $0x31c] sm:$0xf] %v833_v1  ;;  %836 = vst [vmem:[#allocation2 + $0x320] sm:$0xf] %v835_v2  ;;  %v837_v3 = vld [vmem:[%s11658_s9 + $0x350] sm:$0xf] }
  0xc7   : > { %v839_v4 = vld [vmem:[%s11658_s9 + $0x314] sm:$0xf]  ;;  %838 = vst [vmem:[#allocation2 + $0x324] sm:$0xf] %v837_v3  ;;  %v843_v6 = vld [vmem:[%s11658_s9 + $0x318] sm:$0xf] }
  0xc8   : > { %v841_v5 = vld [vmem:[%s11658_s9 + $0x354] sm:$0xf]  ;;  %840 = vst [vmem:[#allocation2 + $0x328] sm:$0xf] %v839_v4  ;;  %v845_v7 = vld [vmem:[%s11658_s9 + $0x358] sm:$0xf] }
  0xc9   : > { %842 = vst [vmem:[#allocation2 + $0x32c] sm:$0xf] %v841_v5  ;;  %v847_v8 = vld [vmem:[%s11658_s9 + $0x31c] sm:$0xf]  ;;  %844 = vst [vmem:[#allocation2 + $0x330] sm:$0xf] %v843_v6 }
  0xca   : > { %846 = vst [vmem:[#allocation2 + $0x334] sm:$0xf] %v845_v7  ;;  %848 = vst [vmem:[#allocation2 + $0x338] sm:$0xf] %v847_v8  ;;  %v849_v9 = vld [vmem:[%s11658_s9 + $0x35c] sm:$0xf] }
  0xcb   : > { %v851_v10 = vld [vmem:[%s11658_s9 + $0x320] sm:$0xf]  ;;  %850 = vst [vmem:[#allocation2 + $0x33c] sm:$0xf] %v849_v9  ;;  %v855_v12 = vld [vmem:[%s11658_s9 + $0x324] sm:$0xf] }
  0xcc   : > { %v853_v11 = vld [vmem:[%s11658_s9 + $0x360] sm:$0xf]  ;;  %852 = vst [vmem:[#allocation2 + $0x340] sm:$0xf] %v851_v10  ;;  %v857_v13 = vld [vmem:[%s11658_s9 + $0x364] sm:$0xf] }
  0xcd   : > { %854 = vst [vmem:[#allocation2 + $0x344] sm:$0xf] %v853_v11  ;;  %v859_v14 = vld [vmem:[%s11658_s9 + $0x328] sm:$0xf]  ;;  %856 = vst [vmem:[#allocation2 + $0x348] sm:$0xf] %v855_v12 }
  0xce   : > { %858 = vst [vmem:[#allocation2 + $0x34c] sm:$0xf] %v857_v13  ;;  %860 = vst [vmem:[#allocation2 + $0x350] sm:$0xf] %v859_v14  ;;  %v861_v15 = vld [vmem:[%s11658_s9 + $0x368] sm:$0xf] }
  0xcf   : > { %v863_v16 = vld [vmem:[%s11658_s9 + $0x32c] sm:$0xf]  ;;  %862 = vst [vmem:[#allocation2 + $0x354] sm:$0xf] %v861_v15  ;;  %v867_v18 = vld [vmem:[%s11658_s9 + $0x330] sm:$0xf] }
  0xd0   : > { %v865_v17 = vld [vmem:[%s11658_s9 + $0x36c] sm:$0xf]  ;;  %864 = vst [vmem:[#allocation2 + $0x358] sm:$0xf] %v863_v16  ;;  %v869_v19 = vld [vmem:[%s11658_s9 + $0x370] sm:$0xf] }
  0xd1   : > { %866 = vst [vmem:[#allocation2 + $0x35c] sm:$0xf] %v865_v17  ;;  %v871_v20 = vld [vmem:[%s11658_s9 + $0x334] sm:$0xf]  ;;  %868 = vst [vmem:[#allocation2 + $0x360] sm:$0xf] %v867_v18 }
  0xd2   : > { %870 = vst [vmem:[#allocation2 + $0x364] sm:$0xf] %v869_v19  ;;  %872 = vst [vmem:[#allocation2 + $0x368] sm:$0xf] %v871_v20  ;;  %v873_v21 = vld [vmem:[%s11658_s9 + $0x374] sm:$0xf] }
  0xd3   : > { %v875_v22 = vld [vmem:[%s11658_s9 + $0x338] sm:$0xf]  ;;  %874 = vst [vmem:[#allocation2 + $0x36c] sm:$0xf] %v873_v21  ;;  %v879_v24 = vld [vmem:[%s11658_s9 + $0x33c] sm:$0xf] }
  0xd4   : > { %v877_v23 = vld [vmem:[%s11658_s9 + $0x378] sm:$0xf]  ;;  %876 = vst [vmem:[#allocation2 + $0x370] sm:$0xf] %v875_v22  ;;  %v885_v26 = vld [vmem:[%s11658_s9 + $0x3c0] sm:$0xf] }
  0xd5   : > { %878 = vst [vmem:[#allocation2 + $0x374] sm:$0xf] %v877_v23  ;;  %880 = vst [vmem:[#allocation2 + $0x378] sm:$0xf] %v879_v24  ;;  %v887_v27 = vld [vmem:[%s11658_s9 + $0x384] sm:$0xf] }
  0xd6   : > { %882 = vst [vmem:[#allocation2 + $0x37c] sm:$0xff] %v881_v25   ;;  %886 = vst [vmem:[#allocation2 + $0x384] sm:$0xf] %v885_v26  ;;  %v889_v28 = vld [vmem:[%s11658_s9 + $0x3c4] sm:$0xf]  ;;  %v945_v56 = vld [vmem:[%s11658_s9 + $0x3fc] sm:$0xff]  }
  0xd7   : > { %v891_v29 = vld [vmem:[%s11658_s9 + $0x388] sm:$0xf]  ;;  %888 = vst [vmem:[#allocation2 + $0x388] sm:$0xf] %v887_v27  ;;  %890 = vst [vmem:[#allocation2 + $0x38c] sm:$0xf] %v889_v28 }
  0xd8   : > { %892 = vst [vmem:[#allocation2 + $0x390] sm:$0xf] %v891_v29  ;;  %v893_v30 = vld [vmem:[%s11658_s9 + $0x3c8] sm:$0xf]  ;;  %v895_v31 = vld [vmem:[%s11658_s9 + $0x38c] sm:$0xf] }
  0xd9   : > { %v897_v32 = vld [vmem:[%s11658_s9 + $0x3cc] sm:$0xf]  ;;  %894 = vst [vmem:[#allocation2 + $0x394] sm:$0xf] %v893_v30  ;;  %896 = vst [vmem:[#allocation2 + $0x398] sm:$0xf] %v895_v31 }
  0xda   : > { %898 = vst [vmem:[#allocation2 + $0x39c] sm:$0xf] %v897_v32  ;;  %v899_v33 = vld [vmem:[%s11658_s9 + $0x390] sm:$0xf]  ;;  %v903_v35 = vld [vmem:[%s11658_s9 + $0x394] sm:$0xf] }
  0xdb   : > { %v901_v34 = vld [vmem:[%s11658_s9 + $0x3d0] sm:$0xf]  ;;  %900 = vst [vmem:[#allocation2 + $0x3a0] sm:$0xf] %v899_v33  ;;  %904 = vst [vmem:[#allocation2 + $0x3a8] sm:$0xf] %v903_v35 }
  0xdc   : > { %902 = vst [vmem:[#allocation2 + $0x3a4] sm:$0xf] %v901_v34  ;;  %v905_v36 = vld [vmem:[%s11658_s9 + $0x3d4] sm:$0xf]  ;;  %v907_v37 = vld [vmem:[%s11658_s9 + $0x398] sm:$0xf] }
  0xdd   : > { %v909_v38 = vld [vmem:[%s11658_s9 + $0x3d8] sm:$0xf]  ;;  %906 = vst [vmem:[#allocation2 + $0x3ac] sm:$0xf] %v905_v36  ;;  %908 = vst [vmem:[#allocation2 + $0x3b0] sm:$0xf] %v907_v37 }
  0xde   : > { %910 = vst [vmem:[#allocation2 + $0x3b4] sm:$0xf] %v909_v38  ;;  %v911_v39 = vld [vmem:[%s11658_s9 + $0x39c] sm:$0xf]  ;;  %v915_v41 = vld [vmem:[%s11658_s9 + $0x3a0] sm:$0xf] }
  0xdf   : > { %v913_v40 = vld [vmem:[%s11658_s9 + $0x3dc] sm:$0xf]  ;;  %912 = vst [vmem:[#allocation2 + $0x3b8] sm:$0xf] %v911_v39  ;;  %916 = vst [vmem:[#allocation2 + $0x3c0] sm:$0xf] %v915_v41 }
  0xe0   : > { %914 = vst [vmem:[#allocation2 + $0x3bc] sm:$0xf] %v913_v40  ;;  %v917_v42 = vld [vmem:[%s11658_s9 + $0x3e0] sm:$0xf]  ;;  %v919_v43 = vld [vmem:[%s11658_s9 + $0x3a4] sm:$0xf] }
  0xe1   : > { %v921_v44 = vld [vmem:[%s11658_s9 + $0x3e4] sm:$0xf]  ;;  %918 = vst [vmem:[#allocation2 + $0x3c4] sm:$0xf] %v917_v42  ;;  %920 = vst [vmem:[#allocation2 + $0x3c8] sm:$0xf] %v919_v43 }
  0xe2   : > { %922 = vst [vmem:[#allocation2 + $0x3cc] sm:$0xf] %v921_v44  ;;  %v923_v45 = vld [vmem:[%s11658_s9 + $0x3a8] sm:$0xf]  ;;  %v927_v47 = vld [vmem:[%s11658_s9 + $0x3ac] sm:$0xf] }
  0xe3   : > { %v925_v46 = vld [vmem:[%s11658_s9 + $0x3e8] sm:$0xf]  ;;  %924 = vst [vmem:[#allocation2 + $0x3d0] sm:$0xf] %v923_v45  ;;  %928 = vst [vmem:[#allocation2 + $0x3d8] sm:$0xf] %v927_v47 }
  0xe4   : > { %926 = vst [vmem:[#allocation2 + $0x3d4] sm:$0xf] %v925_v46  ;;  %v929_v48 = vld [vmem:[%s11658_s9 + $0x3ec] sm:$0xf]  ;;  %v931_v49 = vld [vmem:[%s11658_s9 + $0x3b0] sm:$0xf] }
  0xe5   : > { %v933_v50 = vld [vmem:[%s11658_s9 + $0x3f0] sm:$0xf]  ;;  %930 = vst [vmem:[#allocation2 + $0x3dc] sm:$0xf] %v929_v48  ;;  %932 = vst [vmem:[#allocation2 + $0x3e0] sm:$0xf] %v931_v49 }
  0xe6   : > { %934 = vst [vmem:[#allocation2 + $0x3e4] sm:$0xf] %v933_v50  ;;  %v935_v51 = vld [vmem:[%s11658_s9 + $0x3b4] sm:$0xf]  ;;  %v939_v53 = vld [vmem:[%s11658_s9 + $0x3b8] sm:$0xf] }
  0xe7   : > { %v937_v52 = vld [vmem:[%s11658_s9 + $0x3f4] sm:$0xf]  ;;  %936 = vst [vmem:[#allocation2 + $0x3e8] sm:$0xf] %v935_v51  ;;  %940 = vst [vmem:[#allocation2 + $0x3f0] sm:$0xf] %v939_v53 }
  0xe8   : > { %938 = vst [vmem:[#allocation2 + $0x3ec] sm:$0xf] %v937_v52  ;;  %v941_v54 = vld [vmem:[%s11658_s9 + $0x3f8] sm:$0xf]  ;;  %v943_v55 = vld [vmem:[%s11658_s9 + $0x3bc] sm:$0xf] }
  0xe9   : > { %942 = vst [vmem:[#allocation2 + $0x3f4] sm:$0xf] %v941_v54  ;;  %944 = vst [vmem:[#allocation2 + $0x3f8] sm:$0xf] %v943_v55  ;;  %v949_v57 = vld [vmem:[%s11658_s9 + $0x440] sm:$0xf] }
  0xea   : > { %946 = vst [vmem:[#allocation2 + $0x3fc] sm:$0xff] %v945_v56   ;;  %v951_v58 = vld [vmem:[%s11658_s9 + $0x404] sm:$0xf]  ;;  %950 = vst [vmem:[#allocation2 + $0x404] sm:$0xf] %v949_v57  ;;  %v1009_v23 = vld [vmem:[%s11658_s9 + $0x47c] sm:$0xff]  }
  0xeb   : > { %v953_v59 = vld [vmem:[%s11658_s9 + $0x444] sm:$0xf]  ;;  %952 = vst [vmem:[#allocation2 + $0x408] sm:$0xf] %v951_v58  ;;  %v955_v60 = vld [vmem:[%s11658_s9 + $0x408] sm:$0xf] }
  0xec   : > { %954 = vst [vmem:[#allocation2 + $0x40c] sm:$0xf] %v953_v59  ;;  %v957_v61 = vld [vmem:[%s11658_s9 + $0x448] sm:$0xf]  ;;  %v959_v62 = vld [vmem:[%s11658_s9 + $0x40c] sm:$0xf] }
  0xed   : > { %956 = vst [vmem:[#allocation2 + $0x410] sm:$0xf] %v955_v60  ;;  %958 = vst [vmem:[#allocation2 + $0x414] sm:$0xf] %v957_v61  ;;  %v961_v63 = vld [vmem:[%s11658_s9 + $0x44c] sm:$0xf] }
  0xee   : > { %960 = vst [vmem:[#allocation2 + $0x418] sm:$0xf] %v959_v62  ;;  %v963_v0 = vld [vmem:[%s11658_s9 + $0x410] sm:$0xf]  ;;  %962 = vst [vmem:[#allocation2 + $0x41c] sm:$0xf] %v961_v63 }
  0xef   : > { %v965_v1 = vld [vmem:[%s11658_s9 + $0x450] sm:$0xf]  ;;  %964 = vst [vmem:[#allocation2 + $0x420] sm:$0xf] %v963_v0  ;;  %v967_v2 = vld [vmem:[%s11658_s9 + $0x414] sm:$0xf] }
  0xf0   : > { %966 = vst [vmem:[#allocation2 + $0x424] sm:$0xf] %v965_v1  ;;  %v969_v3 = vld [vmem:[%s11658_s9 + $0x454] sm:$0xf]  ;;  %v971_v4 = vld [vmem:[%s11658_s9 + $0x418] sm:$0xf] }
  0xf1   : > { %968 = vst [vmem:[#allocation2 + $0x428] sm:$0xf] %v967_v2  ;;  %970 = vst [vmem:[#allocation2 + $0x42c] sm:$0xf] %v969_v3  ;;  %v973_v5 = vld [vmem:[%s11658_s9 + $0x458] sm:$0xf] }
  0xf2   : > { %972 = vst [vmem:[#allocation2 + $0x430] sm:$0xf] %v971_v4  ;;  %v975_v6 = vld [vmem:[%s11658_s9 + $0x41c] sm:$0xf]  ;;  %974 = vst [vmem:[#allocation2 + $0x434] sm:$0xf] %v973_v5 }
  0xf3   : > { %v977_v7 = vld [vmem:[%s11658_s9 + $0x45c] sm:$0xf]  ;;  %976 = vst [vmem:[#allocation2 + $0x438] sm:$0xf] %v975_v6  ;;  %v979_v8 = vld [vmem:[%s11658_s9 + $0x420] sm:$0xf] }
  0xf4   : > { %978 = vst [vmem:[#allocation2 + $0x43c] sm:$0xf] %v977_v7  ;;  %v981_v9 = vld [vmem:[%s11658_s9 + $0x460] sm:$0xf]  ;;  %v983_v10 = vld [vmem:[%s11658_s9 + $0x424] sm:$0xf] }
  0xf5   : > { %980 = vst [vmem:[#allocation2 + $0x440] sm:$0xf] %v979_v8  ;;  %982 = vst [vmem:[#allocation2 + $0x444] sm:$0xf] %v981_v9  ;;  %v985_v11 = vld [vmem:[%s11658_s9 + $0x464] sm:$0xf] }
  0xf6   : > { %984 = vst [vmem:[#allocation2 + $0x448] sm:$0xf] %v983_v10  ;;  %v987_v12 = vld [vmem:[%s11658_s9 + $0x428] sm:$0xf]  ;;  %986 = vst [vmem:[#allocation2 + $0x44c] sm:$0xf] %v985_v11 }
  0xf7   : > { %v989_v13 = vld [vmem:[%s11658_s9 + $0x468] sm:$0xf]  ;;  %988 = vst [vmem:[#allocation2 + $0x450] sm:$0xf] %v987_v12  ;;  %v991_v14 = vld [vmem:[%s11658_s9 + $0x42c] sm:$0xf] }
  0xf8   : > { %990 = vst [vmem:[#allocation2 + $0x454] sm:$0xf] %v989_v13  ;;  %v993_v15 = vld [vmem:[%s11658_s9 + $0x46c] sm:$0xf]  ;;  %v995_v16 = vld [vmem:[%s11658_s9 + $0x430] sm:$0xf] }
  0xf9   : > { %992 = vst [vmem:[#allocation2 + $0x458] sm:$0xf] %v991_v14  ;;  %994 = vst [vmem:[#allocation2 + $0x45c] sm:$0xf] %v993_v15  ;;  %v997_v17 = vld [vmem:[%s11658_s9 + $0x470] sm:$0xf] }
  0xfa   : > { %996 = vst [vmem:[#allocation2 + $0x460] sm:$0xf] %v995_v16  ;;  %v999_v18 = vld [vmem:[%s11658_s9 + $0x434] sm:$0xf]  ;;  %998 = vst [vmem:[#allocation2 + $0x464] sm:$0xf] %v997_v17 }
  0xfb   : > { %v1001_v19 = vld [vmem:[%s11658_s9 + $0x474] sm:$0xf]  ;;  %1000 = vst [vmem:[#allocation2 + $0x468] sm:$0xf] %v999_v18  ;;  %v1003_v20 = vld [vmem:[%s11658_s9 + $0x438] sm:$0xf] }
  0xfc   : > { %1002 = vst [vmem:[#allocation2 + $0x46c] sm:$0xf] %v1001_v19  ;;  %v1005_v21 = vld [vmem:[%s11658_s9 + $0x478] sm:$0xf]  ;;  %v1007_v22 = vld [vmem:[%s11658_s9 + $0x43c] sm:$0xf] }
  0xfd   : > { %1004 = vst [vmem:[#allocation2 + $0x470] sm:$0xf] %v1003_v20  ;;  %1006 = vst [vmem:[#allocation2 + $0x474] sm:$0xf] %v1005_v21  ;;  %v1013_v24 = vld [vmem:[%s11658_s9 + $0x4c0] sm:$0xf] }
  0xfe   : > { %1008 = vst [vmem:[#allocation2 + $0x478] sm:$0xf] %v1007_v22  ;;  %v1015_v25 = vld [vmem:[%s11658_s9 + $0x484] sm:$0xf]  ;;  %1010 = vst [vmem:[#allocation2 + $0x47c] sm:$0xff] %v1009_v23   ;;  %v1073_v54 = vld [vmem:[%s11658_s9 + $0x4fc] sm:$0xff]  }
  0xff   : > { %1014 = vst [vmem:[#allocation2 + $0x484] sm:$0xf] %v1013_v24  ;;  %1016 = vst [vmem:[#allocation2 + $0x488] sm:$0xf] %v1015_v25  ;;  %v1017_v26 = vld [vmem:[%s11658_s9 + $0x4c4] sm:$0xf] }
 0x100   : > { %v1019_v27 = vld [vmem:[%s11658_s9 + $0x488] sm:$0xf]  ;;  %1018 = vst [vmem:[#allocation2 + $0x48c] sm:$0xf] %v1017_v26  ;;  %v1023_v29 = vld [vmem:[%s11658_s9 + $0x48c] sm:$0xf] }
 0x101   : > { %v1021_v28 = vld [vmem:[%s11658_s9 + $0x4c8] sm:$0xf]  ;;  %1020 = vst [vmem:[#allocation2 + $0x490] sm:$0xf] %v1019_v27  ;;  %v1025_v30 = vld [vmem:[%s11658_s9 + $0x4cc] sm:$0xf] }
 0x102   : > { %1022 = vst [vmem:[#allocation2 + $0x494] sm:$0xf] %v1021_v28  ;;  %v1027_v31 = vld [vmem:[%s11658_s9 + $0x490] sm:$0xf]  ;;  %1024 = vst [vmem:[#allocation2 + $0x498] sm:$0xf] %v1023_v29 }
 0x103   : > { %1026 = vst [vmem:[#allocation2 + $0x49c] sm:$0xf] %v1025_v30  ;;  %1028 = vst [vmem:[#allocation2 + $0x4a0] sm:$0xf] %v1027_v31  ;;  %v1029_v32 = vld [vmem:[%s11658_s9 + $0x4d0] sm:$0xf] }
 0x104   : > { %v1031_v33 = vld [vmem:[%s11658_s9 + $0x494] sm:$0xf]  ;;  %1030 = vst [vmem:[#allocation2 + $0x4a4] sm:$0xf] %v1029_v32  ;;  %v1035_v35 = vld [vmem:[%s11658_s9 + $0x498] sm:$0xf] }
 0x105   : > { %v1033_v34 = vld [vmem:[%s11658_s9 + $0x4d4] sm:$0xf]  ;;  %1032 = vst [vmem:[#allocation2 + $0x4a8] sm:$0xf] %v1031_v33  ;;  %v1037_v36 = vld [vmem:[%s11658_s9 + $0x4d8] sm:$0xf] }
 0x106   : > { %1034 = vst [vmem:[#allocation2 + $0x4ac] sm:$0xf] %v1033_v34  ;;  %v1039_v37 = vld [vmem:[%s11658_s9 + $0x49c] sm:$0xf]  ;;  %1036 = vst [vmem:[#allocation2 + $0x4b0] sm:$0xf] %v1035_v35 }
 0x107   : > { %1038 = vst [vmem:[#allocation2 + $0x4b4] sm:$0xf] %v1037_v36  ;;  %1040 = vst [vmem:[#allocation2 + $0x4b8] sm:$0xf] %v1039_v37  ;;  %v1041_v38 = vld [vmem:[%s11658_s9 + $0x4dc] sm:$0xf] }
 0x108   : > { %v1043_v39 = vld [vmem:[%s11658_s9 + $0x4a0] sm:$0xf]  ;;  %1042 = vst [vmem:[#allocation2 + $0x4bc] sm:$0xf] %v1041_v38  ;;  %v1047_v41 = vld [vmem:[%s11658_s9 + $0x4a4] sm:$0xf] }
 0x109   : > { %v1045_v40 = vld [vmem:[%s11658_s9 + $0x4e0] sm:$0xf]  ;;  %1044 = vst [vmem:[#allocation2 + $0x4c0] sm:$0xf] %v1043_v39  ;;  %v1049_v42 = vld [vmem:[%s11658_s9 + $0x4e4] sm:$0xf] }
 0x10a   : > { %1046 = vst [vmem:[#allocation2 + $0x4c4] sm:$0xf] %v1045_v40  ;;  %v1051_v43 = vld [vmem:[%s11658_s9 + $0x4a8] sm:$0xf]  ;;  %1048 = vst [vmem:[#allocation2 + $0x4c8] sm:$0xf] %v1047_v41 }
 0x10b   : > { %1050 = vst [vmem:[#allocation2 + $0x4cc] sm:$0xf] %v1049_v42  ;;  %1052 = vst [vmem:[#allocation2 + $0x4d0] sm:$0xf] %v1051_v43  ;;  %v1053_v44 = vld [vmem:[%s11658_s9 + $0x4e8] sm:$0xf] }
 0x10c   : > { %v1055_v45 = vld [vmem:[%s11658_s9 + $0x4ac] sm:$0xf]  ;;  %1054 = vst [vmem:[#allocation2 + $0x4d4] sm:$0xf] %v1053_v44  ;;  %v1059_v47 = vld [vmem:[%s11658_s9 + $0x4b0] sm:$0xf] }
 0x10d   : > { %v1057_v46 = vld [vmem:[%s11658_s9 + $0x4ec] sm:$0xf]  ;;  %1056 = vst [vmem:[#allocation2 + $0x4d8] sm:$0xf] %v1055_v45  ;;  %v1061_v48 = vld [vmem:[%s11658_s9 + $0x4f0] sm:$0xf] }
 0x10e   : > { %1058 = vst [vmem:[#allocation2 + $0x4dc] sm:$0xf] %v1057_v46  ;;  %v1063_v49 = vld [vmem:[%s11658_s9 + $0x4b4] sm:$0xf]  ;;  %1060 = vst [vmem:[#allocation2 + $0x4e0] sm:$0xf] %v1059_v47 }
 0x10f   : > { %1062 = vst [vmem:[#allocation2 + $0x4e4] sm:$0xf] %v1061_v48  ;;  %1064 = vst [vmem:[#allocation2 + $0x4e8] sm:$0xf] %v1063_v49  ;;  %v1065_v50 = vld [vmem:[%s11658_s9 + $0x4f4] sm:$0xf] }
 0x110   : > { %v1067_v51 = vld [vmem:[%s11658_s9 + $0x4b8] sm:$0xf]  ;;  %1066 = vst [vmem:[#allocation2 + $0x4ec] sm:$0xf] %v1065_v50  ;;  %v1071_v53 = vld [vmem:[%s11658_s9 + $0x4bc] sm:$0xf] }
 0x111   : > { %v1069_v52 = vld [vmem:[%s11658_s9 + $0x4f8] sm:$0xf]  ;;  %1068 = vst [vmem:[#allocation2 + $0x4f0] sm:$0xf] %v1067_v51  ;;  %v1077_v55 = vld [vmem:[%s11658_s9 + $0x540] sm:$0xf] }
 0x112   : > { %1070 = vst [vmem:[#allocation2 + $0x4f4] sm:$0xf] %v1069_v52  ;;  %1072 = vst [vmem:[#allocation2 + $0x4f8] sm:$0xf] %v1071_v53  ;;  %v1079_v56 = vld [vmem:[%s11658_s9 + $0x504] sm:$0xf] }
 0x113   : > { %1074 = vst [vmem:[#allocation2 + $0x4fc] sm:$0xff] %v1073_v54   ;;  %1078 = vst [vmem:[#allocation2 + $0x504] sm:$0xf] %v1077_v55  ;;  %v1081_v57 = vld [vmem:[%s11658_s9 + $0x544] sm:$0xf]  ;;  %v1137_v21 = vld [vmem:[%s11658_s9 + $0x57c] sm:$0xff]  }
 0x114   : > { %v1083_v58 = vld [vmem:[%s11658_s9 + $0x508] sm:$0xf]  ;;  %1080 = vst [vmem:[#allocation2 + $0x508] sm:$0xf] %v1079_v56  ;;  %1082 = vst [vmem:[#allocation2 + $0x50c] sm:$0xf] %v1081_v57 }
 0x115   : > { %1084 = vst [vmem:[#allocation2 + $0x510] sm:$0xf] %v1083_v58  ;;  %v1085_v59 = vld [vmem:[%s11658_s9 + $0x548] sm:$0xf]  ;;  %v1087_v60 = vld [vmem:[%s11658_s9 + $0x50c] sm:$0xf] }
 0x116   : > { %v1089_v61 = vld [vmem:[%s11658_s9 + $0x54c] sm:$0xf]  ;;  %1086 = vst [vmem:[#allocation2 + $0x514] sm:$0xf] %v1085_v59  ;;  %1088 = vst [vmem:[#allocation2 + $0x518] sm:$0xf] %v1087_v60 }
 0x117   : > { %1090 = vst [vmem:[#allocation2 + $0x51c] sm:$0xf] %v1089_v61  ;;  %v1091_v62 = vld [vmem:[%s11658_s9 + $0x510] sm:$0xf]  ;;  %v1095_v0 = vld [vmem:[%s11658_s9 + $0x514] sm:$0xf] }
 0x118   : > { %v1093_v63 = vld [vmem:[%s11658_s9 + $0x550] sm:$0xf]  ;;  %1092 = vst [vmem:[#allocation2 + $0x520] sm:$0xf] %v1091_v62  ;;  %1096 = vst [vmem:[#allocation2 + $0x528] sm:$0xf] %v1095_v0 }
 0x119   : > { %1094 = vst [vmem:[#allocation2 + $0x524] sm:$0xf] %v1093_v63  ;;  %v1097_v1 = vld [vmem:[%s11658_s9 + $0x554] sm:$0xf]  ;;  %v1099_v2 = vld [vmem:[%s11658_s9 + $0x518] sm:$0xf] }
 0x11a   : > { %v1101_v3 = vld [vmem:[%s11658_s9 + $0x558] sm:$0xf]  ;;  %1098 = vst [vmem:[#allocation2 + $0x52c] sm:$0xf] %v1097_v1  ;;  %1100 = vst [vmem:[#allocation2 + $0x530] sm:$0xf] %v1099_v2 }
 0x11b   : > { %1102 = vst [vmem:[#allocation2 + $0x534] sm:$0xf] %v1101_v3  ;;  %v1103_v4 = vld [vmem:[%s11658_s9 + $0x51c] sm:$0xf]  ;;  %v1107_v6 = vld [vmem:[%s11658_s9 + $0x520] sm:$0xf] }
 0x11c   : > { %v1105_v5 = vld [vmem:[%s11658_s9 + $0x55c] sm:$0xf]  ;;  %1104 = vst [vmem:[#allocation2 + $0x538] sm:$0xf] %v1103_v4  ;;  %1108 = vst [vmem:[#allocation2 + $0x540] sm:$0xf] %v1107_v6 }
 0x11d   : > { %1106 = vst [vmem:[#allocation2 + $0x53c] sm:$0xf] %v1105_v5  ;;  %v1109_v7 = vld [vmem:[%s11658_s9 + $0x560] sm:$0xf]  ;;  %v1111_v8 = vld [vmem:[%s11658_s9 + $0x524] sm:$0xf] }
 0x11e   : > { %v1113_v9 = vld [vmem:[%s11658_s9 + $0x564] sm:$0xf]  ;;  %1110 = vst [vmem:[#allocation2 + $0x544] sm:$0xf] %v1109_v7  ;;  %1112 = vst [vmem:[#allocation2 + $0x548] sm:$0xf] %v1111_v8 }
 0x11f   : > { %1114 = vst [vmem:[#allocation2 + $0x54c] sm:$0xf] %v1113_v9  ;;  %v1115_v10 = vld [vmem:[%s11658_s9 + $0x528] sm:$0xf]  ;;  %v1119_v12 = vld [vmem:[%s11658_s9 + $0x52c] sm:$0xf] }
 0x120   : > { %v1117_v11 = vld [vmem:[%s11658_s9 + $0x568] sm:$0xf]  ;;  %1116 = vst [vmem:[#allocation2 + $0x550] sm:$0xf] %v1115_v10  ;;  %1120 = vst [vmem:[#allocation2 + $0x558] sm:$0xf] %v1119_v12 }
 0x121   : > { %1118 = vst [vmem:[#allocation2 + $0x554] sm:$0xf] %v1117_v11  ;;  %v1121_v13 = vld [vmem:[%s11658_s9 + $0x56c] sm:$0xf]  ;;  %v1123_v14 = vld [vmem:[%s11658_s9 + $0x530] sm:$0xf] }
 0x122   : > { %v1125_v15 = vld [vmem:[%s11658_s9 + $0x570] sm:$0xf]  ;;  %1122 = vst [vmem:[#allocation2 + $0x55c] sm:$0xf] %v1121_v13  ;;  %1124 = vst [vmem:[#allocation2 + $0x560] sm:$0xf] %v1123_v14 }
 0x123   : > { %1126 = vst [vmem:[#allocation2 + $0x564] sm:$0xf] %v1125_v15  ;;  %v1127_v16 = vld [vmem:[%s11658_s9 + $0x534] sm:$0xf]  ;;  %v1131_v18 = vld [vmem:[%s11658_s9 + $0x538] sm:$0xf] }
 0x124   : > { %v1129_v17 = vld [vmem:[%s11658_s9 + $0x574] sm:$0xf]  ;;  %1128 = vst [vmem:[#allocation2 + $0x568] sm:$0xf] %v1127_v16  ;;  %1132 = vst [vmem:[#allocation2 + $0x570] sm:$0xf] %v1131_v18 }
 0x125   : > { %1130 = vst [vmem:[#allocation2 + $0x56c] sm:$0xf] %v1129_v17  ;;  %v1133_v19 = vld [vmem:[%s11658_s9 + $0x578] sm:$0xf]  ;;  %v1135_v20 = vld [vmem:[%s11658_s9 + $0x53c] sm:$0xf] }
 0x126   : > { %1134 = vst [vmem:[#allocation2 + $0x574] sm:$0xf] %v1133_v19  ;;  %1136 = vst [vmem:[#allocation2 + $0x578] sm:$0xf] %v1135_v20  ;;  %v1141_v22 = vld [vmem:[%s11658_s9 + $0x5c0] sm:$0xf] }
 0x127   : > { %1138 = vst [vmem:[#allocation2 + $0x57c] sm:$0xff] %v1137_v21   ;;  %v1143_v23 = vld [vmem:[%s11658_s9 + $0x584] sm:$0xf]  ;;  %1142 = vst [vmem:[#allocation2 + $0x584] sm:$0xf] %v1141_v22  ;;  %v1201_v52 = vld [vmem:[%s11658_s9 + $0x5fc] sm:$0xff]  }
 0x128   : > { %v1145_v24 = vld [vmem:[%s11658_s9 + $0x5c4] sm:$0xf]  ;;  %1144 = vst [vmem:[#allocation2 + $0x588] sm:$0xf] %v1143_v23  ;;  %v1147_v25 = vld [vmem:[%s11658_s9 + $0x588] sm:$0xf] }
 0x129   : > { %1146 = vst [vmem:[#allocation2 + $0x58c] sm:$0xf] %v1145_v24  ;;  %v1149_v26 = vld [vmem:[%s11658_s9 + $0x5c8] sm:$0xf]  ;;  %v1151_v27 = vld [vmem:[%s11658_s9 + $0x58c] sm:$0xf] }
 0x12a   : > { %1148 = vst [vmem:[#allocation2 + $0x590] sm:$0xf] %v1147_v25  ;;  %1150 = vst [vmem:[#allocation2 + $0x594] sm:$0xf] %v1149_v26  ;;  %v1153_v28 = vld [vmem:[%s11658_s9 + $0x5cc] sm:$0xf] }
 0x12b   : > { %1152 = vst [vmem:[#allocation2 + $0x598] sm:$0xf] %v1151_v27  ;;  %v1155_v29 = vld [vmem:[%s11658_s9 + $0x590] sm:$0xf]  ;;  %1154 = vst [vmem:[#allocation2 + $0x59c] sm:$0xf] %v1153_v28 }
 0x12c   : > { %v1157_v30 = vld [vmem:[%s11658_s9 + $0x5d0] sm:$0xf]  ;;  %1156 = vst [vmem:[#allocation2 + $0x5a0] sm:$0xf] %v1155_v29  ;;  %v1159_v31 = vld [vmem:[%s11658_s9 + $0x594] sm:$0xf] }
 0x12d   : > { %1158 = vst [vmem:[#allocation2 + $0x5a4] sm:$0xf] %v1157_v30  ;;  %v1161_v32 = vld [vmem:[%s11658_s9 + $0x5d4] sm:$0xf]  ;;  %v1163_v33 = vld [vmem:[%s11658_s9 + $0x598] sm:$0xf] }
 0x12e   : > { %1160 = vst [vmem:[#allocation2 + $0x5a8] sm:$0xf] %v1159_v31  ;;  %1162 = vst [vmem:[#allocation2 + $0x5ac] sm:$0xf] %v1161_v32  ;;  %v1165_v34 = vld [vmem:[%s11658_s9 + $0x5d8] sm:$0xf] }
 0x12f   : > { %1164 = vst [vmem:[#allocation2 + $0x5b0] sm:$0xf] %v1163_v33  ;;  %v1167_v35 = vld [vmem:[%s11658_s9 + $0x59c] sm:$0xf]  ;;  %1166 = vst [vmem:[#allocation2 + $0x5b4] sm:$0xf] %v1165_v34 }
 0x130   : > { %v1169_v36 = vld [vmem:[%s11658_s9 + $0x5dc] sm:$0xf]  ;;  %1168 = vst [vmem:[#allocation2 + $0x5b8] sm:$0xf] %v1167_v35  ;;  %v1171_v37 = vld [vmem:[%s11658_s9 + $0x5a0] sm:$0xf] }
 0x131   : > { %1170 = vst [vmem:[#allocation2 + $0x5bc] sm:$0xf] %v1169_v36  ;;  %v1173_v38 = vld [vmem:[%s11658_s9 + $0x5e0] sm:$0xf]  ;;  %v1175_v39 = vld [vmem:[%s11658_s9 + $0x5a4] sm:$0xf] }
 0x132   : > { %1172 = vst [vmem:[#allocation2 + $0x5c0] sm:$0xf] %v1171_v37  ;;  %1174 = vst [vmem:[#allocation2 + $0x5c4] sm:$0xf] %v1173_v38  ;;  %v1177_v40 = vld [vmem:[%s11658_s9 + $0x5e4] sm:$0xf] }
 0x133   : > { %1176 = vst [vmem:[#allocation2 + $0x5c8] sm:$0xf] %v1175_v39  ;;  %v1179_v41 = vld [vmem:[%s11658_s9 + $0x5a8] sm:$0xf]  ;;  %1178 = vst [vmem:[#allocation2 + $0x5cc] sm:$0xf] %v1177_v40 }
 0x134   : > { %v1181_v42 = vld [vmem:[%s11658_s9 + $0x5e8] sm:$0xf]  ;;  %1180 = vst [vmem:[#allocation2 + $0x5d0] sm:$0xf] %v1179_v41  ;;  %v1183_v43 = vld [vmem:[%s11658_s9 + $0x5ac] sm:$0xf] }
 0x135   : > { %1182 = vst [vmem:[#allocation2 + $0x5d4] sm:$0xf] %v1181_v42  ;;  %v1185_v44 = vld [vmem:[%s11658_s9 + $0x5ec] sm:$0xf]  ;;  %v1187_v45 = vld [vmem:[%s11658_s9 + $0x5b0] sm:$0xf] }
 0x136   : > { %1184 = vst [vmem:[#allocation2 + $0x5d8] sm:$0xf] %v1183_v43  ;;  %1186 = vst [vmem:[#allocation2 + $0x5dc] sm:$0xf] %v1185_v44  ;;  %v1189_v46 = vld [vmem:[%s11658_s9 + $0x5f0] sm:$0xf] }
 0x137   : > { %1188 = vst [vmem:[#allocation2 + $0x5e0] sm:$0xf] %v1187_v45  ;;  %v1191_v47 = vld [vmem:[%s11658_s9 + $0x5b4] sm:$0xf]  ;;  %1190 = vst [vmem:[#allocation2 + $0x5e4] sm:$0xf] %v1189_v46 }
 0x138   : > { %v1193_v48 = vld [vmem:[%s11658_s9 + $0x5f4] sm:$0xf]  ;;  %1192 = vst [vmem:[#allocation2 + $0x5e8] sm:$0xf] %v1191_v47  ;;  %v1195_v49 = vld [vmem:[%s11658_s9 + $0x5b8] sm:$0xf] }
 0x139   : > { %1194 = vst [vmem:[#allocation2 + $0x5ec] sm:$0xf] %v1193_v48  ;;  %v1197_v50 = vld [vmem:[%s11658_s9 + $0x5f8] sm:$0xf]  ;;  %v1199_v51 = vld [vmem:[%s11658_s9 + $0x5bc] sm:$0xf] }
 0x13a   : > { %1196 = vst [vmem:[#allocation2 + $0x5f0] sm:$0xf] %v1195_v49  ;;  %1198 = vst [vmem:[#allocation2 + $0x5f4] sm:$0xf] %v1197_v50  ;;  %v1205_v53 = vld [vmem:[%s11658_s9 + $0x640] sm:$0xf] }
 0x13b   : > { %1200 = vst [vmem:[#allocation2 + $0x5f8] sm:$0xf] %v1199_v51  ;;  %v1207_v54 = vld [vmem:[%s11658_s9 + $0x604] sm:$0xf]  ;;  %1202 = vst [vmem:[#allocation2 + $0x5fc] sm:$0xff] %v1201_v52   ;;  %v1265_v19 = vld [vmem:[%s11658_s9 + $0x67c] sm:$0xff]  }
 0x13c   : > { %1206 = vst [vmem:[#allocation2 + $0x604] sm:$0xf] %v1205_v53  ;;  %1208 = vst [vmem:[#allocation2 + $0x608] sm:$0xf] %v1207_v54  ;;  %v1209_v55 = vld [vmem:[%s11658_s9 + $0x644] sm:$0xf] }
 0x13d   : > { %v1211_v56 = vld [vmem:[%s11658_s9 + $0x608] sm:$0xf]  ;;  %1210 = vst [vmem:[#allocation2 + $0x60c] sm:$0xf] %v1209_v55  ;;  %v1215_v58 = vld [vmem:[%s11658_s9 + $0x60c] sm:$0xf] }
 0x13e   : > { %v1213_v57 = vld [vmem:[%s11658_s9 + $0x648] sm:$0xf]  ;;  %1212 = vst [vmem:[#allocation2 + $0x610] sm:$0xf] %v1211_v56  ;;  %v1217_v59 = vld [vmem:[%s11658_s9 + $0x64c] sm:$0xf] }
 0x13f   : > { %1214 = vst [vmem:[#allocation2 + $0x614] sm:$0xf] %v1213_v57  ;;  %v1219_v60 = vld [vmem:[%s11658_s9 + $0x610] sm:$0xf]  ;;  %1216 = vst [vmem:[#allocation2 + $0x618] sm:$0xf] %v1215_v58 }
 0x140   : > { %1218 = vst [vmem:[#allocation2 + $0x61c] sm:$0xf] %v1217_v59  ;;  %1220 = vst [vmem:[#allocation2 + $0x620] sm:$0xf] %v1219_v60  ;;  %v1221_v61 = vld [vmem:[%s11658_s9 + $0x650] sm:$0xf] }
 0x141   : > { %v1223_v62 = vld [vmem:[%s11658_s9 + $0x614] sm:$0xf]  ;;  %1222 = vst [vmem:[#allocation2 + $0x624] sm:$0xf] %v1221_v61  ;;  %v1227_v0 = vld [vmem:[%s11658_s9 + $0x618] sm:$0xf] }
 0x142   : > { %v1225_v63 = vld [vmem:[%s11658_s9 + $0x654] sm:$0xf]  ;;  %1224 = vst [vmem:[#allocation2 + $0x628] sm:$0xf] %v1223_v62  ;;  %v1229_v1 = vld [vmem:[%s11658_s9 + $0x658] sm:$0xf] }
 0x143   : > { %1226 = vst [vmem:[#allocation2 + $0x62c] sm:$0xf] %v1225_v63  ;;  %v1231_v2 = vld [vmem:[%s11658_s9 + $0x61c] sm:$0xf]  ;;  %1228 = vst [vmem:[#allocation2 + $0x630] sm:$0xf] %v1227_v0 }
 0x144   : > { %1230 = vst [vmem:[#allocation2 + $0x634] sm:$0xf] %v1229_v1  ;;  %1232 = vst [vmem:[#allocation2 + $0x638] sm:$0xf] %v1231_v2  ;;  %v1233_v3 = vld [vmem:[%s11658_s9 + $0x65c] sm:$0xf] }
 0x145   : > { %v1235_v4 = vld [vmem:[%s11658_s9 + $0x620] sm:$0xf]  ;;  %1234 = vst [vmem:[#allocation2 + $0x63c] sm:$0xf] %v1233_v3  ;;  %v1239_v6 = vld [vmem:[%s11658_s9 + $0x624] sm:$0xf] }
 0x146   : > { %v1237_v5 = vld [vmem:[%s11658_s9 + $0x660] sm:$0xf]  ;;  %1236 = vst [vmem:[#allocation2 + $0x640] sm:$0xf] %v1235_v4  ;;  %v1241_v7 = vld [vmem:[%s11658_s9 + $0x664] sm:$0xf] }
 0x147   : > { %1238 = vst [vmem:[#allocation2 + $0x644] sm:$0xf] %v1237_v5  ;;  %v1243_v8 = vld [vmem:[%s11658_s9 + $0x628] sm:$0xf]  ;;  %1240 = vst [vmem:[#allocation2 + $0x648] sm:$0xf] %v1239_v6 }
 0x148   : > { %1242 = vst [vmem:[#allocation2 + $0x64c] sm:$0xf] %v1241_v7  ;;  %1244 = vst [vmem:[#allocation2 + $0x650] sm:$0xf] %v1243_v8  ;;  %v1245_v9 = vld [vmem:[%s11658_s9 + $0x668] sm:$0xf] }
 0x149   : > { %v1247_v10 = vld [vmem:[%s11658_s9 + $0x62c] sm:$0xf]  ;;  %1246 = vst [vmem:[#allocation2 + $0x654] sm:$0xf] %v1245_v9  ;;  %v1251_v12 = vld [vmem:[%s11658_s9 + $0x630] sm:$0xf] }
 0x14a   : > { %v1249_v11 = vld [vmem:[%s11658_s9 + $0x66c] sm:$0xf]  ;;  %1248 = vst [vmem:[#allocation2 + $0x658] sm:$0xf] %v1247_v10  ;;  %v1253_v13 = vld [vmem:[%s11658_s9 + $0x670] sm:$0xf] }
 0x14b   : > { %1250 = vst [vmem:[#allocation2 + $0x65c] sm:$0xf] %v1249_v11  ;;  %v1255_v14 = vld [vmem:[%s11658_s9 + $0x634] sm:$0xf]  ;;  %1252 = vst [vmem:[#allocation2 + $0x660] sm:$0xf] %v1251_v12 }
 0x14c   : > { %1254 = vst [vmem:[#allocation2 + $0x664] sm:$0xf] %v1253_v13  ;;  %1256 = vst [vmem:[#allocation2 + $0x668] sm:$0xf] %v1255_v14  ;;  %v1257_v15 = vld [vmem:[%s11658_s9 + $0x674] sm:$0xf] }
 0x14d   : > { %v1259_v16 = vld [vmem:[%s11658_s9 + $0x638] sm:$0xf]  ;;  %1258 = vst [vmem:[#allocation2 + $0x66c] sm:$0xf] %v1257_v15  ;;  %v1263_v18 = vld [vmem:[%s11658_s9 + $0x63c] sm:$0xf] }
 0x14e   : > { %v1261_v17 = vld [vmem:[%s11658_s9 + $0x678] sm:$0xf]  ;;  %1260 = vst [vmem:[#allocation2 + $0x670] sm:$0xf] %v1259_v16  ;;  %v1269_v20 = vld [vmem:[%s11658_s9 + $0x6c0] sm:$0xf] }
 0x14f   : > { %1262 = vst [vmem:[#allocation2 + $0x674] sm:$0xf] %v1261_v17  ;;  %1264 = vst [vmem:[#allocation2 + $0x678] sm:$0xf] %v1263_v18  ;;  %v1271_v21 = vld [vmem:[%s11658_s9 + $0x684] sm:$0xf] }
 0x150   : > { %1266 = vst [vmem:[#allocation2 + $0x67c] sm:$0xff] %v1265_v19   ;;  %1270 = vst [vmem:[#allocation2 + $0x684] sm:$0xf] %v1269_v20  ;;  %v1273_v22 = vld [vmem:[%s11658_s9 + $0x6c4] sm:$0xf]  ;;  %v1329_v50 = vld [vmem:[%s11658_s9 + $0x6fc] sm:$0xff]  }
 0x151   : > { %v1275_v23 = vld [vmem:[%s11658_s9 + $0x688] sm:$0xf]  ;;  %1272 = vst [vmem:[#allocation2 + $0x688] sm:$0xf] %v1271_v21  ;;  %1274 = vst [vmem:[#allocation2 + $0x68c] sm:$0xf] %v1273_v22 }
 0x152   : > { %1276 = vst [vmem:[#allocation2 + $0x690] sm:$0xf] %v1275_v23  ;;  %v1277_v24 = vld [vmem:[%s11658_s9 + $0x6c8] sm:$0xf]  ;;  %v1279_v25 = vld [vmem:[%s11658_s9 + $0x68c] sm:$0xf] }
 0x153   : > { %v1281_v26 = vld [vmem:[%s11658_s9 + $0x6cc] sm:$0xf]  ;;  %1278 = vst [vmem:[#allocation2 + $0x694] sm:$0xf] %v1277_v24  ;;  %1280 = vst [vmem:[#allocation2 + $0x698] sm:$0xf] %v1279_v25 }
 0x154   : > { %1282 = vst [vmem:[#allocation2 + $0x69c] sm:$0xf] %v1281_v26  ;;  %v1283_v27 = vld [vmem:[%s11658_s9 + $0x690] sm:$0xf]  ;;  %v1287_v29 = vld [vmem:[%s11658_s9 + $0x694] sm:$0xf] }
 0x155   : > { %v1285_v28 = vld [vmem:[%s11658_s9 + $0x6d0] sm:$0xf]  ;;  %1284 = vst [vmem:[#allocation2 + $0x6a0] sm:$0xf] %v1283_v27  ;;  %1288 = vst [vmem:[#allocation2 + $0x6a8] sm:$0xf] %v1287_v29 }
 0x156   : > { %1286 = vst [vmem:[#allocation2 + $0x6a4] sm:$0xf] %v1285_v28  ;;  %v1289_v30 = vld [vmem:[%s11658_s9 + $0x6d4] sm:$0xf]  ;;  %v1291_v31 = vld [vmem:[%s11658_s9 + $0x698] sm:$0xf] }
 0x157   : > { %v1293_v32 = vld [vmem:[%s11658_s9 + $0x6d8] sm:$0xf]  ;;  %1290 = vst [vmem:[#allocation2 + $0x6ac] sm:$0xf] %v1289_v30  ;;  %1292 = vst [vmem:[#allocation2 + $0x6b0] sm:$0xf] %v1291_v31 }
 0x158   : > { %1294 = vst [vmem:[#allocation2 + $0x6b4] sm:$0xf] %v1293_v32  ;;  %v1295_v33 = vld [vmem:[%s11658_s9 + $0x69c] sm:$0xf]  ;;  %v1299_v35 = vld [vmem:[%s11658_s9 + $0x6a0] sm:$0xf] }
 0x159   : > { %v1297_v34 = vld [vmem:[%s11658_s9 + $0x6dc] sm:$0xf]  ;;  %1296 = vst [vmem:[#allocation2 + $0x6b8] sm:$0xf] %v1295_v33  ;;  %1300 = vst [vmem:[#allocation2 + $0x6c0] sm:$0xf] %v1299_v35 }
 0x15a   : > { %1298 = vst [vmem:[#allocation2 + $0x6bc] sm:$0xf] %v1297_v34  ;;  %v1301_v36 = vld [vmem:[%s11658_s9 + $0x6e0] sm:$0xf]  ;;  %v1303_v37 = vld [vmem:[%s11658_s9 + $0x6a4] sm:$0xf] }
 0x15b   : > { %v1305_v38 = vld [vmem:[%s11658_s9 + $0x6e4] sm:$0xf]  ;;  %1302 = vst [vmem:[#allocation2 + $0x6c4] sm:$0xf] %v1301_v36  ;;  %1304 = vst [vmem:[#allocation2 + $0x6c8] sm:$0xf] %v1303_v37 }
 0x15c   : > { %1306 = vst [vmem:[#allocation2 + $0x6cc] sm:$0xf] %v1305_v38  ;;  %v1307_v39 = vld [vmem:[%s11658_s9 + $0x6a8] sm:$0xf]  ;;  %v1311_v41 = vld [vmem:[%s11658_s9 + $0x6ac] sm:$0xf] }
 0x15d   : > { %v1309_v40 = vld [vmem:[%s11658_s9 + $0x6e8] sm:$0xf]  ;;  %1308 = vst [vmem:[#allocation2 + $0x6d0] sm:$0xf] %v1307_v39  ;;  %1312 = vst [vmem:[#allocation2 + $0x6d8] sm:$0xf] %v1311_v41 }
 0x15e   : > { %1310 = vst [vmem:[#allocation2 + $0x6d4] sm:$0xf] %v1309_v40  ;;  %v1313_v42 = vld [vmem:[%s11658_s9 + $0x6ec] sm:$0xf]  ;;  %v1315_v43 = vld [vmem:[%s11658_s9 + $0x6b0] sm:$0xf] }
 0x15f   : > { %v1317_v44 = vld [vmem:[%s11658_s9 + $0x6f0] sm:$0xf]  ;;  %1314 = vst [vmem:[#allocation2 + $0x6dc] sm:$0xf] %v1313_v42  ;;  %1316 = vst [vmem:[#allocation2 + $0x6e0] sm:$0xf] %v1315_v43 }
 0x160   : > { %1318 = vst [vmem:[#allocation2 + $0x6e4] sm:$0xf] %v1317_v44  ;;  %v1319_v45 = vld [vmem:[%s11658_s9 + $0x6b4] sm:$0xf]  ;;  %v1323_v47 = vld [vmem:[%s11658_s9 + $0x6b8] sm:$0xf] }
 0x161   : > { %v1321_v46 = vld [vmem:[%s11658_s9 + $0x6f4] sm:$0xf]  ;;  %1320 = vst [vmem:[#allocation2 + $0x6e8] sm:$0xf] %v1319_v45  ;;  %1324 = vst [vmem:[#allocation2 + $0x6f0] sm:$0xf] %v1323_v47 }
 0x162   : > { %1322 = vst [vmem:[#allocation2 + $0x6ec] sm:$0xf] %v1321_v46  ;;  %v1325_v48 = vld [vmem:[%s11658_s9 + $0x6f8] sm:$0xf]  ;;  %v1327_v49 = vld [vmem:[%s11658_s9 + $0x6bc] sm:$0xf] }
 0x163   : > { %1326 = vst [vmem:[#allocation2 + $0x6f4] sm:$0xf] %v1325_v48  ;;  %1328 = vst [vmem:[#allocation2 + $0x6f8] sm:$0xf] %v1327_v49  ;;  %v1333_v51 = vld [vmem:[%s11658_s9 + $0x740] sm:$0xf] }
 0x164   : > { %1330 = vst [vmem:[#allocation2 + $0x6fc] sm:$0xff] %v1329_v50   ;;  %v1335_v52 = vld [vmem:[%s11658_s9 + $0x704] sm:$0xf]  ;;  %1334 = vst [vmem:[#allocation2 + $0x704] sm:$0xf] %v1333_v51  ;;  %v1393_v17 = vld [vmem:[%s11658_s9 + $0x77c] sm:$0xff]  }
 0x165   : > { %v1337_v53 = vld [vmem:[%s11658_s9 + $0x744] sm:$0xf]  ;;  %1336 = vst [vmem:[#allocation2 + $0x708] sm:$0xf] %v1335_v52  ;;  %v1339_v54 = vld [vmem:[%s11658_s9 + $0x708] sm:$0xf] }
 0x166   : > { %1338 = vst [vmem:[#allocation2 + $0x70c] sm:$0xf] %v1337_v53  ;;  %v1341_v55 = vld [vmem:[%s11658_s9 + $0x748] sm:$0xf]  ;;  %v1343_v56 = vld [vmem:[%s11658_s9 + $0x70c] sm:$0xf] }
 0x167   : > { %1340 = vst [vmem:[#allocation2 + $0x710] sm:$0xf] %v1339_v54  ;;  %1342 = vst [vmem:[#allocation2 + $0x714] sm:$0xf] %v1341_v55  ;;  %v1345_v57 = vld [vmem:[%s11658_s9 + $0x74c] sm:$0xf] }
 0x168   : > { %1344 = vst [vmem:[#allocation2 + $0x718] sm:$0xf] %v1343_v56  ;;  %v1347_v58 = vld [vmem:[%s11658_s9 + $0x710] sm:$0xf]  ;;  %1346 = vst [vmem:[#allocation2 + $0x71c] sm:$0xf] %v1345_v57 }
 0x169   : > { %v1349_v59 = vld [vmem:[%s11658_s9 + $0x750] sm:$0xf]  ;;  %1348 = vst [vmem:[#allocation2 + $0x720] sm:$0xf] %v1347_v58  ;;  %v1351_v60 = vld [vmem:[%s11658_s9 + $0x714] sm:$0xf] }
 0x16a   : > { %1350 = vst [vmem:[#allocation2 + $0x724] sm:$0xf] %v1349_v59  ;;  %v1353_v61 = vld [vmem:[%s11658_s9 + $0x754] sm:$0xf]  ;;  %v1355_v62 = vld [vmem:[%s11658_s9 + $0x718] sm:$0xf] }
 0x16b   : > { %1352 = vst [vmem:[#allocation2 + $0x728] sm:$0xf] %v1351_v60  ;;  %1354 = vst [vmem:[#allocation2 + $0x72c] sm:$0xf] %v1353_v61  ;;  %v1357_v63 = vld [vmem:[%s11658_s9 + $0x758] sm:$0xf] }
 0x16c   : > { %1356 = vst [vmem:[#allocation2 + $0x730] sm:$0xf] %v1355_v62  ;;  %v1359_v0 = vld [vmem:[%s11658_s9 + $0x71c] sm:$0xf]  ;;  %1358 = vst [vmem:[#allocation2 + $0x734] sm:$0xf] %v1357_v63 }
 0x16d   : > { %v1361_v1 = vld [vmem:[%s11658_s9 + $0x75c] sm:$0xf]  ;;  %1360 = vst [vmem:[#allocation2 + $0x738] sm:$0xf] %v1359_v0  ;;  %v1363_v2 = vld [vmem:[%s11658_s9 + $0x720] sm:$0xf] }
 0x16e   : > { %1362 = vst [vmem:[#allocation2 + $0x73c] sm:$0xf] %v1361_v1  ;;  %v1365_v3 = vld [vmem:[%s11658_s9 + $0x760] sm:$0xf]  ;;  %v1367_v4 = vld [vmem:[%s11658_s9 + $0x724] sm:$0xf] }
 0x16f   : > { %1364 = vst [vmem:[#allocation2 + $0x740] sm:$0xf] %v1363_v2  ;;  %1366 = vst [vmem:[#allocation2 + $0x744] sm:$0xf] %v1365_v3  ;;  %v1369_v5 = vld [vmem:[%s11658_s9 + $0x764] sm:$0xf] }
 0x170   : > { %1368 = vst [vmem:[#allocation2 + $0x748] sm:$0xf] %v1367_v4  ;;  %v1371_v6 = vld [vmem:[%s11658_s9 + $0x728] sm:$0xf]  ;;  %1370 = vst [vmem:[#allocation2 + $0x74c] sm:$0xf] %v1369_v5 }
 0x171   : > { %v1373_v7 = vld [vmem:[%s11658_s9 + $0x768] sm:$0xf]  ;;  %1372 = vst [vmem:[#allocation2 + $0x750] sm:$0xf] %v1371_v6  ;;  %v1375_v8 = vld [vmem:[%s11658_s9 + $0x72c] sm:$0xf] }
 0x172   : > { %1374 = vst [vmem:[#allocation2 + $0x754] sm:$0xf] %v1373_v7  ;;  %v1377_v9 = vld [vmem:[%s11658_s9 + $0x76c] sm:$0xf]  ;;  %v1379_v10 = vld [vmem:[%s11658_s9 + $0x730] sm:$0xf] }
 0x173   : > { %1376 = vst [vmem:[#allocation2 + $0x758] sm:$0xf] %v1375_v8  ;;  %1378 = vst [vmem:[#allocation2 + $0x75c] sm:$0xf] %v1377_v9  ;;  %v1381_v11 = vld [vmem:[%s11658_s9 + $0x770] sm:$0xf] }
 0x174   : > { %1380 = vst [vmem:[#allocation2 + $0x760] sm:$0xf] %v1379_v10  ;;  %v1383_v12 = vld [vmem:[%s11658_s9 + $0x734] sm:$0xf]  ;;  %1382 = vst [vmem:[#allocation2 + $0x764] sm:$0xf] %v1381_v11 }
 0x175   : > { %v1385_v13 = vld [vmem:[%s11658_s9 + $0x774] sm:$0xf]  ;;  %1384 = vst [vmem:[#allocation2 + $0x768] sm:$0xf] %v1383_v12  ;;  %v1387_v14 = vld [vmem:[%s11658_s9 + $0x738] sm:$0xf] }
 0x176   : > { %1386 = vst [vmem:[#allocation2 + $0x76c] sm:$0xf] %v1385_v13  ;;  %v1389_v15 = vld [vmem:[%s11658_s9 + $0x778] sm:$0xf]  ;;  %v1391_v16 = vld [vmem:[%s11658_s9 + $0x73c] sm:$0xf] }
 0x177   : > { %1388 = vst [vmem:[#allocation2 + $0x770] sm:$0xf] %v1387_v14  ;;  %1390 = vst [vmem:[#allocation2 + $0x774] sm:$0xf] %v1389_v15  ;;  %v1397_v18 = vld [vmem:[%s11658_s9 + $0x7c0] sm:$0xf] }
 0x178   : > { %1392 = vst [vmem:[#allocation2 + $0x778] sm:$0xf] %v1391_v16  ;;  %v1399_v19 = vld [vmem:[%s11658_s9 + $0x784] sm:$0xf]  ;;  %1394 = vst [vmem:[#allocation2 + $0x77c] sm:$0xff] %v1393_v17  }
 0x179   : > { %1398 = vst [vmem:[#allocation2 + $0x784] sm:$0xf] %v1397_v18  ;;  %1400 = vst [vmem:[#allocation2 + $0x788] sm:$0xf] %v1399_v19  ;;  %v1401_v20 = vld [vmem:[%s11658_s9 + $0x7c4] sm:$0xf] }
 0x17a   : > { %v1403_v21 = vld [vmem:[%s11658_s9 + $0x788] sm:$0xf]  ;;  %1402 = vst [vmem:[#allocation2 + $0x78c] sm:$0xf] %v1401_v20  ;;  %v1407_v23 = vld [vmem:[%s11658_s9 + $0x78c] sm:$0xf] }
 0x17b   : > { %v1405_v22 = vld [vmem:[%s11658_s9 + $0x7c8] sm:$0xf]  ;;  %1404 = vst [vmem:[#allocation2 + $0x790] sm:$0xf] %v1403_v21  ;;  %v1409_v24 = vld [vmem:[%s11658_s9 + $0x7cc] sm:$0xf] }
 0x17c   : > { %1406 = vst [vmem:[#allocation2 + $0x794] sm:$0xf] %v1405_v22  ;;  %v1411_v25 = vld [vmem:[%s11658_s9 + $0x790] sm:$0xf]  ;;  %1408 = vst [vmem:[#allocation2 + $0x798] sm:$0xf] %v1407_v23 }
 0x17d   : > { %1410 = vst [vmem:[#allocation2 + $0x79c] sm:$0xf] %v1409_v24  ;;  %1412 = vst [vmem:[#allocation2 + $0x7a0] sm:$0xf] %v1411_v25  ;;  %v1413_v26 = vld [vmem:[%s11658_s9 + $0x7d0] sm:$0xf] }
 0x17e   : > { %v1415_v27 = vld [vmem:[%s11658_s9 + $0x794] sm:$0xf]  ;;  %1414 = vst [vmem:[#allocation2 + $0x7a4] sm:$0xf] %v1413_v26  ;;  %v1419_v29 = vld [vmem:[%s11658_s9 + $0x798] sm:$0xf] }
 0x17f   : > { %v1417_v28 = vld [vmem:[%s11658_s9 + $0x7d4] sm:$0xf]  ;;  %1416 = vst [vmem:[#allocation2 + $0x7a8] sm:$0xf] %v1415_v27  ;;  %v1421_v30 = vld [vmem:[%s11658_s9 + $0x7d8] sm:$0xf] }
 0x180   : > { %1418 = vst [vmem:[#allocation2 + $0x7ac] sm:$0xf] %v1417_v28  ;;  %v1423_v31 = vld [vmem:[%s11658_s9 + $0x79c] sm:$0xf]  ;;  %1420 = vst [vmem:[#allocation2 + $0x7b0] sm:$0xf] %v1419_v29 }
 0x181   : > { %1422 = vst [vmem:[#allocation2 + $0x7b4] sm:$0xf] %v1421_v30  ;;  %1424 = vst [vmem:[#allocation2 + $0x7b8] sm:$0xf] %v1423_v31  ;;  %v1425_v32 = vld [vmem:[%s11658_s9 + $0x7dc] sm:$0xf] }
 0x182   : > { %v1427_v33 = vld [vmem:[%s11658_s9 + $0x7a0] sm:$0xf]  ;;  %1426 = vst [vmem:[#allocation2 + $0x7bc] sm:$0xf] %v1425_v32  ;;  %v1431_v35 = vld [vmem:[%s11658_s9 + $0x7a4] sm:$0xf] }
 0x183   : > { %v1429_v34 = vld [vmem:[%s11658_s9 + $0x7e0] sm:$0xf]  ;;  %1428 = vst [vmem:[#allocation2 + $0x7c0] sm:$0xf] %v1427_v33  ;;  %v1433_v36 = vld [vmem:[%s11658_s9 + $0x7e4] sm:$0xf] }
 0x184   : > { %1430 = vst [vmem:[#allocation2 + $0x7c4] sm:$0xf] %v1429_v34  ;;  %v1435_v37 = vld [vmem:[%s11658_s9 + $0x7a8] sm:$0xf]  ;;  %1432 = vst [vmem:[#allocation2 + $0x7c8] sm:$0xf] %v1431_v35 }
 0x185   : > { %1434 = vst [vmem:[#allocation2 + $0x7cc] sm:$0xf] %v1433_v36  ;;  %1436 = vst [vmem:[#allocation2 + $0x7d0] sm:$0xf] %v1435_v37  ;;  %v1437_v38 = vld [vmem:[%s11658_s9 + $0x7e8] sm:$0xf] }
 0x186   : > { %v1439_v39 = vld [vmem:[%s11658_s9 + $0x7ac] sm:$0xf]  ;;  %1438 = vst [vmem:[#allocation2 + $0x7d4] sm:$0xf] %v1437_v38  ;;  %v1443_v41 = vld [vmem:[%s11658_s9 + $0x7b0] sm:$0xf] }
 0x187   : > { %v1441_v40 = vld [vmem:[%s11658_s9 + $0x7ec] sm:$0xf]  ;;  %1440 = vst [vmem:[#allocation2 + $0x7d8] sm:$0xf] %v1439_v39  ;;  %v1445_v42 = vld [vmem:[%s11658_s9 + $0x7f0] sm:$0xf] }
 0x188   : > { %1442 = vst [vmem:[#allocation2 + $0x7dc] sm:$0xf] %v1441_v40  ;;  %v1447_v43 = vld [vmem:[%s11658_s9 + $0x7b4] sm:$0xf]  ;;  %1444 = vst [vmem:[#allocation2 + $0x7e0] sm:$0xf] %v1443_v41 }
 0x189   : > { %1446 = vst [vmem:[#allocation2 + $0x7e4] sm:$0xf] %v1445_v42  ;;  %1448 = vst [vmem:[#allocation2 + $0x7e8] sm:$0xf] %v1447_v43  ;;  %v1449_v44 = vld [vmem:[%s11658_s9 + $0x7f4] sm:$0xf] }
 0x18a   : > { %v1451_v45 = vld [vmem:[%s11658_s9 + $0x7b8] sm:$0xf]  ;;  %1450 = vst [vmem:[#allocation2 + $0x7ec] sm:$0xf] %v1449_v44  ;;  %v1455_v47 = vld [vmem:[%s11658_s9 + $0x7bc] sm:$0xf] }
 0x18b   : > { %v1453_v46 = vld [vmem:[%s11658_s9 + $0x7f8] sm:$0xf]  ;;  %1452 = vst [vmem:[#allocation2 + $0x7f0] sm:$0xf] %v1451_v45  ;;  %v1457_v48 = vld [vmem:[%s11658_s9 + $0x7fc] sm:$0xf] }
 0x18c   : > { %1454 = vst [vmem:[#allocation2 + $0x7f4] sm:$0xf] %v1453_v46  ;;  %1456 = vst [vmem:[#allocation2 + $0x7f8] sm:$0xf] %v1455_v47 }
 0x18d   : > { %1458 = vst [vmem:[#allocation2 + $0x7fc] sm:$0xf] %v1457_v48 }
 0x18e   : > { %4594 = vsyncadd [#allocation4], 32768  ;;  %v4628_v49 = vld [vmem:[%s11660_s11] sm:$0xff]  ;;  %v4630_v50 = vld [vmem:[%s11660_s11 + $0x8] sm:$0xff] }
 0x18f   : > { %4629 = vst [vmem:[#allocation3] sm:$0xff] %v4628_v49  ;;  %4631 = vst [vmem:[#allocation3 + $0x8] sm:$0xff] %v4630_v50  ;;  %v4632_v51 = vld [vmem:[%s11660_s11 + $0x10] sm:$0xff]  ;;  %v4634_v52 = vld [vmem:[%s11660_s11 + $0x18] sm:$0xff] }
 0x190   : > { %v4636_v53 = vld [vmem:[%s11660_s11 + $0x20] sm:$0xff]  ;;  %4633 = vst [vmem:[#allocation3 + $0x10] sm:$0xff] %v4632_v51  ;;  %4635 = vst [vmem:[#allocation3 + $0x18] sm:$0xff] %v4634_v52  ;;  %v4638_v54 = vld [vmem:[%s11660_s11 + $0x28] sm:$0xff] }
 0x191   : > { %4637 = vst [vmem:[#allocation3 + $0x20] sm:$0xff] %v4636_v53  ;;  %v4640_v55 = vld [vmem:[%s11660_s11 + $0x30] sm:$0xff]  ;;  %v4642_v56 = vld [vmem:[%s11660_s11 + $0x38] sm:$0xff]  ;;  %4639 = vst [vmem:[#allocation3 + $0x28] sm:$0xff] %v4638_v54 }
 0x192   : > { %4641 = vst [vmem:[#allocation3 + $0x30] sm:$0xff] %v4640_v55  ;;  %4643 = vst [vmem:[#allocation3 + $0x38] sm:$0xff] %v4642_v56  ;;  %v4644_v57 = vld [vmem:[%s11660_s11 + $0x40] sm:$0xff]  ;;  %v4646_v58 = vld [vmem:[%s11660_s11 + $0x48] sm:$0xff] }
 0x193   : > { %v4648_v59 = vld [vmem:[%s11660_s11 + $0x50] sm:$0xff]  ;;  %4645 = vst [vmem:[#allocation3 + $0x40] sm:$0xff] %v4644_v57  ;;  %4647 = vst [vmem:[#allocation3 + $0x48] sm:$0xff] %v4646_v58  ;;  %v4650_v60 = vld [vmem:[%s11660_s11 + $0x58] sm:$0xff] }
 0x194   : > { %4649 = vst [vmem:[#allocation3 + $0x50] sm:$0xff] %v4648_v59  ;;  %v4652_v61 = vld [vmem:[%s11660_s11 + $0x60] sm:$0xff]  ;;  %v4654_v62 = vld [vmem:[%s11660_s11 + $0x68] sm:$0xff]  ;;  %4651 = vst [vmem:[#allocation3 + $0x58] sm:$0xff] %v4650_v60 }
 0x195   : > { %4653 = vst [vmem:[#allocation3 + $0x60] sm:$0xff] %v4652_v61  ;;  %4655 = vst [vmem:[#allocation3 + $0x68] sm:$0xff] %v4654_v62  ;;  %v4656_v63 = vld [vmem:[%s11660_s11 + $0x70] sm:$0xff]  ;;  %v4658_v0 = vld [vmem:[%s11660_s11 + $0x78] sm:$0xff] }
 0x196   : > { %v4660_v1 = vld [vmem:[%s11660_s11 + $0x80] sm:$0xff]  ;;  %4657 = vst [vmem:[#allocation3 + $0x70] sm:$0xff] %v4656_v63  ;;  %4659 = vst [vmem:[#allocation3 + $0x78] sm:$0xff] %v4658_v0  ;;  %v4662_v2 = vld [vmem:[%s11660_s11 + $0x88] sm:$0xff] }
 0x197   : > { %4661 = vst [vmem:[#allocation3 + $0x80] sm:$0xff] %v4660_v1  ;;  %v4664_v3 = vld [vmem:[%s11660_s11 + $0x90] sm:$0xff]  ;;  %v4666_v4 = vld [vmem:[%s11660_s11 + $0x98] sm:$0xff]  ;;  %4663 = vst [vmem:[#allocation3 + $0x88] sm:$0xff] %v4662_v2 }
 0x198   : > { %4665 = vst [vmem:[#allocation3 + $0x90] sm:$0xff] %v4664_v3  ;;  %4667 = vst [vmem:[#allocation3 + $0x98] sm:$0xff] %v4666_v4  ;;  %v4668_v5 = vld [vmem:[%s11660_s11 + $0xa0] sm:$0xff]  ;;  %v4670_v6 = vld [vmem:[%s11660_s11 + $0xa8] sm:$0xff] }
 0x199   : > { %v4672_v7 = vld [vmem:[%s11660_s11 + $0xb0] sm:$0xff]  ;;  %4669 = vst [vmem:[#allocation3 + $0xa0] sm:$0xff] %v4668_v5  ;;  %4671 = vst [vmem:[#allocation3 + $0xa8] sm:$0xff] %v4670_v6  ;;  %v4674_v8 = vld [vmem:[%s11660_s11 + $0xb8] sm:$0xff] }
 0x19a   : > { %4673 = vst [vmem:[#allocation3 + $0xb0] sm:$0xff] %v4672_v7  ;;  %v4676_v9 = vld [vmem:[%s11660_s11 + $0xc0] sm:$0xff]  ;;  %v4678_v10 = vld [vmem:[%s11660_s11 + $0xc8] sm:$0xff]  ;;  %4675 = vst [vmem:[#allocation3 + $0xb8] sm:$0xff] %v4674_v8 }
 0x19b   : > { %4677 = vst [vmem:[#allocation3 + $0xc0] sm:$0xff] %v4676_v9  ;;  %4679 = vst [vmem:[#allocation3 + $0xc8] sm:$0xff] %v4678_v10  ;;  %v4680_v11 = vld [vmem:[%s11660_s11 + $0xd0] sm:$0xff]  ;;  %v4682_v12 = vld [vmem:[%s11660_s11 + $0xd8] sm:$0xff] }
 0x19c   : > { %v4684_v13 = vld [vmem:[%s11660_s11 + $0xe0] sm:$0xff]  ;;  %4681 = vst [vmem:[#allocation3 + $0xd0] sm:$0xff] %v4680_v11  ;;  %4683 = vst [vmem:[#allocation3 + $0xd8] sm:$0xff] %v4682_v12  ;;  %v4686_v14 = vld [vmem:[%s11660_s11 + $0xe8] sm:$0xff] }
 0x19d   : > { %4685 = vst [vmem:[#allocation3 + $0xe0] sm:$0xff] %v4684_v13  ;;  %v4688_v15 = vld [vmem:[%s11660_s11 + $0xf0] sm:$0xff]  ;;  %v4690_v16 = vld [vmem:[%s11660_s11 + $0xf8] sm:$0xff]  ;;  %4687 = vst [vmem:[#allocation3 + $0xe8] sm:$0xff] %v4686_v14 }
 0x19e   : > { %4689 = vst [vmem:[#allocation3 + $0xf0] sm:$0xff] %v4688_v15  ;;  %4691 = vst [vmem:[#allocation3 + $0xf8] sm:$0xff] %v4690_v16  ;;  %v4692_v17 = vld [vmem:[%s11660_s11 + $0x100] sm:$0xff]  ;;  %v4694_v18 = vld [vmem:[%s11660_s11 + $0x108] sm:$0xff] }
 0x19f   : > { %v4696_v19 = vld [vmem:[%s11660_s11 + $0x110] sm:$0xff]  ;;  %4693 = vst [vmem:[#allocation3 + $0x100] sm:$0xff] %v4692_v17  ;;  %4695 = vst [vmem:[#allocation3 + $0x108] sm:$0xff] %v4694_v18  ;;  %v4698_v20 = vld [vmem:[%s11660_s11 + $0x118] sm:$0xff] }
 0x1a0   : > { %4697 = vst [vmem:[#allocation3 + $0x110] sm:$0xff] %v4696_v19  ;;  %v4700_v21 = vld [vmem:[%s11660_s11 + $0x120] sm:$0xff]  ;;  %v4702_v22 = vld [vmem:[%s11660_s11 + $0x128] sm:$0xff]  ;;  %4699 = vst [vmem:[#allocation3 + $0x118] sm:$0xff] %v4698_v20 }
 0x1a1   : > { %4701 = vst [vmem:[#allocation3 + $0x120] sm:$0xff] %v4700_v21  ;;  %4703 = vst [vmem:[#allocation3 + $0x128] sm:$0xff] %v4702_v22  ;;  %v4704_v23 = vld [vmem:[%s11660_s11 + $0x130] sm:$0xff]  ;;  %v4706_v24 = vld [vmem:[%s11660_s11 + $0x138] sm:$0xff] }
 0x1a2   : > { %v4708_v25 = vld [vmem:[%s11660_s11 + $0x140] sm:$0xff]  ;;  %4705 = vst [vmem:[#allocation3 + $0x130] sm:$0xff] %v4704_v23  ;;  %4707 = vst [vmem:[#allocation3 + $0x138] sm:$0xff] %v4706_v24  ;;  %v4710_v26 = vld [vmem:[%s11660_s11 + $0x148] sm:$0xff] }
 0x1a3   : > { %4709 = vst [vmem:[#allocation3 + $0x140] sm:$0xff] %v4708_v25  ;;  %v4712_v27 = vld [vmem:[%s11660_s11 + $0x150] sm:$0xff]  ;;  %v4714_v28 = vld [vmem:[%s11660_s11 + $0x158] sm:$0xff]  ;;  %4711 = vst [vmem:[#allocation3 + $0x148] sm:$0xff] %v4710_v26 }
 0x1a4   : > { %4713 = vst [vmem:[#allocation3 + $0x150] sm:$0xff] %v4712_v27  ;;  %4715 = vst [vmem:[#allocation3 + $0x158] sm:$0xff] %v4714_v28  ;;  %v4716_v29 = vld [vmem:[%s11660_s11 + $0x160] sm:$0xff]  ;;  %v4718_v30 = vld [vmem:[%s11660_s11 + $0x168] sm:$0xff] }
 0x1a5   : > { %v4720_v31 = vld [vmem:[%s11660_s11 + $0x170] sm:$0xff]  ;;  %4717 = vst [vmem:[#allocation3 + $0x160] sm:$0xff] %v4716_v29  ;;  %4719 = vst [vmem:[#allocation3 + $0x168] sm:$0xff] %v4718_v30  ;;  %v4722_v32 = vld [vmem:[%s11660_s11 + $0x178] sm:$0xff] }
 0x1a6   : > { %4721 = vst [vmem:[#allocation3 + $0x170] sm:$0xff] %v4720_v31  ;;  %v4724_v33 = vld [vmem:[%s11660_s11 + $0x180] sm:$0xff]  ;;  %v4726_v34 = vld [vmem:[%s11660_s11 + $0x188] sm:$0xff]  ;;  %4723 = vst [vmem:[#allocation3 + $0x178] sm:$0xff] %v4722_v32 }
 0x1a7   : > { %4725 = vst [vmem:[#allocation3 + $0x180] sm:$0xff] %v4724_v33  ;;  %4727 = vst [vmem:[#allocation3 + $0x188] sm:$0xff] %v4726_v34  ;;  %v4728_v35 = vld [vmem:[%s11660_s11 + $0x190] sm:$0xff]  ;;  %v4730_v36 = vld [vmem:[%s11660_s11 + $0x198] sm:$0xff] }
 0x1a8   : > { %v4732_v37 = vld [vmem:[%s11660_s11 + $0x1a0] sm:$0xff]  ;;  %4729 = vst [vmem:[#allocation3 + $0x190] sm:$0xff] %v4728_v35  ;;  %4731 = vst [vmem:[#allocation3 + $0x198] sm:$0xff] %v4730_v36  ;;  %v4734_v38 = vld [vmem:[%s11660_s11 + $0x1a8] sm:$0xff] }
 0x1a9   : > { %4733 = vst [vmem:[#allocation3 + $0x1a0] sm:$0xff] %v4732_v37  ;;  %v4736_v39 = vld [vmem:[%s11660_s11 + $0x1b0] sm:$0xff]  ;;  %v4738_v40 = vld [vmem:[%s11660_s11 + $0x1b8] sm:$0xff]  ;;  %4735 = vst [vmem:[#allocation3 + $0x1a8] sm:$0xff] %v4734_v38 }
 0x1aa   : > { %4737 = vst [vmem:[#allocation3 + $0x1b0] sm:$0xff] %v4736_v39  ;;  %4739 = vst [vmem:[#allocation3 + $0x1b8] sm:$0xff] %v4738_v40  ;;  %v4740_v41 = vld [vmem:[%s11660_s11 + $0x1c0] sm:$0xff]  ;;  %v4742_v42 = vld [vmem:[%s11660_s11 + $0x1c8] sm:$0xff] }
 0x1ab   : > { %v4744_v43 = vld [vmem:[%s11660_s11 + $0x1d0] sm:$0xff]  ;;  %4741 = vst [vmem:[#allocation3 + $0x1c0] sm:$0xff] %v4740_v41  ;;  %4743 = vst [vmem:[#allocation3 + $0x1c8] sm:$0xff] %v4742_v42  ;;  %v4746_v44 = vld [vmem:[%s11660_s11 + $0x1d8] sm:$0xff] }
 0x1ac   : > { %4745 = vst [vmem:[#allocation3 + $0x1d0] sm:$0xff] %v4744_v43  ;;  %v4748_v45 = vld [vmem:[%s11660_s11 + $0x1e0] sm:$0xff]  ;;  %v4750_v46 = vld [vmem:[%s11660_s11 + $0x1e8] sm:$0xff]  ;;  %4747 = vst [vmem:[#allocation3 + $0x1d8] sm:$0xff] %v4746_v44 }
 0x1ad   : > { %4749 = vst [vmem:[#allocation3 + $0x1e0] sm:$0xff] %v4748_v45  ;;  %4751 = vst [vmem:[#allocation3 + $0x1e8] sm:$0xff] %v4750_v46  ;;  %v4752_v47 = vld [vmem:[%s11660_s11 + $0x1f0] sm:$0xff]  ;;  %v4754_v48 = vld [vmem:[%s11660_s11 + $0x1f8] sm:$0xff] }
 0x1ae   : > { %v4756_v49 = vld [vmem:[%s11660_s11 + $0x200] sm:$0xff]  ;;  %4753 = vst [vmem:[#allocation3 + $0x1f0] sm:$0xff] %v4752_v47  ;;  %4755 = vst [vmem:[#allocation3 + $0x1f8] sm:$0xff] %v4754_v48  ;;  %v4758_v50 = vld [vmem:[%s11660_s11 + $0x208] sm:$0xff] }
 0x1af   : > { %4757 = vst [vmem:[#allocation3 + $0x200] sm:$0xff] %v4756_v49  ;;  %v4760_v51 = vld [vmem:[%s11660_s11 + $0x210] sm:$0xff]  ;;  %v4762_v52 = vld [vmem:[%s11660_s11 + $0x218] sm:$0xff]  ;;  %4759 = vst [vmem:[#allocation3 + $0x208] sm:$0xff] %v4758_v50 }
 0x1b0   : > { %4761 = vst [vmem:[#allocation3 + $0x210] sm:$0xff] %v4760_v51  ;;  %4763 = vst [vmem:[#allocation3 + $0x218] sm:$0xff] %v4762_v52  ;;  %v4764_v53 = vld [vmem:[%s11660_s11 + $0x220] sm:$0xff]  ;;  %v4766_v54 = vld [vmem:[%s11660_s11 + $0x228] sm:$0xff] }
 0x1b1   : > { %v4768_v55 = vld [vmem:[%s11660_s11 + $0x230] sm:$0xff]  ;;  %4765 = vst [vmem:[#allocation3 + $0x220] sm:$0xff] %v4764_v53  ;;  %4767 = vst [vmem:[#allocation3 + $0x228] sm:$0xff] %v4766_v54  ;;  %v4770_v56 = vld [vmem:[%s11660_s11 + $0x238] sm:$0xff] }
 0x1b2   : > { %4769 = vst [vmem:[#allocation3 + $0x230] sm:$0xff] %v4768_v55  ;;  %v4772_v57 = vld [vmem:[%s11660_s11 + $0x240] sm:$0xff]  ;;  %v4774_v58 = vld [vmem:[%s11660_s11 + $0x248] sm:$0xff]  ;;  %4771 = vst [vmem:[#allocation3 + $0x238] sm:$0xff] %v4770_v56 }
 0x1b3   : > { %4773 = vst [vmem:[#allocation3 + $0x240] sm:$0xff] %v4772_v57  ;;  %4775 = vst [vmem:[#allocation3 + $0x248] sm:$0xff] %v4774_v58  ;;  %v4776_v59 = vld [vmem:[%s11660_s11 + $0x250] sm:$0xff]  ;;  %v4778_v60 = vld [vmem:[%s11660_s11 + $0x258] sm:$0xff] }
 0x1b4   : > { %v4780_v61 = vld [vmem:[%s11660_s11 + $0x260] sm:$0xff]  ;;  %4777 = vst [vmem:[#allocation3 + $0x250] sm:$0xff] %v4776_v59  ;;  %4779 = vst [vmem:[#allocation3 + $0x258] sm:$0xff] %v4778_v60  ;;  %v4782_v62 = vld [vmem:[%s11660_s11 + $0x268] sm:$0xff] }
 0x1b5   : > { %4781 = vst [vmem:[#allocation3 + $0x260] sm:$0xff] %v4780_v61  ;;  %v4784_v63 = vld [vmem:[%s11660_s11 + $0x270] sm:$0xff]  ;;  %v4786_v0 = vld [vmem:[%s11660_s11 + $0x278] sm:$0xff]  ;;  %4783 = vst [vmem:[#allocation3 + $0x268] sm:$0xff] %v4782_v62 }
 0x1b6   : > { %4785 = vst [vmem:[#allocation3 + $0x270] sm:$0xff] %v4784_v63  ;;  %4787 = vst [vmem:[#allocation3 + $0x278] sm:$0xff] %v4786_v0  ;;  %v4788_v1 = vld [vmem:[%s11660_s11 + $0x280] sm:$0xff]  ;;  %v4790_v2 = vld [vmem:[%s11660_s11 + $0x288] sm:$0xff] }
 0x1b7   : > { %v4792_v3 = vld [vmem:[%s11660_s11 + $0x290] sm:$0xff]  ;;  %4789 = vst [vmem:[#allocation3 + $0x280] sm:$0xff] %v4788_v1  ;;  %4791 = vst [vmem:[#allocation3 + $0x288] sm:$0xff] %v4790_v2  ;;  %v4794_v4 = vld [vmem:[%s11660_s11 + $0x298] sm:$0xff] }
 0x1b8   : > { %4793 = vst [vmem:[#allocation3 + $0x290] sm:$0xff] %v4792_v3  ;;  %v4796_v5 = vld [vmem:[%s11660_s11 + $0x2a0] sm:$0xff]  ;;  %v4798_v6 = vld [vmem:[%s11660_s11 + $0x2a8] sm:$0xff]  ;;  %4795 = vst [vmem:[#allocation3 + $0x298] sm:$0xff] %v4794_v4 }
 0x1b9   : > { %4797 = vst [vmem:[#allocation3 + $0x2a0] sm:$0xff] %v4796_v5  ;;  %4799 = vst [vmem:[#allocation3 + $0x2a8] sm:$0xff] %v4798_v6  ;;  %v4800_v7 = vld [vmem:[%s11660_s11 + $0x2b0] sm:$0xff]  ;;  %v4802_v8 = vld [vmem:[%s11660_s11 + $0x2b8] sm:$0xff] }
 0x1ba   : > { %v4804_v9 = vld [vmem:[%s11660_s11 + $0x2c0] sm:$0xff]  ;;  %4801 = vst [vmem:[#allocation3 + $0x2b0] sm:$0xff] %v4800_v7  ;;  %4803 = vst [vmem:[#allocation3 + $0x2b8] sm:$0xff] %v4802_v8  ;;  %v4806_v10 = vld [vmem:[%s11660_s11 + $0x2c8] sm:$0xff] }
 0x1bb   : > { %4805 = vst [vmem:[#allocation3 + $0x2c0] sm:$0xff] %v4804_v9  ;;  %v4808_v11 = vld [vmem:[%s11660_s11 + $0x2d0] sm:$0xff]  ;;  %v4810_v12 = vld [vmem:[%s11660_s11 + $0x2d8] sm:$0xff]  ;;  %4807 = vst [vmem:[#allocation3 + $0x2c8] sm:$0xff] %v4806_v10 }
 0x1bc   : > { %4809 = vst [vmem:[#allocation3 + $0x2d0] sm:$0xff] %v4808_v11  ;;  %4811 = vst [vmem:[#allocation3 + $0x2d8] sm:$0xff] %v4810_v12  ;;  %v4812_v13 = vld [vmem:[%s11660_s11 + $0x2e0] sm:$0xff]  ;;  %v4814_v14 = vld [vmem:[%s11660_s11 + $0x2e8] sm:$0xff] }
 0x1bd   : > { %v4816_v15 = vld [vmem:[%s11660_s11 + $0x2f0] sm:$0xff]  ;;  %4813 = vst [vmem:[#allocation3 + $0x2e0] sm:$0xff] %v4812_v13  ;;  %4815 = vst [vmem:[#allocation3 + $0x2e8] sm:$0xff] %v4814_v14  ;;  %v4818_v16 = vld [vmem:[%s11660_s11 + $0x2f8] sm:$0xff] }
 0x1be   : > { %4817 = vst [vmem:[#allocation3 + $0x2f0] sm:$0xff] %v4816_v15  ;;  %v4820_v17 = vld [vmem:[%s11660_s11 + $0x300] sm:$0xff]  ;;  %v4822_v18 = vld [vmem:[%s11660_s11 + $0x308] sm:$0xff]  ;;  %4819 = vst [vmem:[#allocation3 + $0x2f8] sm:$0xff] %v4818_v16 }
 0x1bf   : > { %4821 = vst [vmem:[#allocation3 + $0x300] sm:$0xff] %v4820_v17  ;;  %4823 = vst [vmem:[#allocation3 + $0x308] sm:$0xff] %v4822_v18  ;;  %v4824_v19 = vld [vmem:[%s11660_s11 + $0x310] sm:$0xff]  ;;  %v4826_v20 = vld [vmem:[%s11660_s11 + $0x318] sm:$0xff] }
 0x1c0   : > { %v4828_v21 = vld [vmem:[%s11660_s11 + $0x320] sm:$0xff]  ;;  %4825 = vst [vmem:[#allocation3 + $0x310] sm:$0xff] %v4824_v19  ;;  %4827 = vst [vmem:[#allocation3 + $0x318] sm:$0xff] %v4826_v20  ;;  %v4830_v22 = vld [vmem:[%s11660_s11 + $0x328] sm:$0xff] }
 0x1c1   : > { %4829 = vst [vmem:[#allocation3 + $0x320] sm:$0xff] %v4828_v21  ;;  %v4832_v23 = vld [vmem:[%s11660_s11 + $0x330] sm:$0xff]  ;;  %v4834_v24 = vld [vmem:[%s11660_s11 + $0x338] sm:$0xff]  ;;  %4831 = vst [vmem:[#allocation3 + $0x328] sm:$0xff] %v4830_v22 }
 0x1c2   : > { %4833 = vst [vmem:[#allocation3 + $0x330] sm:$0xff] %v4832_v23  ;;  %4835 = vst [vmem:[#allocation3 + $0x338] sm:$0xff] %v4834_v24  ;;  %v4836_v25 = vld [vmem:[%s11660_s11 + $0x340] sm:$0xff]  ;;  %v4838_v26 = vld [vmem:[%s11660_s11 + $0x348] sm:$0xff] }
 0x1c3   : > { %v4840_v27 = vld [vmem:[%s11660_s11 + $0x350] sm:$0xff]  ;;  %4837 = vst [vmem:[#allocation3 + $0x340] sm:$0xff] %v4836_v25  ;;  %4839 = vst [vmem:[#allocation3 + $0x348] sm:$0xff] %v4838_v26  ;;  %v4842_v28 = vld [vmem:[%s11660_s11 + $0x358] sm:$0xff] }
 0x1c4   : > { %4841 = vst [vmem:[#allocation3 + $0x350] sm:$0xff] %v4840_v27  ;;  %v4844_v29 = vld [vmem:[%s11660_s11 + $0x360] sm:$0xff]  ;;  %v4846_v30 = vld [vmem:[%s11660_s11 + $0x368] sm:$0xff]  ;;  %4843 = vst [vmem:[#allocation3 + $0x358] sm:$0xff] %v4842_v28 }
 0x1c5   : > { %4845 = vst [vmem:[#allocation3 + $0x360] sm:$0xff] %v4844_v29  ;;  %4847 = vst [vmem:[#allocation3 + $0x368] sm:$0xff] %v4846_v30  ;;  %v4848_v31 = vld [vmem:[%s11660_s11 + $0x370] sm:$0xff]  ;;  %v4850_v32 = vld [vmem:[%s11660_s11 + $0x378] sm:$0xff] }
 0x1c6   : > { %v4852_v33 = vld [vmem:[%s11660_s11 + $0x380] sm:$0xff]  ;;  %4849 = vst [vmem:[#allocation3 + $0x370] sm:$0xff] %v4848_v31  ;;  %4851 = vst [vmem:[#allocation3 + $0x378] sm:$0xff] %v4850_v32  ;;  %v4854_v34 = vld [vmem:[%s11660_s11 + $0x388] sm:$0xff] }
 0x1c7   : > { %4853 = vst [vmem:[#allocation3 + $0x380] sm:$0xff] %v4852_v33  ;;  %v4856_v35 = vld [vmem:[%s11660_s11 + $0x390] sm:$0xff]  ;;  %v4858_v36 = vld [vmem:[%s11660_s11 + $0x398] sm:$0xff]  ;;  %4855 = vst [vmem:[#allocation3 + $0x388] sm:$0xff] %v4854_v34 }
 0x1c8   : > { %4857 = vst [vmem:[#allocation3 + $0x390] sm:$0xff] %v4856_v35  ;;  %4859 = vst [vmem:[#allocation3 + $0x398] sm:$0xff] %v4858_v36  ;;  %v4860_v37 = vld [vmem:[%s11660_s11 + $0x3a0] sm:$0xff]  ;;  %v4862_v38 = vld [vmem:[%s11660_s11 + $0x3a8] sm:$0xff] }
 0x1c9   : > { %v4864_v39 = vld [vmem:[%s11660_s11 + $0x3b0] sm:$0xff]  ;;  %4861 = vst [vmem:[#allocation3 + $0x3a0] sm:$0xff] %v4860_v37  ;;  %4863 = vst [vmem:[#allocation3 + $0x3a8] sm:$0xff] %v4862_v38  ;;  %v4866_v40 = vld [vmem:[%s11660_s11 + $0x3b8] sm:$0xff] }
 0x1ca   : > { %4865 = vst [vmem:[#allocation3 + $0x3b0] sm:$0xff] %v4864_v39  ;;  %v4868_v41 = vld [vmem:[%s11660_s11 + $0x3c0] sm:$0xff]  ;;  %v4870_v42 = vld [vmem:[%s11660_s11 + $0x3c8] sm:$0xff]  ;;  %4867 = vst [vmem:[#allocation3 + $0x3b8] sm:$0xff] %v4866_v40 }
 0x1cb   : > { %4869 = vst [vmem:[#allocation3 + $0x3c0] sm:$0xff] %v4868_v41  ;;  %4871 = vst [vmem:[#allocation3 + $0x3c8] sm:$0xff] %v4870_v42  ;;  %v4872_v43 = vld [vmem:[%s11660_s11 + $0x3d0] sm:$0xff]  ;;  %v4874_v44 = vld [vmem:[%s11660_s11 + $0x3d8] sm:$0xff] }
 0x1cc   : > { %v4876_v45 = vld [vmem:[%s11660_s11 + $0x3e0] sm:$0xff]  ;;  %4873 = vst [vmem:[#allocation3 + $0x3d0] sm:$0xff] %v4872_v43  ;;  %4875 = vst [vmem:[#allocation3 + $0x3d8] sm:$0xff] %v4874_v44  ;;  %v4878_v46 = vld [vmem:[%s11660_s11 + $0x3e8] sm:$0xff] }
 0x1cd   : > { %4877 = vst [vmem:[#allocation3 + $0x3e0] sm:$0xff] %v4876_v45  ;;  %v4880_v47 = vld [vmem:[%s11660_s11 + $0x3f0] sm:$0xff]  ;;  %v4882_v48 = vld [vmem:[%s11660_s11 + $0x3f8] sm:$0xff]  ;;  %4879 = vst [vmem:[#allocation3 + $0x3e8] sm:$0xff] %v4878_v46 }
 0x1ce   : > { %4881 = vst [vmem:[#allocation3 + $0x3f0] sm:$0xff] %v4880_v47  ;;  %4883 = vst [vmem:[#allocation3 + $0x3f8] sm:$0xff] %v4882_v48 }
 0x1cf   : > { %4891 = vsyncadd [#allocation4 + $0x1], 16384 }
 0x1d0 PF: > { %v8250_v49 = vld [vmem:[%s11650_s1 + $0x4] sm:$0xf]  ;;  %vm4973_vm0 = vcmask 1042432   ;;  %vm4974_vm1 = vcmask 1043456   ;;  %v4896_v51 = vlaneseq  ;;  %v9127_v52 = vmov 65535   ;;  %v11182_v54 = vld [vmem:[%s9296_s19 + $0x8] sm:$0xff] }
 0x1d1   : > { %v11179_v50 = vld [vmem:[%s9296_s19] sm:$0xff]  ;;  %v4975_v53 = vsel %vm4973_vm0, 4294967295, %v9127_v52  ;;  %v11185_v55 = vld [vmem:[%s9296_s19 + $0x18] sm:$0xff]  ;;  %v11189_v57 = vld [vmem:[%s9296_s19 + $0x10] sm:$0xff]  ;;  %v4934_v60 = vrot.slane %v11182_v54, 7  ;;  %v4902_v4 = vrot.slane %v11182_v54, 6 }
 0x1d2   : > { %v4933_v56 = vrot.slane %v11179_v50, 7  ;;  %v11191_v58 = vsel %vm4974_vm1, %v4975_v53, 0  ;;  %v11193_v59 = vshrl.u32 %v4896_v51, 7  ;;  %v4936_v61 = vrot.slane %v11185_v55, 7  ;;  %v4932_v62 = vld [vmem:[%s11650_s1] sm:$0xf] }
 0x1d3   : > { %v4978_v63 = vand.u32 %v8250_v49, %v11191_v58  ;;  %v5036_v0 = vand.u32 %v11191_v58, %v4932_v62  ;;  %v4935_v1 = vrot.slane %v11189_v57, 7  ;;  %v4901_v2 = vrot.slane %v11179_v50, 6  ;;  %v8255_v6 = vld [vmem:[%s11650_s1 + $0x8] sm:$0xf]  ;;  %v8258_v31 = vld [vmem:[%s11650_s1 + $0xc] sm:$0xf] }
 0x1d4   : > { %vm4937_vm2 = vcmp.lt.s32.totalorder %v11193_v59, 1  ;;  %v4942_v3 = vadd.s32 4294967295, %v11193_v59  ;;  %v4904_v5 = vrot.slane %v11185_v55, 6  ;;  %vm4966_vm4 = vcmask 56320   ;;  %v8261_v40 = vld [vmem:[%s11650_s1 + $0x10] sm:$0xf] }
 0x1d5   : > { %8701 = vmatprep.subr.bf16.mxu0 %v4978_v63  ;;  %v4940_v7 = vsel %vm4937_vm2, %v4933_v56, %v4934_v60  ;;  %v4941_v8 = vsel %vm4937_vm2, %v4936_v61, %v4933_v56  ;;  %v4938_v9 = vsel %vm4937_vm2, %v4935_v1, %v4936_v61  ;;  %v4939_v10 = vsel %vm4937_vm2, %v4934_v60, %v4935_v1  ;;  %v11292_v56 = vld [vmem:[%s11652_s3] sm:$0xff]   ;;  %v8995_v60 = vld [vmem:[%s11654_s5 + $0x50] sm:$0xff]   ;;  %v8996_v61 = vld [vmem:[%s11654_s5 + $0x58] sm:$0xff]   ;;  %p11673_p10 = scmp.eq.s32.totalorder %s9207_s26, 0 }
 0x1d6   : > { %8702 = vmatpush3.bf16.msra.mxu0 %v4978_v63  ;;  %vm4946_vm3 = vcmp.ge.s32.totalorder %v4942_v3, 0  ;;  %vm4905_vm5 = vcmp.lt.s32.totalorder %v11193_v59, 2  ;;  %v11213_v11 = vadd.s32 4294967294, %v11193_v59  ;;  %v4963_v13 = vpack.c.bf16 %v4938_v9, %v4939_v10  ;;  %v8997_v62 = vld [vmem:[%s11654_s5 + $0x60] sm:$0xff]  }
 0x1d7   : > { %v4958_v12 = vsel %vm4946_vm3, %v4941_v8, 0.0  ;;  %8707 = vmatprep.subr.bf16.mxu0 %v5036_v0  ;;  %v4908_v14 = vsel %vm4905_vm5, %v4901_v2, %v4902_v4  ;;  %v4909_v15 = vsel %vm4905_vm5, %v4904_v5, %v4901_v2  ;;  %v5098_v18 = vand.u32 %v8255_v6, %v11191_v58  ;;  %v8264_v63 = vld [vmem:[%s11651_s2] ss:$0 sm:$0xff] }
 0x1d8   : > { %v4962_v16 = vpack.c.bf16 %v4940_v7, %v4958_v12  ;;  %vm4914_vm6 = vcmp.ge.s32.totalorder %v11213_v11, 0  ;;  %v5153_v20 = vrot.slane %v11179_v50, 1  ;;  %v4903_v21 = vrot.slane %v11189_v57, 6 }
 0x1d9   : > { %v4926_v17 = vsel %vm4914_vm6, %v4909_v15, 0.0  ;;  %vm5157_vm7 = vcmp.lt.s32.totalorder %v11193_v59, 7  ;;  %v11230_v22 = vadd.s32 24, %v11193_v59  ;;  %v5156_v23 = vrot.slane %v11185_v55, 1 }
 0x1da   : > { %8703 = vmatprep.mubr.msk.bf16.mxu0 %vm4966_vm4, %v4962_v16  ;;  %v4930_v19 = vpack.c.bf16 %v4908_v14, %v4926_v17  ;;  %v5154_v24 = vrot.slane %v11182_v54, 1  ;;  %v5155_v26 = vrot.slane %v11189_v57, 1  ;;  %v5248_v28 = vrot.slane %v11179_v50, 2 }
 0x1db   : > { %8704 = vmatmul.mubr.msk.bf16.vlgmr.msra.gmra.mrb[0].mxu0 %vm4966_vm4, %v4963_v13  ;;  %v5165_v25 = vadd.s32 1, %v11230_v22  ;;  %v5161_v27 = vsel %vm5157_vm7, %v5156_v23, %v5153_v20  ;;  %v4906_v29 = vsel %vm4905_vm5, %v4903_v21, %v4904_v5  ;;  %v4907_v30 = vsel %vm4905_vm5, %v4902_v4, %v4903_v21 }
 0x1dc   : > { %8708 = vmatpush3.bf16.msra.mxu0 %v5036_v0  ;;  %8709 = vmatprep.mubr.msk.bf16.mxu0 %vm4966_vm4, %v4930_v19  ;;  %v5249_v32 = vrot.slane %v11182_v54, 2  ;;  %v5250_v33 = vrot.slane %v11189_v57, 2  ;;  %v5251_v34 = vrot.slane %v11185_v55, 2  ;;  %v11250_v36 = vadd.s32 2, %v11230_v22 }
 0x1dd   : > { %8713 = vmatprep.subr.bf16.mxu0 %v5098_v18  ;;  %vm5173_vm8 = vcmp.lt.s32.totalorder %v5165_v25, 32  ;;  %v4931_v37 = vpack.c.bf16 %v4906_v29, %v4907_v30  ;;  %v5087_v38 = vpack.c.bf16 %v11182_v54, %v11179_v50  ;;  %v5193_v39 = vand.u32 %v8258_v31, %v11191_v58 }
 0x1de   : > { %v5181_v35 = vsel %vm5173_vm8, %v5161_v27, 0.0  ;;  %v5159_v41 = vsel %vm5157_vm7, %v5154_v24, %v5155_v26  ;;  %v5160_v42 = vsel %vm5157_vm7, %v5153_v20, %v5154_v24  ;;  %vm5252_vm9 = vcmp.lt.s32.totalorder %v11193_v59, 6 }
 0x1df   : > { %v5088_v43 = vpack.c.bf16 %v11185_v55, %v11189_v57  ;;  %v5182_v44 = vpack.c.bf16 %v5159_v41, %v5160_v42  ;;  %v5288_v45 = vand.u32 %v8261_v40, %v11191_v58  ;;  %v5158_v46 = vsel %vm5157_vm7, %v5155_v26, %v5156_v23  ;;  %v8988_v55 = vld [vmem:[%s11652_s3 + $0x8] sm:$0xff]   ;;  %v8993_v57 = vld [vmem:[%s11654_s5 + $0x40] sm:$0xff]  }
 0x1e0   : > { %v5254_v47 = vsel %vm5252_vm9, %v5249_v32, %v5250_v33  ;;  %v5255_v48 = vsel %vm5252_vm9, %v5248_v28, %v5249_v32  ;;  %v5183_v49 = vpack.c.bf16 %v5181_v35, %v5158_v46  ;;  %v5256_v51 = vsel %vm5252_vm9, %v5251_v34, %v5248_v28  ;;  %8731 = vmatprep.subr.bf16.mxu1 %v8988_v55  ;;  %v8994_v58 = vld [vmem:[%s11654_s5 + $0x48] sm:$0xff]  }
 0x1e1   : > { %v5277_v50 = vpack.c.bf16 %v5254_v47, %v5255_v48  ;;  %vm5268_vm10 = vcmp.lt.s32.totalorder %v11250_v36, 32  ;;  %v5253_v52 = vsel %vm5252_vm9, %v5250_v33, %v5251_v34  ;;  %8732 = vmatpush3.bf16.msra.mxu1 %v8988_v55  ;;  %v11314_v3 = vadd.s32 4294967292, %v11193_v59  ;;  %v8990_v48 = vld [vmem:[%s11652_s3 + $0x10] sm:$0xff]   ;;  %v8992_v36 = vld [vmem:[%s11652_s3 + $0x20] sm:$0xff]  }
 0x1e2   : > { %v5276_v53 = vsel %vm5268_vm10, %v5256_v51, 0.0  ;;  %8737 = vmatprep.subr.bf16.mxu1 %v11292_v56  ;;  %v11317_v6 = vadd.s32 4, %v11230_v22  ;;  %vm5370_vm13 = vcmp.lt.s32.totalorder %v11193_v59, 4  ;;  %vm5422_vm0 = vcmask 130048  }
 0x1e3   : > { %v5278_v54 = vpack.c.bf16 %v5276_v53, %v5253_v52  ;;  %vm5379_vm15 = vcmp.ge.s32.totalorder %v11314_v3, 0  ;;  %vm9128_vm7 = vmmov 1   ;;  %v9002_v3 = vld [vmem:[%s11654_s5 + $0x8] sm:$0xff]  }
 0x1e4   : > { %vm5702_vm1 = vcmp.lt.s32.totalorder %v11317_v6, 32  ;;  %vm8313_vm8 = vmpackc.low %vm9128_vm7, %vm5379_vm15  ;;  %v9028_v6 = vld [vmem:[%s11654_s5 + $0x118] sm:$0xff]  }
 0x1e7   : > { %8710 = vmatmul.mubr.msk.bf16.vlgmr.msra.gmra.mrb[0].mxu0 %vm4966_vm4, %v4931_v37 }
 0x1e8   : > { %8714 = vmatpush3.bf16.msra.mxu0 %v5098_v18  ;;  %8715 = vmatprep.mubr.msk.bf16.mxu0 %vm4966_vm4, %v5087_v38 }
 0x1e9   : > { %8719 = vmatprep.subr.bf16.mxu0 %v5193_v39 }
 0x1f3   : > { %8716 = vmatmul.mubr.msk.bf16.vlgmr.msra.gmra.mrb[0].mxu0 %vm4966_vm4, %v5088_v43 }
 0x1f4   : > { %8720 = vmatpush3.bf16.msra.mxu0 %v5193_v39  ;;  %8721 = vmatprep.mubr.msk.bf16.mxu0 %vm4966_vm4, %v5182_v44 }
 0x1f5   : > { %8725 = vmatprep.subr.bf16.mxu0 %v5288_v45 }
 0x1ff   : > { %8722 = vmatmul.mubr.msk.bf16.vlgmr.msra.gmra.mrb[0].mxu0 %vm4966_vm4, %v5183_v49 }
 0x200   : > { %8726 = vmatpush3.bf16.msra.mxu0 %v5288_v45  ;;  %8727 = vmatprep.mubr.msk.bf16.mxu0 %vm4966_vm4, %v5277_v50 }
 0x201   : > { %8761 = vmatprep.subr.bf16.mxu0 %v8993_v57 }
 0x20b   : > { %8728 = vmatmul.mubr.msk.bf16.vlgmr.msra.gmra.mrb[0].mxu0 %vm4966_vm4, %v5278_v54 }
 0x20c   : > { %8762 = vmatpush3.bf16.msra.mxu0 %v8993_v57 }
 0x20d   : > { %8763 = vmatprep.subr.bf16.mxu0 %v8994_v58 }
 0x210   : > { %8764 = vmatpush3.bf16.msra.mxu0 %v8994_v58 }
 0x211   : > { %8765 = vmatprep.subr.bf16.mxu0 %v8995_v60 }
 0x214   : > { %8766 = vmatpush3.bf16.msra.mxu0 %v8995_v60  ;;  %v8991_v60 = vld [vmem:[%s11652_s3 + $0x18] sm:$0xff]  }
 0x215   : > { %8767 = vmatprep.subr.bf16.mxu0 %v8996_v61 }
 0x218   : > { %8768 = vmatpush3.bf16.msra.mxu0 %v8996_v61  ;;  %v8999_v61 = vld [vmem:[%s11654_s5 + $0x70] sm:$0xff]  }
 0x219   : > { %8769 = vmatprep.subr.bf16.mxu0 %v8997_v62 }
 0x21c   : > { %8770 = vmatpush3.bf16.msra.mxu0 %v8997_v62  ;;  %v9000_v62 = vld [vmem:[%s11654_s5 + $0x78] sm:$0xff]  }
 0x2de   : > { %v8729_v0 = vpop.f32.mrb[0].mxu0 }
 0x2df   : > { %v5352_v1 = vadd.f32 %v8729_v0, %v8264_v63  ;;  %v5324_v2 = vpop.f32.mrb[1].mxu0  ;;  %v8288_v0 = vld [vmem:[%s11653_s4] ss:$0 sm:$0xff] }
 0x2e0   : > { %v5350_v4 = vadd.f32 %v8264_v63, %v5324_v2  ;;  %v8730_v5 = vpop.f32.mrb[2].mxu0 }
 0x2e1   : > { %vm5356_vm11 = vcmp.gt.f32.partialorder %v5352_v1, 0.0  ;;  %v5360_v7 = vmul.f32 0.2, %v5352_v1  ;;  %v5353_v8 = vadd.f32 %v8730_v5, %v8264_v63  ;;  %v5327_v9 = vpop.f32.mrb[3].mxu0 }
 0x2e2   : > { %vm5354_vm12 = vcmp.gt.f32.partialorder %v5350_v4, 0.0  ;;  %v5358_v10 = vmul.f32 0.2, %v5350_v4  ;;  %v5351_v12 = vadd.f32 %v8264_v63, %v5327_v9  ;;  %v9001_v63 = vld [vmem:[%s11654_s5] sm:$0xff]  }
 0x2e3   : > { %v5364_v13 = vsel %vm5356_vm11, %v5352_v1, %v5360_v7  ;;  %vm5357_vm14 = vcmp.gt.f32.partialorder %v5353_v8, 0.0  ;;  %v5361_v14 = vmul.f32 0.2, %v5353_v8 }
 0x2e4   : > { %v5368_v15 = vrot.slane %v5364_v13, 4  ;;  %v5362_v16 = vsel %vm5354_vm12, %v5350_v4, %v5358_v10  ;;  %vm5355_vm2 = vcmp.gt.f32.partialorder %v5351_v12, 0.0  ;;  %v5359_v23 = vmul.f32 0.2, %v5351_v12 }
 0x2e5   : > { %v5366_v17 = vrot.slane %v5362_v16, 4  ;;  %v5609_v18 = vrot.slane %v5362_v16, 2  ;;  %v5365_v19 = vsel %vm5357_vm14, %v5353_v8, %v5361_v14  ;;  %v5401_v24 = vrot.slane %v5364_v13, 6 }
 0x2e6   : > { %v5369_v20 = vrot.slane %v5365_v19, 4  ;;  %v5540_v21 = vpack.c.bf16 %v5365_v19, %v5364_v13  ;;  %v5612_v22 = vrot.slane %v5365_v19, 2  ;;  %v5611_v25 = vrot.slane %v5364_v13, 2 }
 0x2e7   : > { %v5399_v26 = vrot.slane %v5362_v16, 6  ;;  %v5402_v27 = vrot.slane %v5365_v19, 6  ;;  %v5363_v29 = vsel %vm5355_vm2, %v5351_v12, %v5359_v23  ;;  %vm6522_vm14 = vcmask 261120  }
 0x2e8   : > { %v5616_v28 = vsel %vm5252_vm9, %v5612_v22, %v5609_v18  ;;  %v5371_v30 = vsel %vm5370_vm13, %v5368_v15, %v5369_v20  ;;  %v5374_v31 = vsel %vm5370_vm13, %v5369_v20, %v5366_v17  ;;  %v5367_v32 = vrot.slane %v5363_v29, 4 }
 0x2e9   : > { %v5610_v33 = vrot.slane %v5363_v29, 2  ;;  %v5400_v34 = vrot.slane %v5363_v29, 6  ;;  %v5406_v35 = vsel %vm4905_vm5, %v5402_v27, %v5399_v26  ;;  %v5403_v38 = vsel %vm4905_vm5, %v5401_v24, %v5402_v27 }
 0x2ea   : > { %v5407_v37 = vsel %vm4914_vm6, %v5406_v35, 0.0  ;;  %v5391_v39 = vsel %vm5379_vm15, %v5374_v31, 0.0  ;;  %v5710_v40 = vsel %vm5702_vm1, %v5374_v31, 0.0  ;;  %v5373_v43 = vsel %vm5370_vm13, %v5366_v17, %v5367_v32 }
 0x2eb   : > { %v5405_v41 = vsel %vm4905_vm5, %v5399_v26, %v5400_v34  ;;  %v5404_v42 = vsel %vm4905_vm5, %v5400_v34, %v5401_v24  ;;  %v5712_v11 = vpack.c.bf16 %v5710_v40, %v5371_v30  ;;  %v5395_v46 = vpack.c.bf16 %v5373_v43, %v5391_v39  ;;  %v9004_v39 = vld [vmem:[%s11654_s5 + $0x18] sm:$0xff]   ;;  %v9005_v40 = vld [vmem:[%s11654_s5 + $0x20] sm:$0xff]  }
 0x2ec   : > { %v5411_v44 = vpack.c.bf16 %v5405_v41, %v5407_v37  ;;  %v5412_v45 = vpack.c.bf16 %v5403_v38, %v5404_v42  ;;  %v5372_v47 = vsel %vm5370_vm13, %v5367_v32, %v5368_v15  ;;  %v5539_v50 = vpack.c.bf16 %v5363_v29, %v5362_v16  ;;  %v9003_v38 = vld [vmem:[%s11654_s5 + $0x10] sm:$0xff]   ;;  %v9006_v41 = vld [vmem:[%s11654_s5 + $0x28] sm:$0xff]  }
 0x2ed   : > { %v5396_v49 = vpack.c.bf16 %v5371_v30, %v5372_v47  ;;  %v5614_v51 = vsel %vm5252_vm9, %v5610_v33, %v5611_v25  ;;  %v5615_v52 = vsel %vm5252_vm9, %v5609_v18, %v5610_v33  ;;  %v5613_v54 = vsel %vm5252_vm9, %v5611_v25, %v5612_v22  ;;  %v9007_v42 = vld [vmem:[%s11654_s5 + $0x30] sm:$0xff]   ;;  %vm8372_vm9 = vmpackc.low %vm5702_vm1, %vm9128_vm7 }
 0x2ee   : > { %8733 = vmatprep.mubr.msk.bf16.mxu1 %vm5422_vm0, %v5411_v44  ;;  %v5621_v53 = vpack.c.bf16 %v5614_v51, %v5615_v52  ;;  %v5620_v55 = vsel %vm5268_vm10, %v5616_v28, 0.0  ;;  %v5711_v57 = vpack.c.bf16 %v5372_v47, %v5373_v43  ;;  %v9129_v35 = vmov 0.0   ;;  %v9008_v43 = vld [vmem:[%s11654_s5 + $0x38] sm:$0xff]   ;;  %v9010_v44 = vld [vmem:[%s11654_s5 + $0x88] sm:$0xff]   ;;  %v9013_v47 = vld [vmem:[%s11654_s5 + $0xa0] sm:$0xff]  }
 0x2ef   : > { %8734 = vmatmul.mubr.msk.bf16.vlgmr.msra.gmra.mrb[0].mxu1 %vm5422_vm0, %v5412_v45  ;;  %v5622_v58 = vpack.c.bf16 %v5620_v55, %v5613_v54  ;;  %v9011_v45 = vld [vmem:[%s11654_s5 + $0x90] sm:$0xff]   ;;  %v9017_v51 = vld [vmem:[%s11654_s5 + $0xc0] sm:$0xff]   ;;  %v9018_v52 = vld [vmem:[%s11654_s5 + $0xc8] sm:$0xff]  }
 0x2f0   : > { %8738 = vmatpush3.bf16.msra.mxu1 %v11292_v56  ;;  %8739 = vmatprep.mubr.msk.bf16.mxu1 %vm5422_vm0, %v5395_v46  ;;  %v8998_v56 = vld [vmem:[%s11654_s5 + $0x68] sm:$0xff]   ;;  %v9012_v46 = vld [vmem:[%s11654_s5 + $0x98] sm:$0xff]   ;;  %v9021_v55 = vld [vmem:[%s11654_s5 + $0xe0] sm:$0xff]  }
 0x2f1   : > { %8743 = vmatprep.subr.bf16.mxu1 %v8990_v48  ;;  %8771 = vmatprep.subr.bf16.mxu0 %v8998_v56  ;;  %v9020_v54 = vld [vmem:[%s11654_s5 + $0xd8] sm:$0xff]  }
 0x2f2   : > { %8772 = vmatpush3.bf16.msra.mxu0 %v8998_v56  ;;  %v9026_v56 = vld [vmem:[%s11654_s5 + $0x108] sm:$0xff]  }
 0x2f3   : > { %8773 = vmatprep.subr.bf16.mxu0 %v8999_v61 }
 0x2f6   : > { %8774 = vmatpush3.bf16.msra.mxu0 %v8999_v61  ;;  %v9027_v61 = vld [vmem:[%s11654_s5 + $0x110] sm:$0xff]  }
 0x2f7   : > { %8775 = vmatprep.subr.bf16.mxu0 %v9000_v62 }
 0x2fa   : > { %8776 = vmatpush3.bf16.msra.mxu0 %v9000_v62  ;;  %v9029_v62 = vld [vmem:[%s11654_s5 + $0x120] sm:$0xff]  }
 0x2fb   : > { %8740 = vmatmul.mubr.msk.bf16.vlgmr.msra.gmra.mrb[0].mxu1 %vm5422_vm0, %v5396_v49  ;;  %8781 = vmatprep.subr.bf16.mxu0 %v9001_v63  ;;  %v9015_v49 = vld [vmem:[%s11654_s5 + $0xb0] sm:$0xff]  }
 0x2fc   : > { %8744 = vmatpush3.bf16.msra.mxu1 %v8990_v48  ;;  %8745 = vmatprep.mubr.msk.bf16.mxu1 %vm5422_vm0, %v5539_v50  ;;  %v9014_v48 = vld [vmem:[%s11654_s5 + $0xa8] sm:$0xff]   ;;  %v9016_v50 = vld [vmem:[%s11654_s5 + $0xb8] sm:$0xff]  }
 0x2fd   : > { %8749 = vmatprep.subr.bf16.mxu1 %v8991_v60 }
 0x307   : > { %8746 = vmatmul.mubr.msk.bf16.vlgmr.msra.gmra.mrb[0].mxu1 %vm5422_vm0, %v5540_v21 }
 0x308   : > { %8750 = vmatpush3.bf16.msra.mxu1 %v8991_v60  ;;  %8751 = vmatprep.mubr.msk.bf16.mxu1 %vm5422_vm0, %v5621_v53  ;;  %v9019_v53 = vld [vmem:[%s11654_s5 + $0xd0] sm:$0xff]   ;;  %v9024_v60 = vld [vmem:[%s11654_s5 + $0xf8] sm:$0xff]  }
 0x309   : > { %8755 = vmatprep.subr.bf16.mxu1 %v8992_v36 }
 0x313   : > { %8752 = vmatmul.mubr.msk.bf16.vlgmr.msra.gmra.mrb[0].mxu1 %vm5422_vm0, %v5622_v58  ;;  %v9023_v58 = vld [vmem:[%s11654_s5 + $0xf0] sm:$0xff]  }
 0x314   : > { %8756 = vmatpush3.bf16.msra.mxu1 %v8992_v36  ;;  %8757 = vmatprep.mubr.msk.bf16.mxu1 %vm5422_vm0, %v5711_v57  ;;  %v9022_v57 = vld [vmem:[%s11654_s5 + $0xe8] sm:$0xff]   ;;  %v9025_v36 = vld [vmem:[%s11654_s5 + $0x100] sm:$0xff]  }
 0x31f   : > { %8758 = vmatmul.mubr.msk.bf16.vlgmr.msra.gmra.mrb[0].mxu1 %vm5422_vm0, %v5712_v11  ;;  %v9009_v11 = vld [vmem:[%s11654_s5 + $0x80] sm:$0xff]  }
 0x3f2   : > { %v8759_v1 = vpop.f32.mrb[0].mxu1 }
 0x3f3   : > { %v5790_v2 = vadd.f32 %v8759_v1, %v8288_v0  ;;  %v5762_v4 = vpop.f32.mrb[1].mxu1  ;;  %v9032_v1 = vld [vmem:[%s11654_s5 + $0x138] sm:$0xff]  }
 0x3f4   : > { %v5788_v5 = vadd.f32 %v8288_v0, %v5762_v4  ;;  %v8760_v7 = vpop.f32.mrb[2].mxu1  ;;  %v9033_v4 = vld [vmem:[#allocation5 + $0x10] sm:$0xff]  }
 0x3f5   : > { %vm5794_vm3 = vcmp.gt.f32.partialorder %v5790_v2, 0.0  ;;  %v5798_v8 = vmul.f32 0.2, %v5790_v2  ;;  %v5791_v9 = vadd.f32 %v8760_v7, %v8288_v0  ;;  %v5765_v10 = vpop.f32.mrb[3].mxu1  ;;  %8861 = vmatprep.subr.bf16.mxu1 %v9033_v4  ;;  %v9035_v7 = vld [vmem:[#allocation5] sm:$0xff]  }
 0x3f6   : > { %vm5792_vm4 = vcmp.gt.f32.partialorder %v5788_v5, 0.0  ;;  %v5796_v12 = vmul.f32 0.2, %v5788_v5  ;;  %v5789_v13 = vadd.f32 %v8288_v0, %v5765_v10  ;;  %v9031_v0 = vld [vmem:[%s11654_s5 + $0x130] sm:$0xff]   ;;  %8862 = vmatpush3.bf16.msra.mxu1 %v9033_v4 }
 0x3f7   : > { %v11389_v14 = vsel %vm5794_vm3, %v5790_v2, %v5798_v8  ;;  %vm5795_vm5 = vcmp.gt.f32.partialorder %v5791_v9, 0.0  ;;  %v5799_v15 = vmul.f32 0.2, %v5791_v9  ;;  %v8399_v8 = vld [vmem:[%s11655_s6] ss:$0 sm:$0xff] }
 0x3f8   : > { %v5800_v16 = vsel %vm5792_vm4, %v5788_v5, %v5796_v12  ;;  %vm5793_vm6 = vcmp.gt.f32.partialorder %v5789_v13, 0.0  ;;  %v5797_v17 = vmul.f32 0.2, %v5789_v13  ;;  %v5844_v20 = vrot.slane %v11389_v14, 4  ;;  %v9034_v5 = vld [vmem:[#allocation5 + $0x18] sm:$0xff]  }
 0x3f9   : > { %v5842_v18 = vrot.slane %v5800_v16, 4  ;;  %v11391_v19 = vsel %vm5795_vm5, %v5791_v9, %v5799_v15  ;;  %v5824_v37 = vpack.c.bf16 %v5800_v16, %v9129_v35  ;;  %8863 = vmatprep.subr.bf16.mxu1 %v9034_v5 }
 0x3fa   : > { %v5845_v21 = vrot.slane %v11391_v19, 4  ;;  %v6068_v22 = vpack.c.bf16 %v11391_v19, %v11389_v14  ;;  %v5801_v23 = vsel %vm5793_vm6, %v5789_v13, %v5797_v17  ;;  %v6331_v2 = vpack.c.bf16 %v9129_v35, %v11391_v19  ;;  %8864 = vmatpush3.bf16.msra.mxu1 %v9034_v5 }
 0x3fb   : > { %v11398_v24 = vpack.c.bf16 %v11389_v14, %v5801_v23  ;;  %v5843_v25 = vrot.slane %v5801_v23, 4  ;;  %v6067_v26 = vpack.c.bf16 %v5801_v23, %v5800_v16  ;;  %8869 = vmatprep.subr.bf16.mxu1 %v9035_v7 }
 0x3fc   : > { %v11402_v27 = vsel %vm5370_vm13, %v5845_v21, %v5842_v18  ;;  %v11406_v28 = vsel %vm5370_vm13, %v5844_v20, %v5845_v21 }
 0x3fd   : > { %v11410_v29 = vsel %vm5370_vm13, %v5842_v18, %v5843_v25  ;;  %v11417_v30 = vsel %vm5370_vm13, %v5843_v25, %v5844_v20  ;;  %v8373_v31 = vpack.c.bf16 %v11402_v27, %v11406_v28 }
 0x3fe   : > { %v8314_v32 = vpack.c.bf16 %v11410_v29, %v11402_v27  ;;  %v5855_v33 = vpack.c.bf16 %v11406_v28, %v11417_v30  ;;  %v6191_v34 = vpack.c.bf16 %v11417_v30, %v11410_v29  ;;  %v9036_v30 = vld [vmem:[#allocation5 + $0x8] sm:$0xff]  }
 0x400   : > { %8777 = vmatprep.mubr.msk.bf16.mxu0 %vm8313_vm8, %v8314_v32  ;;  %v9037_v32 = vld [vmem:[#allocation5 + $0x20] sm:$0xff]  }
 0x401   : > { %8778 = vmatmul.mubr.bf16.vlgmr.msra.gmra.mrb[4].mxu0 %v5855_v33  ;;  %v9038_v33 = vld [vmem:[#allocation5 + $0x28] sm:$0xff]  }
 0x402   : > { %8782 = vmatpush3.bf16.msra.mxu0 %v9001_v63  ;;  %8797 = vmatprep.mubr.bf16.mxu0 %v5824_v37  ;;  %v9030_v63 = vld [vmem:[%s11654_s5 + $0x128] sm:$0xff]   ;;  %v9041_v37 = vld [vmem:[#allocation5 + $0x40] sm:$0xff]  }
 0x403   : > { %8783 = vmatprep.subr.bf16.mxu0 %v9002_v3 }
 0x406   : > { %8784 = vmatpush3.bf16.msra.mxu0 %v9002_v3  ;;  %v9040_v3 = vld [vmem:[#allocation5 + $0x38] sm:$0xff]  }
 0x407   : > { %8785 = vmatprep.subr.bf16.mxu0 %v9003_v38 }
 0x40a   : > { %8786 = vmatpush3.bf16.msra.mxu0 %v9003_v38 }
 0x40b   : > { %8787 = vmatprep.subr.bf16.mxu0 %v9004_v39 }
 0x40e   : > { %8788 = vmatpush3.bf16.msra.mxu0 %v9004_v39  ;;  %v9042_v39 = vld [vmem:[#allocation5 + $0x48] sm:$0xff]  }
 0x40f   : > { %8789 = vmatprep.subr.bf16.mxu0 %v9005_v40 }
 0x412   : > { %8790 = vmatpush3.bf16.msra.mxu0 %v9005_v40 }
 0x413   : > { %8791 = vmatprep.subr.bf16.mxu0 %v9006_v41 }
 0x416   : > { %8792 = vmatpush3.bf16.msra.mxu0 %v9006_v41 }
 0x417   : > { %8793 = vmatprep.subr.bf16.mxu0 %v9007_v42 }
 0x41a   : > { %8794 = vmatpush3.bf16.msra.mxu0 %v9007_v42 }
 0x41b   : > { %8795 = vmatprep.subr.bf16.mxu0 %v9008_v43 }
 0x41e   : > { %8796 = vmatpush3.bf16.msra.mxu0 %v9008_v43 }
 0x41f   : > { %8801 = vmatprep.subr.bf16.mxu0 %v9009_v11 }
 0x421   : > { %8798 = vmatmul.mubr.bf16.vlgmr.msra.gmra.mrb[4].mxu0 %v11398_v24 }
 0x422   : > { %8802 = vmatpush3.bf16.msra.mxu0 %v9009_v11  ;;  %8817 = vmatprep.mubr.bf16.mxu0 %v6067_v26 }
 0x423   : > { %8803 = vmatprep.subr.bf16.mxu0 %v9010_v44 }
 0x426   : > { %8804 = vmatpush3.bf16.msra.mxu0 %v9010_v44 }
 0x427   : > { %8805 = vmatprep.subr.bf16.mxu0 %v9011_v45 }
 0x42a   : > { %8806 = vmatpush3.bf16.msra.mxu0 %v9011_v45 }
 0x42b   : > { %8807 = vmatprep.subr.bf16.mxu0 %v9012_v46 }
 0x42e   : > { %8808 = vmatpush3.bf16.msra.mxu0 %v9012_v46 }
 0x42f   : > { %8809 = vmatprep.subr.bf16.mxu0 %v9013_v47 }
 0x432   : > { %8810 = vmatpush3.bf16.msra.mxu0 %v9013_v47 }
 0x433   : > { %8811 = vmatprep.subr.bf16.mxu0 %v9014_v48 }
 0x436   : > { %8812 = vmatpush3.bf16.msra.mxu0 %v9014_v48 }
 0x437   : > { %8813 = vmatprep.subr.bf16.mxu0 %v9015_v49 }
 0x43a   : > { %8814 = vmatpush3.bf16.msra.mxu0 %v9015_v49 }
 0x43b   : > { %8815 = vmatprep.subr.bf16.mxu0 %v9016_v50 }
 0x43e   : > { %8816 = vmatpush3.bf16.msra.mxu0 %v9016_v50 }
 0x43f   : > { %8821 = vmatprep.subr.bf16.mxu0 %v9017_v51 }
 0x441   : > { %8818 = vmatmul.mubr.bf16.vlgmr.msra.gmra.mrb[4].mxu0 %v6068_v22 }
 0x442   : > { %8822 = vmatpush3.bf16.msra.mxu0 %v9017_v51  ;;  %8837 = vmatprep.mubr.bf16.mxu0 %v6191_v34  ;;  %v9039_v34 = vld [vmem:[#allocation5 + $0x30] sm:$0xff]  }
 0x443   : > { %8823 = vmatprep.subr.bf16.mxu0 %v9018_v52 }
 0x446   : > { %8824 = vmatpush3.bf16.msra.mxu0 %v9018_v52 }
 0x447   : > { %8825 = vmatprep.subr.bf16.mxu0 %v9019_v53 }
 0x44a   : > { %8826 = vmatpush3.bf16.msra.mxu0 %v9019_v53 }
 0x44b   : > { %8827 = vmatprep.subr.bf16.mxu0 %v9020_v54 }
 0x44e   : > { %8828 = vmatpush3.bf16.msra.mxu0 %v9020_v54 }
 0x44f   : > { %8829 = vmatprep.subr.bf16.mxu0 %v9021_v55 }
 0x452   : > { %8830 = vmatpush3.bf16.msra.mxu0 %v9021_v55 }
 0x453   : > { %8831 = vmatprep.subr.bf16.mxu0 %v9022_v57 }
 0x456   : > { %8832 = vmatpush3.bf16.msra.mxu0 %v9022_v57 }
 0x457   : > { %8833 = vmatprep.subr.bf16.mxu0 %v9023_v58 }
 0x45a   : > { %8834 = vmatpush3.bf16.msra.mxu0 %v9023_v58 }
 0x45b   : > { %8835 = vmatprep.subr.bf16.mxu0 %v9024_v60 }
 0x45e   : > { %8836 = vmatpush3.bf16.msra.mxu0 %v9024_v60 }
 0x45f   : > { %8841 = vmatprep.subr.bf16.mxu0 %v9025_v36 }
 0x461   : > { %8838 = vmatmul.mubr.msk.bf16.vlgmr.msra.gmra.mrb[4].mxu0 %vm8372_vm9, %v8373_v31  ;;  %v9130_v31 = vmov 0.0|0.0  }
 0x462   : > { %8842 = vmatpush3.bf16.msra.mxu0 %v9025_v36  ;;  %8857 = vmatprep.mubr.bf16.mxu0 %v11398_v24 }
 0x463   : > { %8843 = vmatprep.subr.bf16.mxu0 %v9026_v56 }
 0x466   : > { %8844 = vmatpush3.bf16.msra.mxu0 %v9026_v56 }
 0x467   : > { %8845 = vmatprep.subr.bf16.mxu0 %v9027_v61 }
 0x46a   : > { %8846 = vmatpush3.bf16.msra.mxu0 %v9027_v61  ;;  %v8418_v61 = vld [vmem:[%s11657_s8] ss:$0 sm:$0xff] }
 0x46b   : > { %8847 = vmatprep.subr.bf16.mxu0 %v9028_v6 }
 0x46e   : > { %8848 = vmatpush3.bf16.msra.mxu0 %v9028_v6 }
 0x46f   : > { %8849 = vmatprep.subr.bf16.mxu0 %v9029_v62 }
 0x472   : > { %8850 = vmatpush3.bf16.msra.mxu0 %v9029_v62 }
 0x473   : > { %8851 = vmatprep.subr.bf16.mxu0 %v9030_v63 }
 0x476   : > { %8852 = vmatpush3.bf16.msra.mxu0 %v9030_v63 }
 0x477   : > { %8853 = vmatprep.subr.bf16.mxu0 %v9031_v0 }
 0x47a   : > { %8854 = vmatpush3.bf16.msra.mxu0 %v9031_v0 }
 0x47b   : > { %8855 = vmatprep.subr.bf16.mxu0 %v9032_v1 }
 0x47e   : > { %8856 = vmatpush3.bf16.msra.mxu0 %v9032_v1 }
 0x481   : > { %8858 = vmatmul.mubr.bf16.vlgmr.msra.gmra.mrb[4].mxu0 %v6331_v2 }
 0x554   : > { %v8859_v9 = vpop.f32.mrb[4].mxu0 }
 0x555   : > { %v6459_v10 = vadd.f32 %v8859_v9, %v8399_v8  ;;  %v6431_v12 = vpop.f32.mrb[5].mxu0 }
 0x556   : > { %v6457_v13 = vadd.f32 %v8399_v8, %v6431_v12  ;;  %v8860_v14 = vpop.f32.mrb[6].mxu0 }
 0x557   : > { %v6467_v15 = vmul.f32 0.2, %v6459_v10  ;;  %v6460_v16 = vadd.f32 %v8860_v14, %v8399_v8  ;;  %v6434_v17 = vpop.f32.mrb[7].mxu0  ;;  %vm6463_vm10 = vcmp.gt.f32.partialorder %v6459_v10, 0.0 }
 0x558   : > { %vm6461_vm11 = vcmp.gt.f32.partialorder %v6457_v13, 0.0  ;;  %v6465_v18 = vmul.f32 0.2, %v6457_v13  ;;  %v6458_v19 = vadd.f32 %v8399_v8, %v6434_v17 }
 0x559   : > { %vm6464_vm12 = vcmp.gt.f32.partialorder %v6460_v16, 0.0  ;;  %v6468_v20 = vmul.f32 0.2, %v6460_v16  ;;  %v6471_v23 = vsel %vm6463_vm10, %v6459_v10, %v6467_v15 }
 0x55a   : > { %v6469_v21 = vsel %vm6461_vm11, %v6457_v13, %v6465_v18  ;;  %vm6462_vm13 = vcmp.gt.f32.partialorder %v6458_v19, 0.0  ;;  %v6466_v22 = vmul.f32 0.2, %v6458_v19 }
 0x55b   : > { %v6503_v24 = vpack.c.bf16 %v6469_v21, %v9129_v35  ;;  %v6472_v25 = vsel %vm6464_vm12, %v6460_v16, %v6468_v20 }
 0x55c   : > { %v6642_v26 = vpack.c.bf16 %v6472_v25, %v6471_v23  ;;  %v6470_v27 = vsel %vm6462_vm13, %v6458_v19, %v6466_v22  ;;  %v6720_v38 = vpack.c.bf16 %v9129_v35, %v6472_v25 }
 0x55d   : > { %v6494_v28 = vpack.c.bf16 %v6470_v27, %v6469_v21  ;;  %v6504_v29 = vpack.c.bf16 %v6471_v23, %v6470_v27  ;;  %8865 = vmatprep.mubr.msk.bf16.mxu1 %vm6522_vm14, %v6503_v24 }
 0x55f   : > { %8866 = vmatmul.mubr.msk.bf16.vlgmr.msra.gmra.mrb[4].mxu1 %vm6522_vm14, %v6504_v29 }
 0x560   : > { %8870 = vmatpush3.bf16.msra.mxu1 %v9035_v7  ;;  %8873 = vmatprep.mubr.bf16.mxu1 %v9130_v31 }
 0x561   : > { %8871 = vmatprep.subr.bf16.mxu1 %v9036_v30 }
 0x564   : > { %8872 = vmatpush3.bf16.msra.mxu1 %v9036_v30 }
 0x565   : > { %8877 = vmatprep.subr.bf16.mxu1 %v9037_v32 }
 0x567   : > { %8874 = vmatmul.mubr.msk.bf16.vlgmr.msra.gmra.mrb[8].mxu1 %vm6522_vm14, %v6494_v28 }
 0x568   : > { %8878 = vmatpush3.bf16.msra.mxu1 %v9037_v32  ;;  %8881 = vmatprep.mubr.msk.bf16.mxu1 %vm6522_vm14, %v6494_v28 }
 0x569   : > { %8879 = vmatprep.subr.bf16.mxu1 %v9038_v33 }
 0x56c   : > { %8880 = vmatpush3.bf16.msra.mxu1 %v9038_v33 }
 0x56d   : > { %8885 = vmatprep.subr.bf16.mxu1 %v9039_v34 }
 0x56f   : > { %8882 = vmatmul.mubr.msk.bf16.vlgmr.msra.gmra.mrb[12].mxu1 %vm6522_vm14, %v6642_v26 }
 0x570   : > { %8886 = vmatpush3.bf16.msra.mxu1 %v9039_v34  ;;  %8889 = vmatprep.mubr.msk.bf16.mxu1 %vm6522_vm14, %v6504_v29 }
 0x571   : > { %8887 = vmatprep.subr.bf16.mxu1 %v9040_v3 }
 0x574   : > { %8888 = vmatpush3.bf16.msra.mxu1 %v9040_v3 }
 0x575   : > { %8893 = vmatprep.subr.bf16.mxu1 %v9041_v37 }
 0x577   : > { %8890 = vmatmul.mubr.msk.bf16.vlgmr.msra.gmra.mrb[16].mxu1 %vm6522_vm14, %v6720_v38 }
 0x578   : > { %8894 = vmatpush3.bf16.msra.mxu1 %v9041_v37  ;;  %8897 = vmatprep.mubr.msk.bf16.mxu1 %vm6522_vm14, %v6642_v26 }
 0x579   : > { %8895 = vmatprep.subr.bf16.mxu1 %v9042_v39 }
 0x57c   : > { %8896 = vmatpush3.bf16.msra.mxu1 %v9042_v39 }
 0x57f   : > { %8898 = vmatmul.mubr.bf16.vlgmr.msra.gmra.mrb[20].mxu1 %v9130_v31 }
 0x632   : > { %v8867_v40 = vpop.f32.mrb[4].mxu1 }
 0x633   : > { %v6563_v41 = vpop.f32.mrb[5].mxu1 }
 0x634   : > { %v8868_v42 = vpop.f32.mrb[6].mxu1 }
 0x635   : > { %v6566_v43 = vpop.f32.mrb[7].mxu1 }
 0x63a   : > { %v8875_v11 = vpop.f32.mrb[8].mxu1 }
 0x63b   : > { %v6636_v44 = vadd.f32 %v8875_v11, %v8867_v40  ;;  %v6628_v45 = vpop.f32.mrb[9].mxu1 }
 0x63c   : > { %v6629_v46 = vadd.f32 %v6628_v45, %v6563_v41  ;;  %v8876_v47 = vpop.f32.mrb[10].mxu1 }
 0x63d   : > { %v6631_v35 = vpop.f32.mrb[11].mxu1 }
 0x642   : > { %v8883_v48 = vpop.f32.mrb[12].mxu1 }
 0x643   : > { %v6714_v49 = vadd.f32 %v8883_v48, %v6636_v44  ;;  %v6700_v50 = vpop.f32.mrb[13].mxu1 }
 0x644   : > { %v6713_v51 = vadd.f32 %v6700_v50, %v6629_v46  ;;  %v8884_v52 = vpop.f32.mrb[14].mxu1 }
 0x645   : > { %v6703_v53 = vpop.f32.mrb[15].mxu1 }
 0x64a   : > { %v8891_v54 = vpop.f32.mrb[16].mxu1 }
 0x64b   : > { %v6792_v55 = vadd.f32 %v8891_v54, %v6714_v49  ;;  %v6778_v57 = vpop.f32.mrb[17].mxu1 }
 0x64c   : > { %v6791_v58 = vadd.f32 %v6778_v57, %v6713_v51  ;;  %v8892_v60 = vpop.f32.mrb[18].mxu1 }
 0x64d   : > { %v6781_v36 = vpop.f32.mrb[19].mxu1 }
 0x652   : > { %v8899_v56 = vpop.f32.mrb[20].mxu1 }
 0x653   : > { %v6885_v6 = vadd.f32 %v8899_v56, %v6792_v55  ;;  %v6871_v62 = vpop.f32.mrb[21].mxu1 }
 0x654   : > { %v6884_v63 = vadd.f32 %v6871_v62, %v6791_v58  ;;  %v8900_v0 = vpop.f32.mrb[22].mxu1 }
 0x655   : > { %v6894_v1 = vadd.f32 %v8418_v61, %v6885_v6  ;;  %v6874_v2 = vpop.f32.mrb[23].mxu1 }
 0x656   : > { %v6893_v4 = vadd.f32 %v8418_v61, %v6884_v63 }
 0x657   : > { %vm6896_vm15 = vcmp.gt.f32.partialorder %v6894_v1, 0.0  ;;  %v6898_v5 = vmul.f32 0.2, %v6894_v1 }
 0x658   : > { %vm6895_vm0 = vcmp.gt.f32.partialorder %v6893_v4, 0.0  ;;  %v6897_v7 = vmul.f32 0.2, %v6893_v4 }
 0x659   : > { %v6900_v8 = vsel %vm6896_vm15, %v6894_v1, %v6898_v5 }
 0x65a   : > { %v11550_v9 = vpack.c.bf16 %v6900_v8, %v6900_v8  ;;  %v6899_v10 = vsel %vm6895_vm0, %v6893_v4, %v6897_v7 }
 0x65b   : > { %v11552_v12 = vpack.c.bf16 %v6899_v10, %v6899_v10 }
 0x65c   : > { %9112 = dma.done.wait (%p11673_p10), [#allocation4], 32768  ;;  %p11674_p11 = pmov %p11673_p10 }
 0x65d   : > { %p11675_p12 = pmov %p11673_p10 }
 0x65e   : > { %9114 = vsyncadd (%p11674_p11), [#allocation4], 4294934528 }
 0x65f   : > { %9116 = dma.done.wait (%p11675_p12), [#allocation4 + $0x1], 16384  ;;  %p11676_p13 = pmov %p11673_p10 }
 0x660   : > { %7287 = vmatprep.mubr.bf16.mxu1 %v11550_v9  ;;  %7369 = vmatprep.mubr.bf16.mxu0 %v11550_v9  ;;  %v6916_v13 = vld [vmem:[#allocation2 + $0x8] sm:$0xff]  ;;  %v6915_v14 = vld [vmem:[#allocation2] sm:$0xff]  ;;  %v6918_v8 = vld [vmem:[#allocation2 + $0x18] sm:$0xff] }
 0x661   : > { %9118 = vsyncadd (%p11676_p13), [#allocation4 + $0x1], 4294950912  ;;  %v6932_v15 = vld [vmem:[#allocation2 + $0x88] sm:$0xff]  ;;  %7255 = vmatprep.subr.bf16.mxu1 %v6916_v13  ;;  %v6931_v16 = vld [vmem:[#allocation2 + $0x80] sm:$0xff] }
 0x662   : > { %7256 = vmatpush1.bf16.msra.mxu1 %v6915_v14  ;;  %v6948_v17 = vld [vmem:[#allocation2 + $0x108] sm:$0xff]  ;;  %v6947_v18 = vld [vmem:[#allocation2 + $0x100] sm:$0xff]  ;;  %v6917_v14 = vld [vmem:[#allocation2 + $0x10] sm:$0xff] }
 0x663   : > { %7257 = vmatprep.subr.bf16.mxu1 %v6932_v15  ;;  %v6964_v19 = vld [vmem:[#allocation2 + $0x188] sm:$0xff]  ;;  %v6963_v21 = vld [vmem:[#allocation2 + $0x180] sm:$0xff]  ;;  %v6934_v15 = vld [vmem:[#allocation2 + $0x98] sm:$0xff] }
 0x664   : > { %v6920_v20 = vld [vmem:[#allocation2 + $0x28] sm:$0xff]  ;;  %v6919_v22 = vld [vmem:[#allocation2 + $0x20] sm:$0xff] }
 0x665   : > { %7337 = vmatprep.subr.bf16.mxu0 %v6920_v20  ;;  %v6980_v23 = vld [vmem:[#allocation2 + $0x208] sm:$0xff]  ;;  %v6935_v25 = vld [vmem:[#allocation2 + $0xa0] sm:$0xff] }
 0x666   : > { %7258 = vmatpush1.bf16.msra.mxu1 %v6931_v16  ;;  %7338 = vmatpush1.bf16.msra.mxu0 %v6919_v22  ;;  %v6936_v24 = vld [vmem:[#allocation2 + $0xa8] sm:$0xff]  ;;  %v6979_v27 = vld [vmem:[#allocation2 + $0x200] sm:$0xff]  ;;  %v6949_v22 = vld [vmem:[#allocation2 + $0x110] sm:$0xff] }
 0x667   : > { %7259 = vmatprep.subr.bf16.mxu1 %v6948_v17  ;;  %7339 = vmatprep.subr.bf16.mxu0 %v6936_v24  ;;  %v6952_v26 = vld [vmem:[#allocation2 + $0x128] sm:$0xff]  ;;  %v6951_v29 = vld [vmem:[#allocation2 + $0x120] sm:$0xff] }
 0x668   : > { %v6996_v28 = vld [vmem:[#allocation2 + $0x288] sm:$0xff]  ;;  %v6995_v31 = vld [vmem:[#allocation2 + $0x280] sm:$0xff] }
 0x669   : > { %v6968_v30 = vld [vmem:[#allocation2 + $0x1a8] sm:$0xff]  ;;  %v6967_v33 = vld [vmem:[#allocation2 + $0x1a0] sm:$0xff] }
 0x66a   : > { %7260 = vmatpush1.bf16.msra.mxu1 %v6947_v18  ;;  %7340 = vmatpush1.bf16.msra.mxu0 %v6935_v25  ;;  %v7012_v32 = vld [vmem:[#allocation2 + $0x308] sm:$0xff]  ;;  %v7011_v3 = vld [vmem:[#allocation2 + $0x300] sm:$0xff]  ;;  %v6933_v18 = vld [vmem:[#allocation2 + $0x90] sm:$0xff] }
 0x66b   : > { %7261 = vmatprep.subr.bf16.mxu1 %v6964_v19  ;;  %7341 = vmatprep.subr.bf16.mxu0 %v6952_v26  ;;  %v6984_v34 = vld [vmem:[#allocation2 + $0x228] sm:$0xff]  ;;  %v6983_v38 = vld [vmem:[#allocation2 + $0x220] sm:$0xff]  ;;  %v6950_v19 = vld [vmem:[#allocation2 + $0x118] sm:$0xff] }
 0x66c   : > { %v7028_v37 = vld [vmem:[#allocation2 + $0x388] sm:$0xff]  ;;  %v7027_v40 = vld [vmem:[#allocation2 + $0x380] sm:$0xff]  ;;  %v6965_v26 = vld [vmem:[#allocation2 + $0x190] sm:$0xff] }
 0x66d   : > { %v7000_v39 = vld [vmem:[#allocation2 + $0x2a8] sm:$0xff]  ;;  %v6999_v42 = vld [vmem:[#allocation2 + $0x2a0] sm:$0xff] }
 0x66e   : > { %7262 = vmatpush1.bf16.msra.mxu1 %v6963_v21  ;;  %7342 = vmatpush1.bf16.msra.mxu0 %v6951_v29  ;;  %v7044_v41 = vld [vmem:[#allocation2 + $0x408] sm:$0xff]  ;;  %v7043_v11 = vld [vmem:[#allocation2 + $0x400] sm:$0xff] }
 0x66f   : > { %7263 = vmatprep.subr.bf16.mxu1 %v6980_v23  ;;  %7343 = vmatprep.subr.bf16.mxu0 %v6968_v30  ;;  %v7016_v43 = vld [vmem:[#allocation2 + $0x328] sm:$0xff]  ;;  %v7015_v45 = vld [vmem:[#allocation2 + $0x320] sm:$0xff]  ;;  %v6966_v23 = vld [vmem:[#allocation2 + $0x198] sm:$0xff] }
 0x670   : > { %v7060_v44 = vld [vmem:[#allocation2 + $0x488] sm:$0xff]  ;;  %v7059_v47 = vld [vmem:[#allocation2 + $0x480] sm:$0xff]  ;;  %v6981_v30 = vld [vmem:[#allocation2 + $0x210] sm:$0xff] }
 0x671   : > { %v7032_v46 = vld [vmem:[#allocation2 + $0x3a8] sm:$0xff]  ;;  %v7031_v48 = vld [vmem:[#allocation2 + $0x3a0] sm:$0xff] }
 0x672   : > { %7264 = vmatpush1.bf16.msra.mxu1 %v6979_v27  ;;  %7344 = vmatpush1.bf16.msra.mxu0 %v6967_v33  ;;  %v7076_v35 = vld [vmem:[#allocation2 + $0x508] sm:$0xff]  ;;  %v7075_v50 = vld [vmem:[#allocation2 + $0x500] sm:$0xff]  ;;  %v6982_v27 = vld [vmem:[#allocation2 + $0x218] sm:$0xff] }
 0x673   : > { %7265 = vmatprep.subr.bf16.mxu1 %v6996_v28  ;;  %7345 = vmatprep.subr.bf16.mxu0 %v6984_v34  ;;  %v7048_v49 = vld [vmem:[#allocation2 + $0x428] sm:$0xff]  ;;  %v7047_v52 = vld [vmem:[#allocation2 + $0x420] sm:$0xff]  ;;  %v6997_v34 = vld [vmem:[#allocation2 + $0x290] sm:$0xff] }
 0x674   : > { %v7092_v51 = vld [vmem:[#allocation2 + $0x588] sm:$0xff]  ;;  %v7091_v54 = vld [vmem:[#allocation2 + $0x580] sm:$0xff] }
 0x675   : > { %v7064_v53 = vld [vmem:[#allocation2 + $0x4a8] sm:$0xff]  ;;  %v7063_v57 = vld [vmem:[#allocation2 + $0x4a0] sm:$0xff] }
 0x676   : > { %7266 = vmatpush1.bf16.msra.mxu1 %v6995_v31  ;;  %7346 = vmatpush1.bf16.msra.mxu0 %v6983_v38  ;;  %v7108_v55 = vld [vmem:[#allocation2 + $0x608] sm:$0xff]  ;;  %v7107_v60 = vld [vmem:[#allocation2 + $0x600] sm:$0xff]  ;;  %v6998_v31 = vld [vmem:[#allocation2 + $0x298] sm:$0xff] }
 0x677   : > { %7267 = vmatprep.subr.bf16.mxu1 %v7012_v32  ;;  %7347 = vmatprep.subr.bf16.mxu0 %v7000_v39  ;;  %v7080_v58 = vld [vmem:[#allocation2 + $0x528] sm:$0xff]  ;;  %v7079_v56 = vld [vmem:[#allocation2 + $0x520] sm:$0xff]  ;;  %v7013_v39 = vld [vmem:[#allocation2 + $0x310] sm:$0xff] }
 0x678   : > { %v7124_v36 = vld [vmem:[#allocation2 + $0x688] sm:$0xff]  ;;  %v7123_v6 = vld [vmem:[#allocation2 + $0x680] sm:$0xff] }
 0x679   : > { %v7096_v61 = vld [vmem:[#allocation2 + $0x5a8] sm:$0xff]  ;;  %v7095_v63 = vld [vmem:[#allocation2 + $0x5a0] sm:$0xff] }
 0x67a   : > { %7268 = vmatpush1.bf16.msra.mxu1 %v7011_v3  ;;  %7348 = vmatpush1.bf16.msra.mxu0 %v6999_v42  ;;  %v7140_v62 = vld [vmem:[#allocation2 + $0x708] sm:$0xff]  ;;  %v7139_v1 = vld [vmem:[#allocation2 + $0x700] sm:$0xff]  ;;  %v7014_v3 = vld [vmem:[#allocation2 + $0x318] sm:$0xff] }
 0x67b   : > { %7269 = vmatprep.subr.bf16.mxu1 %v7028_v37  ;;  %7349 = vmatprep.subr.bf16.mxu0 %v7016_v43  ;;  %v7112_v0 = vld [vmem:[#allocation2 + $0x628] sm:$0xff]  ;;  %v7111_v4 = vld [vmem:[#allocation2 + $0x620] sm:$0xff]  ;;  %v7029_v43 = vld [vmem:[#allocation2 + $0x390] sm:$0xff] }
 0x67c   : > { %v7156_v2 = vld [vmem:[#allocation2 + $0x788] sm:$0xff]  ;;  %v7155_v7 = vld [vmem:[#allocation2 + $0x780] sm:$0xff] }
 0x67d   : > { %v7128_v5 = vld [vmem:[#allocation2 + $0x6a8] sm:$0xff]  ;;  %v7127_v10 = vld [vmem:[#allocation2 + $0x6a0] sm:$0xff] }
 0x67e   : > { %7270 = vmatpush1.bf16.msra.mxu1 %v7027_v40  ;;  %7350 = vmatpush1.bf16.msra.mxu0 %v7015_v45  ;;  %v7144_v13 = vld [vmem:[#allocation2 + $0x728] sm:$0xff]  ;;  %v7143_v16 = vld [vmem:[#allocation2 + $0x720] sm:$0xff]  ;;  %v7030_v40 = vld [vmem:[#allocation2 + $0x398] sm:$0xff] }
 0x67f   : > { %7271 = vmatprep.subr.bf16.mxu1 %v7044_v41  ;;  %7351 = vmatprep.subr.bf16.mxu0 %v7032_v46  ;;  %v7160_v17 = vld [vmem:[#allocation2 + $0x7a8] sm:$0xff]  ;;  %v7159_v20 = vld [vmem:[#allocation2 + $0x7a0] sm:$0xff]  ;;  %v7045_v46 = vld [vmem:[#allocation2 + $0x410] sm:$0xff] }
 0x680   : > { %v6924_v21 = vld [vmem:[#allocation2 + $0x48] sm:$0xff]  ;;  %v6923_v24 = vld [vmem:[#allocation2 + $0x40] sm:$0xff] }
 0x681   : > { %v6940_v25 = vld [vmem:[#allocation2 + $0xc8] sm:$0xff]  ;;  %v6939_v28 = vld [vmem:[#allocation2 + $0xc0] sm:$0xff] }
 0x682   : > { %7272 = vmatpush1.bf16.msra.mxu1 %v7043_v11  ;;  %7352 = vmatpush1.bf16.msra.mxu0 %v7031_v48  ;;  %v6956_v29 = vld [vmem:[#allocation2 + $0x148] sm:$0xff]  ;;  %v6955_v32 = vld [vmem:[#allocation2 + $0x140] sm:$0xff]  ;;  %v7046_v11 = vld [vmem:[#allocation2 + $0x418] sm:$0xff] }
 0x683   : > { %7273 = vmatprep.subr.bf16.mxu1 %v7060_v44  ;;  %7353 = vmatprep.subr.bf16.mxu0 %v7048_v49  ;;  %v6972_v33 = vld [vmem:[#allocation2 + $0x1c8] sm:$0xff]  ;;  %v6971_v37 = vld [vmem:[#allocation2 + $0x1c0] sm:$0xff]  ;;  %v7061_v49 = vld [vmem:[#allocation2 + $0x490] sm:$0xff] }
 0x684   : > { %v6988_v38 = vld [vmem:[#allocation2 + $0x248] sm:$0xff]  ;;  %v6987_v41 = vld [vmem:[#allocation2 + $0x240] sm:$0xff] }
 0x685   : > { %v7004_v42 = vld [vmem:[#allocation2 + $0x2c8] sm:$0xff]  ;;  %v7003_v44 = vld [vmem:[#allocation2 + $0x2c0] sm:$0xff] }
 0x686   : > { %7274 = vmatpush1.bf16.msra.mxu1 %v7059_v47  ;;  %7354 = vmatpush1.bf16.msra.mxu0 %v7047_v52  ;;  %v7020_v45 = vld [vmem:[#allocation2 + $0x348] sm:$0xff]  ;;  %v7062_v47 = vld [vmem:[#allocation2 + $0x498] sm:$0xff] }
 0x687   : > { %7275 = vmatprep.subr.bf16.mxu1 %v7076_v35  ;;  %7355 = vmatprep.subr.bf16.mxu0 %v7064_v53  ;;  %v7019_v35 = vld [vmem:[#allocation2 + $0x340] sm:$0xff]  ;;  %v7036_v48 = vld [vmem:[#allocation2 + $0x3c8] sm:$0xff]  ;;  %v7077_v53 = vld [vmem:[#allocation2 + $0x510] sm:$0xff] }
 0x688   : > { %v7052_v52 = vld [vmem:[#allocation2 + $0x448] sm:$0xff] }
 0x68a   : > { %7276 = vmatpush1.bf16.msra.mxu1 %v7075_v50  ;;  %7356 = vmatpush1.bf16.msra.mxu0 %v7063_v57  ;;  %v7078_v50 = vld [vmem:[#allocation2 + $0x518] sm:$0xff]  ;;  %v7068_v57 = vld [vmem:[#allocation2 + $0x4c8] sm:$0xff] }
 0x68b   : > { %7277 = vmatprep.subr.bf16.mxu1 %v7092_v51  ;;  %7357 = vmatprep.subr.bf16.mxu0 %v7080_v58  ;;  %v7035_v51 = vld [vmem:[#allocation2 + $0x3c0] sm:$0xff]  ;;  %v7093_v58 = vld [vmem:[#allocation2 + $0x590] sm:$0xff] }
 0x68e   : > { %7278 = vmatpush1.bf16.msra.mxu1 %v7091_v54  ;;  %7358 = vmatpush1.bf16.msra.mxu0 %v7079_v56  ;;  %v7094_v54 = vld [vmem:[#allocation2 + $0x598] sm:$0xff]  ;;  %v7084_v56 = vld [vmem:[#allocation2 + $0x548] sm:$0xff] }
 0x68f   : > { %7279 = vmatprep.subr.bf16.mxu1 %v7108_v55  ;;  %7359 = vmatprep.subr.bf16.mxu0 %v7096_v61  ;;  %v7051_v55 = vld [vmem:[#allocation2 + $0x440] sm:$0xff]  ;;  %v7109_v61 = vld [vmem:[#allocation2 + $0x610] sm:$0xff] }
 0x692   : > { %7280 = vmatpush1.bf16.msra.mxu1 %v7107_v60  ;;  %7360 = vmatpush1.bf16.msra.mxu0 %v7095_v63  ;;  %v7110_v60 = vld [vmem:[#allocation2 + $0x618] sm:$0xff]  ;;  %v7100_v63 = vld [vmem:[#allocation2 + $0x5c8] sm:$0xff] }
 0x693   : > { %7281 = vmatprep.subr.bf16.mxu1 %v7124_v36  ;;  %7361 = vmatprep.subr.bf16.mxu0 %v7112_v0  ;;  %v7067_v36 = vld [vmem:[#allocation2 + $0x4c0] sm:$0xff]  ;;  %v7125_v0 = vld [vmem:[#allocation2 + $0x690] sm:$0xff] }
 0x696   : > { %7282 = vmatpush1.bf16.msra.mxu1 %v7123_v6  ;;  %7362 = vmatpush1.bf16.msra.mxu0 %v7111_v4  ;;  %v7126_v6 = vld [vmem:[#allocation2 + $0x698] sm:$0xff]  ;;  %v7116_v4 = vld [vmem:[#allocation2 + $0x648] sm:$0xff] }
 0x697   : > { %7283 = vmatprep.subr.bf16.mxu1 %v7140_v62  ;;  %7363 = vmatprep.subr.bf16.mxu0 %v7128_v5  ;;  %v7083_v62 = vld [vmem:[#allocation2 + $0x540] sm:$0xff]  ;;  %v7141_v5 = vld [vmem:[#allocation2 + $0x710] sm:$0xff] }
 0x69a   : > { %7284 = vmatpush1.bf16.msra.mxu1 %v7139_v1  ;;  %7364 = vmatpush1.bf16.msra.mxu0 %v7127_v10  ;;  %v7142_v1 = vld [vmem:[#allocation2 + $0x718] sm:$0xff]  ;;  %v7132_v10 = vld [vmem:[#allocation2 + $0x6c8] sm:$0xff] }
 0x69b   : > { %7285 = vmatprep.subr.bf16.mxu1 %v7156_v2  ;;  %7365 = vmatprep.subr.bf16.mxu0 %v7144_v13  ;;  %v7099_v2 = vld [vmem:[#allocation2 + $0x5c0] sm:$0xff]  ;;  %v7157_v13 = vld [vmem:[#allocation2 + $0x790] sm:$0xff] }
 0x69e   : > { %7286 = vmatpush1.bf16.msra.mxu1 %v7155_v7  ;;  %7366 = vmatpush1.bf16.msra.mxu0 %v7143_v16  ;;  %v7158_v7 = vld [vmem:[#allocation2 + $0x798] sm:$0xff]  ;;  %v7148_v16 = vld [vmem:[#allocation2 + $0x748] sm:$0xff] }
 0x69f   : > { %7296 = vmatprep.subr.bf16.mxu1 %v6918_v8  ;;  %7367 = vmatprep.subr.bf16.mxu0 %v7160_v17  ;;  %v7115_v8 = vld [vmem:[#allocation2 + $0x640] sm:$0xff]  ;;  %v6921_v17 = vld [vmem:[#allocation2 + $0x30] sm:$0xff] }
 0x6a1   : > { %7288 = vmatmul.mubr.bf16.vlgmr.msra.gmra.mrb[24].mxu1 %v11552_v12 }
 0x6a2   : > { %7297 = vmatpush1.bf16.msra.mxu1 %v6917_v14  ;;  %7328 = vmatprep.mubr.bf16.mxu1 %v11550_v9  ;;  %v6922_v14 = vld [vmem:[#allocation2 + $0x38] sm:$0xff] }
 0x6a3   : > { %7298 = vmatprep.subr.bf16.mxu1 %v6934_v15  ;;  %7368 = vmatpush1.bf16.msra.mxu0 %v7159_v20  ;;  %v7131_v15 = vld [vmem:[#allocation2 + $0x6c0] sm:$0xff]  ;;  %v7164_v20 = vld [vmem:[#allocation2 + $0x7c8] sm:$0xff] }
 0x6a4   : > { %7419 = vmatprep.subr.bf16.mxu0 %v6924_v21  ;;  %v6937_v21 = vld [vmem:[#allocation2 + $0xb0] sm:$0xff] }
 0x6a6   : > { %7299 = vmatpush1.bf16.msra.mxu1 %v6933_v18  ;;  %7370 = vmatmul.mubr.bf16.vlgmr.msra.gmra.mrb[8].mxu0 %v11552_v12  ;;  %v6938_v18 = vld [vmem:[#allocation2 + $0xb8] sm:$0xff] }
 0x6a7   : > { %7300 = vmatprep.subr.bf16.mxu1 %v6950_v19  ;;  %7420 = vmatpush1.bf16.msra.mxu0 %v6923_v24  ;;  %v7147_v19 = vld [vmem:[#allocation2 + $0x740] sm:$0xff]  ;;  %v6928_v24 = vld [vmem:[#allocation2 + $0x68] sm:$0xff] }
 0x6a8   : > { %7451 = vmatprep.mubr.bf16.mxu0 %v11550_v9  ;;  %7421 = vmatprep.subr.bf16.mxu0 %v6940_v25  ;;  %v6953_v25 = vld [vmem:[#allocation2 + $0x130] sm:$0xff] }
 0x6aa   : > { %7301 = vmatpush1.bf16.msra.mxu1 %v6949_v22  ;;  %v6954_v22 = vld [vmem:[#allocation2 + $0x138] sm:$0xff] }
 0x6ab   : > { %7302 = vmatprep.subr.bf16.mxu1 %v6966_v23  ;;  %7422 = vmatpush1.bf16.msra.mxu0 %v6939_v28  ;;  %v7163_v23 = vld [vmem:[#allocation2 + $0x7c0] sm:$0xff]  ;;  %v6944_v28 = vld [vmem:[#allocation2 + $0xe8] sm:$0xff] }
 0x6ac   : > { %7423 = vmatprep.subr.bf16.mxu0 %v6956_v29  ;;  %v6969_v29 = vld [vmem:[#allocation2 + $0x1b0] sm:$0xff] }
 0x6ae   : > { %7303 = vmatpush1.bf16.msra.mxu1 %v6965_v26  ;;  %v6970_v26 = vld [vmem:[#allocation2 + $0x1b8] sm:$0xff] }
 0x6af   : > { %7304 = vmatprep.subr.bf16.mxu1 %v6982_v27  ;;  %7424 = vmatpush1.bf16.msra.mxu0 %v6955_v32  ;;  %v6927_v27 = vld [vmem:[#allocation2 + $0x60] sm:$0xff]  ;;  %v6960_v32 = vld [vmem:[#allocation2 + $0x168] sm:$0xff] }
 0x6b0   : > { %7425 = vmatprep.subr.bf16.mxu0 %v6972_v33  ;;  %v6985_v33 = vld [vmem:[#allocation2 + $0x230] sm:$0xff] }
 0x6b2   : > { %7305 = vmatpush1.bf16.msra.mxu1 %v6981_v30  ;;  %v6986_v30 = vld [vmem:[#allocation2 + $0x238] sm:$0xff] }
 0x6b3   : > { %7306 = vmatprep.subr.bf16.mxu1 %v6998_v31  ;;  %7426 = vmatpush1.bf16.msra.mxu0 %v6971_v37  ;;  %v6943_v31 = vld [vmem:[#allocation2 + $0xe0] sm:$0xff]  ;;  %v6976_v37 = vld [vmem:[#allocation2 + $0x1e8] sm:$0xff] }
 0x6b4   : > { %7427 = vmatprep.subr.bf16.mxu0 %v6988_v38  ;;  %v7001_v38 = vld [vmem:[#allocation2 + $0x2b0] sm:$0xff] }
 0x6b6   : > { %7307 = vmatpush1.bf16.msra.mxu1 %v6997_v34  ;;  %v7002_v34 = vld [vmem:[#allocation2 + $0x2b8] sm:$0xff] }
 0x6b7   : > { %7308 = vmatprep.subr.bf16.mxu1 %v7014_v3  ;;  %7428 = vmatpush1.bf16.msra.mxu0 %v6987_v41  ;;  %v6959_v3 = vld [vmem:[#allocation2 + $0x160] sm:$0xff]  ;;  %v6992_v41 = vld [vmem:[#allocation2 + $0x268] sm:$0xff] }
 0x6b8   : > { %7429 = vmatprep.subr.bf16.mxu0 %v7004_v42  ;;  %v7017_v42 = vld [vmem:[#allocation2 + $0x330] sm:$0xff] }
 0x6ba   : > { %7309 = vmatpush1.bf16.msra.mxu1 %v7013_v39  ;;  %v7018_v39 = vld [vmem:[#allocation2 + $0x338] sm:$0xff] }
 0x6bb   : > { %7310 = vmatprep.subr.bf16.mxu1 %v7030_v40  ;;  %7430 = vmatpush1.bf16.msra.mxu0 %v7003_v44  ;;  %v6975_v40 = vld [vmem:[#allocation2 + $0x1e0] sm:$0xff]  ;;  %v7008_v44 = vld [vmem:[#allocation2 + $0x2e8] sm:$0xff] }
 0x6bc   : > { %7431 = vmatprep.subr.bf16.mxu0 %v7020_v45  ;;  %v7033_v45 = vld [vmem:[#allocation2 + $0x3b0] sm:$0xff] }
 0x6be   : > { %7311 = vmatpush1.bf16.msra.mxu1 %v7029_v43  ;;  %v7034_v43 = vld [vmem:[#allocation2 + $0x3b8] sm:$0xff] }
 0x6bf   : > { %7312 = vmatprep.subr.bf16.mxu1 %v7046_v11  ;;  %7432 = vmatpush1.bf16.msra.mxu0 %v7019_v35  ;;  %v6991_v11 = vld [vmem:[#allocation2 + $0x260] sm:$0xff]  ;;  %v7024_v35 = vld [vmem:[#allocation2 + $0x368] sm:$0xff] }
 0x6c0   : > { %7433 = vmatprep.subr.bf16.mxu0 %v7036_v48  ;;  %v7049_v48 = vld [vmem:[#allocation2 + $0x430] sm:$0xff] }
 0x6c2   : > { %7313 = vmatpush1.bf16.msra.mxu1 %v7045_v46  ;;  %v7050_v46 = vld [vmem:[#allocation2 + $0x438] sm:$0xff] }
 0x6c3   : > { %7314 = vmatprep.subr.bf16.mxu1 %v7062_v47  ;;  %7434 = vmatpush1.bf16.msra.mxu0 %v7035_v51  ;;  %v7007_v47 = vld [vmem:[#allocation2 + $0x2e0] sm:$0xff]  ;;  %v7040_v51 = vld [vmem:[#allocation2 + $0x3e8] sm:$0xff] }
 0x6c4   : > { %7435 = vmatprep.subr.bf16.mxu0 %v7052_v52  ;;  %v7065_v52 = vld [vmem:[#allocation2 + $0x4b0] sm:$0xff] }
 0x6c6   : > { %7315 = vmatpush1.bf16.msra.mxu1 %v7061_v49  ;;  %v7066_v49 = vld [vmem:[#allocation2 + $0x4b8] sm:$0xff] }
 0x6c7   : > { %7316 = vmatprep.subr.bf16.mxu1 %v7078_v50  ;;  %7436 = vmatpush1.bf16.msra.mxu0 %v7051_v55  ;;  %v7023_v50 = vld [vmem:[#allocation2 + $0x360] sm:$0xff]  ;;  %v7056_v55 = vld [vmem:[#allocation2 + $0x468] sm:$0xff] }
 0x6c8   : > { %7437 = vmatprep.subr.bf16.mxu0 %v7068_v57  ;;  %v7081_v57 = vld [vmem:[#allocation2 + $0x530] sm:$0xff] }
 0x6ca   : > { %7317 = vmatpush1.bf16.msra.mxu1 %v7077_v53  ;;  %v7082_v53 = vld [vmem:[#allocation2 + $0x538] sm:$0xff] }
 0x6cb   : > { %7318 = vmatprep.subr.bf16.mxu1 %v7094_v54  ;;  %7438 = vmatpush1.bf16.msra.mxu0 %v7067_v36  ;;  %v7039_v54 = vld [vmem:[#allocation2 + $0x3e0] sm:$0xff]  ;;  %v7072_v36 = vld [vmem:[#allocation2 + $0x4e8] sm:$0xff] }
 0x6cc   : > { %7439 = vmatprep.subr.bf16.mxu0 %v7084_v56  ;;  %v7097_v56 = vld [vmem:[#allocation2 + $0x5b0] sm:$0xff] }
 0x6ce   : > { %7319 = vmatpush1.bf16.msra.mxu1 %v7093_v58  ;;  %v7098_v58 = vld [vmem:[#allocation2 + $0x5b8] sm:$0xff] }
 0x6cf   : > { %7320 = vmatprep.subr.bf16.mxu1 %v7110_v60  ;;  %7440 = vmatpush1.bf16.msra.mxu0 %v7083_v62  ;;  %v7055_v60 = vld [vmem:[#allocation2 + $0x460] sm:$0xff]  ;;  %v7088_v62 = vld [vmem:[#allocation2 + $0x568] sm:$0xff] }
 0x6d0   : > { %7441 = vmatprep.subr.bf16.mxu0 %v7100_v63  ;;  %v7113_v63 = vld [vmem:[#allocation2 + $0x630] sm:$0xff] }
 0x6d2   : > { %7321 = vmatpush1.bf16.msra.mxu1 %v7109_v61  ;;  %v7114_v61 = vld [vmem:[#allocation2 + $0x638] sm:$0xff] }
 0x6d3   : > { %7322 = vmatprep.subr.bf16.mxu1 %v7126_v6  ;;  %7442 = vmatpush1.bf16.msra.mxu0 %v7099_v2  ;;  %v7071_v6 = vld [vmem:[#allocation2 + $0x4e0] sm:$0xff]  ;;  %v7104_v2 = vld [vmem:[#allocation2 + $0x5e8] sm:$0xff] }
 0x6d4   : > { %7443 = vmatprep.subr.bf16.mxu0 %v7116_v4  ;;  %v7129_v4 = vld [vmem:[#allocation2 + $0x6b0] sm:$0xff] }
 0x6d6   : > { %7323 = vmatpush1.bf16.msra.mxu1 %v7125_v0  ;;  %v7130_v0 = vld [vmem:[#allocation2 + $0x6b8] sm:$0xff] }
 0x6d7   : > { %7324 = vmatprep.subr.bf16.mxu1 %v7142_v1  ;;  %7444 = vmatpush1.bf16.msra.mxu0 %v7115_v8  ;;  %v7087_v1 = vld [vmem:[#allocation2 + $0x560] sm:$0xff]  ;;  %v7120_v8 = vld [vmem:[#allocation2 + $0x668] sm:$0xff] }
 0x6d8   : > { %7445 = vmatprep.subr.bf16.mxu0 %v7132_v10  ;;  %v7145_v10 = vld [vmem:[#allocation2 + $0x730] sm:$0xff] }
 0x6da   : > { %7325 = vmatpush1.bf16.msra.mxu1 %v7141_v5  ;;  %v7146_v5 = vld [vmem:[#allocation2 + $0x738] sm:$0xff] }
 0x6db   : > { %7326 = vmatprep.subr.bf16.mxu1 %v7158_v7  ;;  %7446 = vmatpush1.bf16.msra.mxu0 %v7131_v15  ;;  %v7103_v7 = vld [vmem:[#allocation2 + $0x5e0] sm:$0xff]  ;;  %v7136_v15 = vld [vmem:[#allocation2 + $0x6e8] sm:$0xff] }
 0x6dc   : > { %7447 = vmatprep.subr.bf16.mxu0 %v7148_v16  ;;  %v7161_v16 = vld [vmem:[#allocation2 + $0x7b0] sm:$0xff] }
 0x6de   : > { %7327 = vmatpush1.bf16.msra.mxu1 %v7157_v13  ;;  %v7162_v13 = vld [vmem:[#allocation2 + $0x7b8] sm:$0xff] }
 0x6df   : > { %7378 = vmatprep.subr.bf16.mxu1 %v6922_v14  ;;  %7448 = vmatpush1.bf16.msra.mxu0 %v7147_v19  ;;  %v7119_v14 = vld [vmem:[#allocation2 + $0x660] sm:$0xff]  ;;  %v7152_v19 = vld [vmem:[#allocation2 + $0x768] sm:$0xff] }
 0x6e0   : > { %7449 = vmatprep.subr.bf16.mxu0 %v7164_v20  ;;  %v6925_v20 = vld [vmem:[#allocation2 + $0x50] sm:$0xff] }
 0x6e1   : > { %7329 = vmatmul.mubr.bf16.vlgmr.msra.gmra.mrb[28].mxu1 %v11552_v12 }
 0x6e2   : > { %7379 = vmatpush1.bf16.msra.mxu1 %v6921_v17  ;;  %7410 = vmatprep.mubr.bf16.mxu1 %v11550_v9  ;;  %v6926_v17 = vld [vmem:[#allocation2 + $0x58] sm:$0xff] }
 0x6e3   : > { %7380 = vmatprep.subr.bf16.mxu1 %v6938_v18  ;;  %7450 = vmatpush1.bf16.msra.mxu0 %v7163_v23  ;;  %v7135_v18 = vld [vmem:[#allocation2 + $0x6e0] sm:$0xff]  ;;  %v7168_v23 = vld [vmem:[#allocation2 + $0x7e8] sm:$0xff] }
 0x6e4   : > { %7501 = vmatprep.subr.bf16.mxu0 %v6928_v24  ;;  %v6941_v24 = vld [vmem:[#allocation2 + $0xd0] sm:$0xff] }
 0x6e6   : > { %7381 = vmatpush1.bf16.msra.mxu1 %v6937_v21  ;;  %7452 = vmatmul.mubr.bf16.vlgmr.msra.gmra.mrb[12].mxu0 %v11552_v12  ;;  %v6942_v21 = vld [vmem:[#allocation2 + $0xd8] sm:$0xff] }
 0x6e7   : > { %7382 = vmatprep.subr.bf16.mxu1 %v6954_v22  ;;  %7502 = vmatpush1.bf16.msra.mxu0 %v6927_v27  ;;  %v7151_v22 = vld [vmem:[#allocation2 + $0x760] sm:$0xff] }
 0x6e8   : > { %7533 = vmatprep.mubr.bf16.mxu0 %v11550_v9  ;;  %7503 = vmatprep.subr.bf16.mxu0 %v6944_v28  ;;  %v7655_v27 = vld [vmem:[#allocation3 + $0x40] sm:$0xff]  ;;  %v6957_v28 = vld [vmem:[#allocation2 + $0x150] sm:$0xff] }
 0x6ea   : > { %7383 = vmatpush1.bf16.msra.mxu1 %v6953_v25  ;;  %v6958_v25 = vld [vmem:[#allocation2 + $0x158] sm:$0xff] }
 0x6eb   : > { %7384 = vmatprep.subr.bf16.mxu1 %v6970_v26  ;;  %7504 = vmatpush1.bf16.msra.mxu0 %v6943_v31  ;;  %v7167_v26 = vld [vmem:[#allocation2 + $0x7e0] sm:$0xff]  ;;  %v7656_v31 = vld [vmem:[#allocation3 + $0x48] sm:$0xff] }
 0x6ec   : > { %7505 = vmatprep.subr.bf16.mxu0 %v6960_v32  ;;  %v6973_v32 = vld [vmem:[#allocation2 + $0x1d0] sm:$0xff] }
 0x6ee   : > { %7385 = vmatpush1.bf16.msra.mxu1 %v6969_v29  ;;  %v6974_v29 = vld [vmem:[#allocation2 + $0x1d8] sm:$0xff] }
 0x6ef   : > { %7386 = vmatprep.subr.bf16.mxu1 %v6986_v30  ;;  %7506 = vmatpush1.bf16.msra.mxu0 %v6959_v3  ;;  %v7647_v30 = vld [vmem:[#allocation3] sm:$0xff]  ;;  %v7657_v3 = vld [vmem:[#allocation3 + $0x50] sm:$0xff] }
 0x6f0   : > { %7507 = vmatprep.subr.bf16.mxu0 %v6976_v37  ;;  %v6989_v37 = vld [vmem:[#allocation2 + $0x250] sm:$0xff] }
 0x6f2   : > { %7387 = vmatpush1.bf16.msra.mxu1 %v6985_v33  ;;  %v6990_v33 = vld [vmem:[#allocation2 + $0x258] sm:$0xff] }
 0x6f3   : > { %7388 = vmatprep.subr.bf16.mxu1 %v7002_v34  ;;  %7508 = vmatpush1.bf16.msra.mxu0 %v6975_v40  ;;  %v7648_v34 = vld [vmem:[#allocation3 + $0x8] sm:$0xff]  ;;  %v7658_v40 = vld [vmem:[#allocation3 + $0x58] sm:$0xff] }
 0x6f4   : > { %7509 = vmatprep.subr.bf16.mxu0 %v6992_v41  ;;  %v7005_v41 = vld [vmem:[#allocation2 + $0x2d0] sm:$0xff] }
 0x6f6   : > { %7389 = vmatpush1.bf16.msra.mxu1 %v7001_v38  ;;  %v7006_v38 = vld [vmem:[#allocation2 + $0x2d8] sm:$0xff] }
 0x6f7   : > { %7390 = vmatprep.subr.bf16.mxu1 %v7018_v39  ;;  %7510 = vmatpush1.bf16.msra.mxu0 %v6991_v11  ;;  %v7649_v39 = vld [vmem:[#allocation3 + $0x10] sm:$0xff]  ;;  %v7659_v11 = vld [vmem:[#allocation3 + $0x60] sm:$0xff] }
 0x6f8   : > { %7511 = vmatprep.subr.bf16.mxu0 %v7008_v44  ;;  %v7021_v44 = vld [vmem:[#allocation2 + $0x350] sm:$0xff] }
 0x6fa   : > { %7391 = vmatpush1.bf16.msra.mxu1 %v7017_v42  ;;  %v7022_v42 = vld [vmem:[#allocation2 + $0x358] sm:$0xff] }
 0x6fb   : > { %7392 = vmatprep.subr.bf16.mxu1 %v7034_v43  ;;  %7512 = vmatpush1.bf16.msra.mxu0 %v7007_v47  ;;  %v7650_v43 = vld [vmem:[#allocation3 + $0x18] sm:$0xff]  ;;  %v7660_v47 = vld [vmem:[#allocation3 + $0x68] sm:$0xff] }
 0x6fc   : > { %7513 = vmatprep.subr.bf16.mxu0 %v7024_v35  ;;  %v7037_v35 = vld [vmem:[#allocation2 + $0x3d0] sm:$0xff] }
 0x6fe   : > { %7393 = vmatpush1.bf16.msra.mxu1 %v7033_v45  ;;  %v7038_v45 = vld [vmem:[#allocation2 + $0x3d8] sm:$0xff] }
 0x6ff   : > { %7394 = vmatprep.subr.bf16.mxu1 %v7050_v46  ;;  %7514 = vmatpush1.bf16.msra.mxu0 %v7023_v50  ;;  %v7651_v46 = vld [vmem:[#allocation3 + $0x20] sm:$0xff]  ;;  %v7661_v50 = vld [vmem:[#allocation3 + $0x70] sm:$0xff] }
 0x700   : > { %7515 = vmatprep.subr.bf16.mxu0 %v7040_v51  ;;  %v7053_v51 = vld [vmem:[#allocation2 + $0x450] sm:$0xff] }
 0x702   : > { %7395 = vmatpush1.bf16.msra.mxu1 %v7049_v48  ;;  %v7054_v48 = vld [vmem:[#allocation2 + $0x458] sm:$0xff] }
 0x703   : > { %7396 = vmatprep.subr.bf16.mxu1 %v7066_v49  ;;  %7516 = vmatpush1.bf16.msra.mxu0 %v7039_v54  ;;  %v7652_v49 = vld [vmem:[#allocation3 + $0x28] sm:$0xff]  ;;  %v7662_v54 = vld [vmem:[#allocation3 + $0x78] sm:$0xff] }
 0x704   : > { %7517 = vmatprep.subr.bf16.mxu0 %v7056_v55  ;;  %v7069_v55 = vld [vmem:[#allocation2 + $0x4d0] sm:$0xff] }
 0x706   : > { %7397 = vmatpush1.bf16.msra.mxu1 %v7065_v52  ;;  %v7070_v52 = vld [vmem:[#allocation2 + $0x4d8] sm:$0xff] }
 0x707   : > { %7398 = vmatprep.subr.bf16.mxu1 %v7082_v53  ;;  %7518 = vmatpush1.bf16.msra.mxu0 %v7055_v60  ;;  %v7653_v53 = vld [vmem:[#allocation3 + $0x30] sm:$0xff]  ;;  %v7687_v60 = vld [vmem:[#allocation3 + $0x140] sm:$0xff] }
 0x708   : > { %7519 = vmatprep.subr.bf16.mxu0 %v7072_v36  ;;  %v7085_v36 = vld [vmem:[#allocation2 + $0x550] sm:$0xff] }
 0x70a   : > { %7399 = vmatpush1.bf16.msra.mxu1 %v7081_v57  ;;  %v7086_v57 = vld [vmem:[#allocation2 + $0x558] sm:$0xff] }
 0x70b   : > { %7400 = vmatprep.subr.bf16.mxu1 %v7098_v58  ;;  %7520 = vmatpush1.bf16.msra.mxu0 %v7071_v6  ;;  %v7654_v58 = vld [vmem:[#allocation3 + $0x38] sm:$0xff] }
 0x70c   : > { %7521 = vmatprep.subr.bf16.mxu0 %v7088_v62  ;;  %v7118_v6 = vld [vmem:[#allocation2 + $0x658] sm:$0xff]  ;;  %v7117_v62 = vld [vmem:[#allocation2 + $0x650] sm:$0xff] }
 0x70e   : > { %7401 = vmatpush1.bf16.msra.mxu1 %v7097_v56  ;;  %v7102_v56 = vld [vmem:[#allocation2 + $0x5d8] sm:$0xff] }
 0x70f   : > { %7402 = vmatprep.subr.bf16.mxu1 %v7114_v61  ;;  %7522 = vmatpush1.bf16.msra.mxu0 %v7087_v1  ;;  %v7101_v61 = vld [vmem:[#allocation2 + $0x5d0] sm:$0xff]  ;;  %v7150_v1 = vld [vmem:[#allocation2 + $0x758] sm:$0xff] }
 0x710   : > { %7523 = vmatprep.subr.bf16.mxu0 %v7104_v2  ;;  %v7149_v2 = vld [vmem:[#allocation2 + $0x750] sm:$0xff] }
 0x712   : > { %7403 = vmatpush1.bf16.msra.mxu1 %v7113_v63  ;;  %v7134_v63 = vld [vmem:[#allocation2 + $0x6d8] sm:$0xff] }
 0x713   : > { %7404 = vmatprep.subr.bf16.mxu1 %v7130_v0  ;;  %7524 = vmatpush1.bf16.msra.mxu0 %v7103_v7  ;;  %v7133_v0 = vld [vmem:[#allocation2 + $0x6d0] sm:$0xff]  ;;  %v6930_v7 = vld [vmem:[#allocation2 + $0x78] sm:$0xff] }
 0x714   : > { %7525 = vmatprep.subr.bf16.mxu0 %v7120_v8  ;;  %v6929_v8 = vld [vmem:[#allocation2 + $0x70] sm:$0xff] }
 0x716   : > { %7405 = vmatpush1.bf16.msra.mxu1 %v7129_v4  ;;  %v7166_v4 = vld [vmem:[#allocation2 + $0x7d8] sm:$0xff] }
 0x717   : > { %7406 = vmatprep.subr.bf16.mxu1 %v7146_v5  ;;  %7526 = vmatpush1.bf16.msra.mxu0 %v7119_v14  ;;  %v7165_v5 = vld [vmem:[#allocation2 + $0x7d0] sm:$0xff]  ;;  %v6962_v14 = vld [vmem:[#allocation2 + $0x178] sm:$0xff] }
 0x718   : > { %7527 = vmatprep.subr.bf16.mxu0 %v7136_v15  ;;  %v6961_v15 = vld [vmem:[#allocation2 + $0x170] sm:$0xff] }
 0x71a   : > { %7407 = vmatpush1.bf16.msra.mxu1 %v7145_v10  ;;  %v6946_v10 = vld [vmem:[#allocation2 + $0xf8] sm:$0xff] }
 0x71b   : > { %7408 = vmatprep.subr.bf16.mxu1 %v7162_v13  ;;  %7528 = vmatpush1.bf16.msra.mxu0 %v7135_v18  ;;  %v6945_v13 = vld [vmem:[#allocation2 + $0xf0] sm:$0xff]  ;;  %v6994_v18 = vld [vmem:[#allocation2 + $0x278] sm:$0xff] }
 0x71c   : > { %7529 = vmatprep.subr.bf16.mxu0 %v7152_v19  ;;  %v7177_v19 = vsub.s32 0, %v11193_v59 }
 0x71e   : > { %7409 = vmatpush1.bf16.msra.mxu1 %v7161_v16  ;;  %v6978_v16 = vld [vmem:[#allocation2 + $0x1f8] sm:$0xff] }
 0x71f   : > { %7460 = vmatprep.subr.bf16.mxu1 %v6926_v17  ;;  %7530 = vmatpush1.bf16.msra.mxu0 %v7151_v22  ;;  %v6977_v17 = vld [vmem:[#allocation2 + $0x1f0] sm:$0xff]  ;;  %v7010_v22 = vld [vmem:[#allocation2 + $0x2f8] sm:$0xff] }
 0x720   : > { %7531 = vmatprep.subr.bf16.mxu0 %v7168_v23 }
 0x721   : > { %7411 = vmatmul.mubr.bf16.vlgmr.msra.gmra.mrb[32].mxu1 %v11552_v12 }
 0x722   : > { %7461 = vmatpush1.bf16.msra.mxu1 %v6925_v20  ;;  %7492 = vmatprep.mubr.bf16.mxu1 %v11550_v9  ;;  %v11578_v20 = vld [vmem:[#allocation7] sm:$0xff] }
 0x723   : > { %7462 = vmatprep.subr.bf16.mxu1 %v6942_v21  ;;  %7532 = vmatpush1.bf16.msra.mxu0 %v7167_v26  ;;  %v7181_v21 = vsub.s32 1, %v11193_v59  ;;  %v7178_v23 = vrot.slane %v11578_v20, %v7177_v19 }
 0x724   : > { %8525 = vmatprep.subr.bf16.mxu0 %v7655_v27  ;;  %v7026_v27 = vld [vmem:[#allocation2 + $0x378] sm:$0xff] }
 0x726   : > { %7463 = vmatpush1.bf16.msra.mxu1 %v6941_v24  ;;  %7534 = vmatmul.mubr.bf16.vlgmr.msra.gmra.mrb[16].mxu0 %v11552_v12  ;;  %v7182_v24 = vrot.slane %v11578_v20, %v7181_v21 }
 0x727   : > { %7464 = vmatprep.subr.bf16.mxu1 %v6958_v25  ;;  %8526 = vmatpush3.bf16.msra.mxu0 %v7647_v30  ;;  %v7009_v25 = vld [vmem:[#allocation2 + $0x2f0] sm:$0xff] }
 0x728   : > { %8527 = vmatprep.subr.bf16.mxu0 %v7656_v31 }
 0x72a   : > { %7465 = vmatpush1.bf16.msra.mxu1 %v6957_v28 }
 0x72b   : > { %7466 = vmatprep.subr.bf16.mxu1 %v6974_v29  ;;  %8528 = vmatpush3.bf16.msra.mxu0 %v7648_v34  ;;  %v7025_v34 = vld [vmem:[#allocation2 + $0x370] sm:$0xff] }
 0x72c   : > { %8529 = vmatprep.subr.bf16.mxu0 %v7657_v3 }
 0x72e   : > { %7467 = vmatpush1.bf16.msra.mxu1 %v6973_v32 }
 0x72f   : > { %7468 = vmatprep.subr.bf16.mxu1 %v6990_v33  ;;  %8530 = vmatpush3.bf16.msra.mxu0 %v7649_v39 }
 0x730   : > { %8531 = vmatprep.subr.bf16.mxu0 %v7658_v40 }
 0x732   : > { %7469 = vmatpush1.bf16.msra.mxu1 %v6989_v37  ;;  %v7042_v37 = vld [vmem:[#allocation2 + $0x3f8] sm:$0xff] }
 0x733   : > { %7470 = vmatprep.subr.bf16.mxu1 %v7006_v38  ;;  %8532 = vmatpush3.bf16.msra.mxu0 %v7650_v43  ;;  %v7197_v38 = vsub.s32 5, %v11193_v59 }
 0x734   : > { %8533 = vmatprep.subr.bf16.mxu0 %v7659_v11  ;;  %v7058_v11 = vld [vmem:[#allocation2 + $0x478] sm:$0xff] }
 0x736   : > { %7471 = vmatpush1.bf16.msra.mxu1 %v7005_v41 }
 0x737   : > { %7472 = vmatprep.subr.bf16.mxu1 %v7022_v42  ;;  %8534 = vmatpush3.bf16.msra.mxu0 %v7651_v46  ;;  %v7041_v42 = vld [vmem:[#allocation2 + $0x3f0] sm:$0xff]  ;;  %v7688_v46 = vld [vmem:[#allocation3 + $0x148] sm:$0xff] }
 0x738   : > { %8535 = vmatprep.subr.bf16.mxu0 %v7660_v47 }
 0x73a   : > { %7473 = vmatpush1.bf16.msra.mxu1 %v7021_v44  ;;  %v7679_v44 = vld [vmem:[#allocation3 + $0x100] sm:$0xff] }
 0x73b   : > { %7474 = vmatprep.subr.bf16.mxu1 %v7038_v45  ;;  %8536 = vmatpush3.bf16.msra.mxu0 %v7652_v49  ;;  %v7198_v45 = vrot.slane %v11578_v20, %v7197_v38  ;;  %v7074_v49 = vld [vmem:[#allocation2 + $0x4f8] sm:$0xff] }
 0x73c   : > { %8537 = vmatprep.subr.bf16.mxu0 %v7661_v50  ;;  %v7680_v50 = vld [vmem:[#allocation3 + $0x108] sm:$0xff] }
 0x73e   : > { %7475 = vmatpush1.bf16.msra.mxu1 %v7037_v35  ;;  %v7057_v35 = vld [vmem:[#allocation2 + $0x470] sm:$0xff] }
 0x73f   : > { %7476 = vmatprep.subr.bf16.mxu1 %v7054_v48  ;;  %8538 = vmatpush3.bf16.msra.mxu0 %v7653_v53  ;;  %v7689_v53 = vld [vmem:[#allocation3 + $0x150] sm:$0xff] }
 0x740   : > { %8539 = vmatprep.subr.bf16.mxu0 %v7662_v54 }
 0x742   : > { %7477 = vmatpush1.bf16.msra.mxu1 %v7053_v51 }
 0x743   : > { %7478 = vmatprep.subr.bf16.mxu1 %v7070_v52  ;;  %8540 = vmatpush3.bf16.msra.mxu0 %v7654_v58  ;;  %v7090_v58 = vld [vmem:[#allocation2 + $0x578] sm:$0xff] }
 0x744   : > { %8569 = vmatprep.subr.bf16.mxu0 %v7687_v60  ;;  %v7681_v60 = vld [vmem:[#allocation3 + $0x110] sm:$0xff] }
 0x746   : > { %7479 = vmatpush1.bf16.msra.mxu1 %v7069_v55 }
 0x747   : > { %7480 = vmatprep.subr.bf16.mxu1 %v7086_v57  ;;  %v7073_v57 = vld [vmem:[#allocation2 + $0x4f0] sm:$0xff] }
 0x74a   : > { %7481 = vmatpush1.bf16.msra.mxu1 %v7085_v36 }
 0x74b   : > { %7482 = vmatprep.subr.bf16.mxu1 %v7102_v56  ;;  %v7690_v56 = vld [vmem:[#allocation3 + $0x158] sm:$0xff] }
 0x74e   : > { %7483 = vmatpush1.bf16.msra.mxu1 %v7101_v61 }
 0x74f   : > { %7484 = vmatprep.subr.bf16.mxu1 %v7118_v6  ;;  %v7089_v6 = vld [vmem:[#allocation2 + $0x570] sm:$0xff] }
 0x752   : > { %7485 = vmatpush1.bf16.msra.mxu1 %v7117_v62  ;;  %v7193_v62 = vsub.s32 4, %v11193_v59 }
 0x753   : > { %7486 = vmatprep.subr.bf16.mxu1 %v7134_v63  ;;  %v7106_v63 = vld [vmem:[#allocation2 + $0x5f8] sm:$0xff] }
 0x756   : > { %7487 = vmatpush1.bf16.msra.mxu1 %v7133_v0  ;;  %v7682_v0 = vld [vmem:[#allocation3 + $0x118] sm:$0xff] }
 0x757   : > { %7488 = vmatprep.subr.bf16.mxu1 %v7150_v1  ;;  %v7691_v1 = vld [vmem:[#allocation3 + $0x160] sm:$0xff] }
 0x75a   : > { %7489 = vmatpush1.bf16.msra.mxu1 %v7149_v2  ;;  %v7105_v2 = vld [vmem:[#allocation2 + $0x5f0] sm:$0xff] }
 0x75b   : > { %7490 = vmatprep.subr.bf16.mxu1 %v7166_v4  ;;  %v7194_v4 = vrot.slane %v11578_v20, %v7193_v62 }
 0x75e   : > { %7491 = vmatpush1.bf16.msra.mxu1 %v7165_v5  ;;  %v7122_v5 = vld [vmem:[#allocation2 + $0x678] sm:$0xff] }
 0x75f   : > { %7542 = vmatprep.subr.bf16.mxu1 %v6930_v7  ;;  %v7683_v7 = vld [vmem:[#allocation3 + $0x120] sm:$0xff] }
 0x761   : > { %7493 = vmatmul.mubr.bf16.vlgmr.msra.gmra.mrb[36].mxu1 %v11552_v12 }
 0x762   : > { %7543 = vmatpush1.bf16.msra.mxu1 %v6929_v8  ;;  %7574 = vmatprep.mubr.bf16.mxu1 %v11550_v9  ;;  %v6993_v9 = vld [vmem:[#allocation2 + $0x270] sm:$0xff]  ;;  %v7692_v8 = vld [vmem:[#allocation3 + $0x168] sm:$0xff] }
 0x763   : > { %7544 = vmatprep.subr.bf16.mxu1 %v6946_v10  ;;  %v7121_v10 = vld [vmem:[#allocation2 + $0x670] sm:$0xff] }
 0x766   : > { %7545 = vmatpush1.bf16.msra.mxu1 %v6945_v13 }
 0x767   : > { %7546 = vmatprep.subr.bf16.mxu1 %v6962_v14  ;;  %v7138_v14 = vld [vmem:[#allocation2 + $0x6f8] sm:$0xff] }
 0x76a   : > { %7547 = vmatpush1.bf16.msra.mxu1 %v6961_v15  ;;  %v7684_v15 = vld [vmem:[#allocation3 + $0x128] sm:$0xff] }
 0x76b   : > { %7548 = vmatprep.subr.bf16.mxu1 %v6978_v16  ;;  %v7693_v16 = vld [vmem:[#allocation3 + $0x170] sm:$0xff] }
 0x76e   : > { %7549 = vmatpush1.bf16.msra.mxu1 %v6977_v17  ;;  %v7137_v17 = vld [vmem:[#allocation2 + $0x6f0] sm:$0xff] }
 0x76f   : > { %7550 = vmatprep.subr.bf16.mxu1 %v6994_v18 }
 0x772   : > { %7551 = vmatpush1.bf16.msra.mxu1 %v6993_v9  ;;  %v7154_v9 = vld [vmem:[#allocation2 + $0x778] sm:$0xff] }
 0x773   : > { %7552 = vmatprep.subr.bf16.mxu1 %v7010_v22  ;;  %v7685_v22 = vld [vmem:[#allocation3 + $0x130] sm:$0xff] }
 0x774   : > { %v7289_v26 = vpop.f32.mrb[24].mxu1 }
 0x775   : > { %v7290_v28 = vadd.f32 %v7289_v26, %v7178_v23  ;;  %v7291_v29 = vpop.f32.mrb[25].mxu1  ;;  %v7694_v23 = vld [vmem:[#allocation3 + $0x178] sm:$0xff] }
 0x776   : > { %v7292_v30 = vadd.f32 %v7291_v29, %v7182_v24  ;;  %v7293_v31 = vpop.f32.mrb[26].mxu1  ;;  %7553 = vmatpush1.bf16.msra.mxu1 %v7009_v25  ;;  %v7153_v24 = vld [vmem:[#allocation2 + $0x770] sm:$0xff]  ;;  %v7170_v26 = vld [vmem:[#allocation2 + $0x7f8] sm:$0xff] }
 0x777   : > { %vm7583_vm1 = vcmp.gt.f32.partialorder %v7290_v28, 0.0  ;;  %v7599_v32 = vmul.f32 0.2, %v7290_v28  ;;  %v7294_v33 = vpop.f32.mrb[27].mxu1  ;;  %7554 = vmatprep.subr.bf16.mxu1 %v7026_v27  ;;  %v7686_v27 = vld [vmem:[#allocation3 + $0x138] sm:$0xff]  ;;  %v7671_v31 = vld [vmem:[#allocation3 + $0xc0] sm:$0xff] }
 0x778   : > { %vm7584_vm2 = vcmp.gt.f32.partialorder %v7292_v30, 0.0  ;;  %v7600_v3 = vmul.f32 0.2, %v7292_v30  ;;  %v7720_v33 = vld [vmem:[#allocation3 + $0x248] sm:$0xff] }
 0x779   : > { %v7615_v39 = vsel %vm7583_vm1, %v7290_v28, %v7599_v32  ;;  %v7371_v47 = vpop.f32.mrb[8].mxu0  ;;  %v7719_v28 = vld [vmem:[#allocation3 + $0x240] sm:$0xff]  ;;  %vm8096_vm1 = vcmask 516096  }
 0x77a   : > { %7555 = vmatpush1.bf16.msra.mxu1 %v7025_v34  ;;  %v7616_v40 = vsel %vm7584_vm2, %v7292_v30, %v7600_v3  ;;  %v7631_v43 = vpack.c.bf16 %v7615_v39, %v7615_v39  ;;  %v7373_v48 = vpop.f32.mrb[9].mxu0  ;;  %v7372_v13 = vadd.f32 %v7371_v47, %v7194_v4  ;;  %v7169_v30 = vld [vmem:[#allocation2 + $0x7f0] sm:$0xff]  ;;  %v7711_v32 = vld [vmem:[#allocation3 + $0x200] sm:$0xff]  ;;  %v7672_v3 = vld [vmem:[#allocation3 + $0xc8] sm:$0xff] }
 0x77b   : > { %7556 = vmatprep.subr.bf16.mxu1 %v7042_v37  ;;  %v7632_v41 = vpack.c.bf16 %v7616_v40, %v7616_v40  ;;  %v7374_v51 = vadd.f32 %v7373_v48, %v7198_v45  ;;  %v7375_v52 = vpop.f32.mrb[10].mxu0  ;;  %v7663_v34 = vld [vmem:[#allocation3 + $0x80] sm:$0xff]  ;;  %v7712_v37 = vld [vmem:[#allocation3 + $0x208] sm:$0xff]  ;;  %v7721_v39 = vld [vmem:[#allocation3 + $0x250] sm:$0xff]  ;;  %v7185_v48 = vsub.s32 2, %v11193_v59 }
 0x77c   : > { %v7376_v54 = vpop.f32.mrb[11].mxu0  ;;  %v7603_v18 = vmul.f32 0.2, %v7372_v13  ;;  %vm7587_vm4 = vcmp.gt.f32.partialorder %v7372_v13, 0.0  ;;  %v7664_v40 = vld [vmem:[#allocation3 + $0x88] sm:$0xff]  ;;  %v7714_v45 = vld [vmem:[#allocation3 + $0x218] sm:$0xff] }
 0x77d   : > { %7808 = vmatprep.mubr.bf16.mxu0 %v7632_v41  ;;  %vm7588_vm3 = vcmp.gt.f32.partialorder %v7374_v51, 0.0  ;;  %v7604_v55 = vmul.f32 0.2, %v7374_v51  ;;  %v7673_v41 = vld [vmem:[#allocation3 + $0xd0] sm:$0xff]  ;;  %v7675_v47 = vld [vmem:[#allocation3 + $0xe0] sm:$0xff]  ;;  %v7676_v52 = vld [vmem:[#allocation3 + $0xe8] sm:$0xff]  ;;  %v7186_v54 = vrot.slane %v11578_v20, %v7185_v48 }
 0x77e   : > { %7557 = vmatpush1.bf16.msra.mxu1 %v7041_v42  ;;  %7809 = vmatmul.mubr.bf16.vlgmr.msra.gmra.mrb[20].mxu0 %v7631_v43  ;;  %v7619_v25 = vsel %vm7587_vm4, %v7372_v13, %v7603_v18  ;;  %v7713_v42 = vld [vmem:[#allocation3 + $0x210] sm:$0xff]  ;;  %v7722_v43 = vld [vmem:[#allocation3 + $0x258] sm:$0xff] }
 0x77f   : > { %7558 = vmatprep.subr.bf16.mxu1 %v7058_v11  ;;  %8570 = vmatpush3.bf16.msra.mxu0 %v7679_v44  ;;  %v7620_v36 = vsel %vm7588_vm3, %v7374_v51, %v7604_v55  ;;  %v7635_v29 = vpack.c.bf16 %v7619_v25, %v7619_v25  ;;  %v7665_v11 = vld [vmem:[#allocation3 + $0x90] sm:$0xff]  ;;  %v7674_v44 = vld [vmem:[#allocation3 + $0xd8] sm:$0xff]  ;;  %v7667_v51 = vld [vmem:[#allocation3 + $0xa0] sm:$0xff] }
 0x780   : > { %8571 = vmatprep.subr.bf16.mxu0 %v7688_v46  ;;  %v7636_v61 = vpack.c.bf16 %v7620_v36, %v7620_v36  ;;  %v7723_v46 = vld [vmem:[#allocation3 + $0x260] sm:$0xff]  ;;  %v7725_v55 = vld [vmem:[#allocation3 + $0x270] sm:$0xff]  ;;  %v7718_v13 = vld [vmem:[#allocation3 + $0x238] sm:$0xff] }
 0x781   : > { %v7677_v36 = vld [vmem:[#allocation3 + $0xf0] sm:$0xff] }
 0x782   : > { %7559 = vmatpush1.bf16.msra.mxu1 %v7057_v35  ;;  %7888 = vmatprep.mubr.bf16.mxu0 %v7636_v61  ;;  %v7715_v35 = vld [vmem:[#allocation3 + $0x220] sm:$0xff]  ;;  %v7669_v4 = vld [vmem:[#allocation3 + $0xb0] sm:$0xff] }
 0x783   : > { %7560 = vmatprep.subr.bf16.mxu1 %v7074_v49  ;;  %8572 = vmatpush3.bf16.msra.mxu0 %v7680_v50  ;;  %v7724_v49 = vld [vmem:[#allocation3 + $0x268] sm:$0xff]  ;;  %v7189_v50 = vsub.s32 3, %v11193_v59 }
 0x784   : > { %8573 = vmatprep.subr.bf16.mxu0 %v7689_v53  ;;  %v7716_v53 = vld [vmem:[#allocation3 + $0x228] sm:$0xff] }
 0x786   : > { %7561 = vmatpush1.bf16.msra.mxu1 %v7073_v57  ;;  %v7190_v57 = vrot.slane %v11578_v20, %v7189_v50 }
 0x787   : > { %7562 = vmatprep.subr.bf16.mxu1 %v7090_v58  ;;  %8574 = vmatpush3.bf16.msra.mxu0 %v7681_v60  ;;  %v7668_v58 = vld [vmem:[#allocation3 + $0xa8] sm:$0xff] }
 0x788   : > { %8575 = vmatprep.subr.bf16.mxu0 %v7690_v56  ;;  %v7717_v56 = vld [vmem:[#allocation3 + $0x230] sm:$0xff] }
 0x78a   : > { %7563 = vmatpush1.bf16.msra.mxu1 %v7089_v6 }
 0x78b   : > { %7564 = vmatprep.subr.bf16.mxu1 %v7106_v63  ;;  %8576 = vmatpush3.bf16.msra.mxu0 %v7682_v0  ;;  %v7726_v63 = vld [vmem:[#allocation3 + $0x278] sm:$0xff] }
 0x78c   : > { %8577 = vmatprep.subr.bf16.mxu0 %v7691_v1 }
 0x78e   : > { %7565 = vmatpush1.bf16.msra.mxu1 %v7105_v2 }
 0x78f   : > { %7566 = vmatprep.subr.bf16.mxu1 %v7122_v5  ;;  %8578 = vmatpush3.bf16.msra.mxu0 %v7683_v7  ;;  %v7678_v5 = vld [vmem:[#allocation3 + $0xf8] sm:$0xff] }
 0x790   : > { %8579 = vmatprep.subr.bf16.mxu0 %v7692_v8  ;;  %v11604_v7 = vld [vmem:[#allocation7 + $0x8] sm:$0xff] }
 0x791   : > { %v7210_v18 = vrot.slane %v11604_v7, %v7177_v19 }
 0x792   : > { %7567 = vmatpush1.bf16.msra.mxu1 %v7121_v10 }
 0x793   : > { %7568 = vmatprep.subr.bf16.mxu1 %v7138_v14  ;;  %8580 = vmatpush3.bf16.msra.mxu0 %v7684_v15  ;;  %v7751_v14 = vld [vmem:[#allocation3 + $0x340] sm:$0xff] }
 0x794   : > { %8581 = vmatprep.subr.bf16.mxu0 %v7693_v16 }
 0x796   : > { %7569 = vmatpush1.bf16.msra.mxu1 %v7137_v17  ;;  %v7670_v17 = vld [vmem:[#allocation3 + $0xb8] sm:$0xff] }
 0x797   : > { %7570 = vmatprep.subr.bf16.mxu1 %v7154_v9  ;;  %8582 = vmatpush3.bf16.msra.mxu0 %v7685_v22  ;;  %v7703_v22 = vld [vmem:[#allocation3 + $0x1c0] sm:$0xff] }
 0x798   : > { %8583 = vmatprep.subr.bf16.mxu0 %v7694_v23  ;;  %v7214_v23 = vrot.slane %v11604_v7, %v7181_v21  ;;  %v7696_v21 = vld [vmem:[#allocation3 + $0x188] sm:$0xff] }
 0x79a   : > { %7571 = vmatpush1.bf16.msra.mxu1 %v7153_v24 }
 0x79b   : > { %7572 = vmatprep.subr.bf16.mxu1 %v7170_v26  ;;  %8584 = vmatpush3.bf16.msra.mxu0 %v7686_v27  ;;  %v7695_v26 = vld [vmem:[#allocation3 + $0x180] sm:$0xff] }
 0x79c   : > { %8613 = vmatprep.subr.bf16.mxu0 %v7719_v28 }
 0x79e   : > { %7573 = vmatpush1.bf16.msra.mxu1 %v7169_v30  ;;  %7889 = vmatmul.mubr.bf16.vlgmr.msra.gmra.mrb[24].mxu0 %v7635_v29  ;;  %v7704_v29 = vld [vmem:[#allocation3 + $0x1c8] sm:$0xff] }
 0x79f   : > { %8547 = vmatprep.subr.bf16.mxu1 %v7671_v31  ;;  %8614 = vmatpush3.bf16.msra.mxu0 %v7711_v32 }
 0x7a0   : > { %8615 = vmatprep.subr.bf16.mxu0 %v7720_v33 }
 0x7a1   : > { %7575 = vmatmul.mubr.bf16.vlgmr.msra.gmra.mrb[40].mxu1 %v11552_v12  ;;  %v7666_v12 = vld [vmem:[#allocation3 + $0x98] sm:$0xff] }
 0x7a2   : > { %8548 = vmatpush3.bf16.msra.mxu1 %v7663_v34 }
 0x7a3   : > { %8549 = vmatprep.subr.bf16.mxu1 %v7672_v3  ;;  %8616 = vmatpush3.bf16.msra.mxu0 %v7712_v37  ;;  %v7705_v3 = vld [vmem:[#allocation3 + $0x1d0] sm:$0xff] }
 0x7a4   : > { %8617 = vmatprep.subr.bf16.mxu0 %v7721_v39 }
 0x7a6   : > { %8550 = vmatpush3.bf16.msra.mxu1 %v7664_v40 }
 0x7a7   : > { %8551 = vmatprep.subr.bf16.mxu1 %v7673_v41  ;;  %8618 = vmatpush3.bf16.msra.mxu0 %v7713_v42  ;;  %v7743_v41 = vld [vmem:[#allocation3 + $0x300] sm:$0xff]  ;;  %v7697_v42 = vld [vmem:[#allocation3 + $0x190] sm:$0xff] }
 0x7a8   : > { %8619 = vmatprep.subr.bf16.mxu0 %v7722_v43  ;;  %v7752_v43 = vld [vmem:[#allocation3 + $0x348] sm:$0xff] }
 0x7aa   : > { %8552 = vmatpush3.bf16.msra.mxu1 %v7665_v11  ;;  %v7706_v11 = vld [vmem:[#allocation3 + $0x1d8] sm:$0xff] }
 0x7ab   : > { %8553 = vmatprep.subr.bf16.mxu1 %v7674_v44  ;;  %8620 = vmatpush3.bf16.msra.mxu0 %v7714_v45  ;;  %v7744_v44 = vld [vmem:[#allocation3 + $0x308] sm:$0xff]  ;;  %v7698_v45 = vld [vmem:[#allocation3 + $0x198] sm:$0xff] }
 0x7ac   : > { %8621 = vmatprep.subr.bf16.mxu0 %v7723_v46  ;;  %v7753_v46 = vld [vmem:[#allocation3 + $0x350] sm:$0xff] }
 0x7ae   : > { %8554 = vmatpush3.bf16.msra.mxu1 %v7666_v12  ;;  %v7707_v12 = vld [vmem:[#allocation3 + $0x1e0] sm:$0xff] }
 0x7af   : > { %8555 = vmatprep.subr.bf16.mxu1 %v7675_v47  ;;  %8622 = vmatpush3.bf16.msra.mxu0 %v7715_v35  ;;  %v7745_v47 = vld [vmem:[#allocation3 + $0x310] sm:$0xff]  ;;  %v7699_v35 = vld [vmem:[#allocation3 + $0x1a0] sm:$0xff] }
 0x7b0   : > { %8623 = vmatprep.subr.bf16.mxu0 %v7724_v49  ;;  %v7754_v49 = vld [vmem:[#allocation3 + $0x358] sm:$0xff] }
 0x7b2   : > { %8556 = vmatpush3.bf16.msra.mxu1 %v7667_v51  ;;  %v7708_v51 = vld [vmem:[#allocation3 + $0x1e8] sm:$0xff] }
 0x7b3   : > { %8557 = vmatprep.subr.bf16.mxu1 %v7676_v52  ;;  %8624 = vmatpush3.bf16.msra.mxu0 %v7716_v53  ;;  %v7746_v52 = vld [vmem:[#allocation3 + $0x318] sm:$0xff]  ;;  %v7700_v53 = vld [vmem:[#allocation3 + $0x1a8] sm:$0xff] }
 0x7b4   : > { %v7330_v60 = vpop.f32.mrb[28].mxu1  ;;  %8625 = vmatprep.subr.bf16.mxu0 %v7725_v55  ;;  %v7709_v55 = vld [vmem:[#allocation3 + $0x1f0] sm:$0xff] }
 0x7b5   : > { %v7331_v61 = vadd.f32 %v7330_v60, %v7186_v54  ;;  %v7332_v6 = vpop.f32.mrb[29].mxu1  ;;  %v7755_v54 = vld [vmem:[#allocation3 + $0x360] sm:$0xff]  ;;  %v7756_v60 = vld [vmem:[#allocation3 + $0x368] sm:$0xff] }
 0x7b6   : > { %v7333_v0 = vadd.f32 %v7332_v6, %v7190_v57  ;;  %v7334_v1 = vpop.f32.mrb[30].mxu1  ;;  %8558 = vmatpush3.bf16.msra.mxu1 %v7668_v58  ;;  %v7747_v57 = vld [vmem:[#allocation3 + $0x320] sm:$0xff]  ;;  %v7701_v58 = vld [vmem:[#allocation3 + $0x1b0] sm:$0xff] }
 0x7b7   : > { %v7335_v2 = vpop.f32.mrb[31].mxu1  ;;  %8559 = vmatprep.subr.bf16.mxu1 %v7677_v36  ;;  %8626 = vmatpush3.bf16.msra.mxu0 %v7717_v56  ;;  %v7601_v8 = vmul.f32 0.2, %v7331_v61  ;;  %vm7585_vm6 = vcmp.gt.f32.partialorder %v7331_v61, 0.0  ;;  %v7710_v36 = vld [vmem:[#allocation3 + $0x1f8] sm:$0xff]  ;;  %v7748_v56 = vld [vmem:[#allocation3 + $0x328] sm:$0xff] }
 0x7b8   : > { %vm7586_vm5 = vcmp.gt.f32.partialorder %v7333_v0, 0.0  ;;  %v7602_v10 = vmul.f32 0.2, %v7333_v0  ;;  %8627 = vmatprep.subr.bf16.mxu0 %v7726_v63  ;;  %v7757_v6 = vld [vmem:[#allocation3 + $0x370] sm:$0xff]  ;;  %v7735_v63 = vld [vmem:[#allocation3 + $0x2c0] sm:$0xff]  ;;  %v7758_v1 = vld [vmem:[#allocation3 + $0x378] sm:$0xff] }
 0x7b9   : > { %v7617_v9 = vsel %vm7585_vm6, %v7331_v61, %v7601_v8  ;;  %v7453_v24 = vpop.f32.mrb[12].mxu0  ;;  %v7702_v61 = vld [vmem:[#allocation3 + $0x1b8] sm:$0xff] }
 0x7ba   : > { %8560 = vmatpush3.bf16.msra.mxu1 %v7669_v4  ;;  %v7618_v15 = vsel %vm7586_vm5, %v7333_v0, %v7602_v10  ;;  %v7633_v25 = vpack.c.bf16 %v7617_v9, %v7617_v9  ;;  %v7454_v27 = vadd.f32 %v7453_v24, %v7210_v18  ;;  %v7455_v28 = vpop.f32.mrb[13].mxu0  ;;  %v7749_v0 = vld [vmem:[#allocation3 + $0x330] sm:$0xff]  ;;  %v7750_v2 = vld [vmem:[#allocation3 + $0x338] sm:$0xff]  ;;  %v7201_v4 = vsub.s32 6, %v11193_v59 }
 0x7bb   : > { %8561 = vmatprep.subr.bf16.mxu1 %v7678_v5  ;;  %v7634_v16 = vpack.c.bf16 %v7618_v15, %v7618_v15  ;;  %8628 = vmatpush3.bf16.msra.mxu0 %v7718_v13  ;;  %v7456_v30 = vadd.f32 %v7455_v28, %v7214_v23  ;;  %v7457_v31 = vpop.f32.mrb[14].mxu0  ;;  %v7205_v5 = vsub.s32 7, %v11193_v59  ;;  %v7727_v28 = vld [vmem:[#allocation3 + $0x280] sm:$0xff] }
 0x7bc   : > { %8657 = vmatprep.subr.bf16.mxu0 %v7751_v14  ;;  %vm7591_vm7 = vcmp.gt.f32.partialorder %v7454_v27, 0.0  ;;  %v7607_v19 = vmul.f32 0.2, %v7454_v27  ;;  %v7458_v32 = vpop.f32.mrb[15].mxu0  ;;  %v7202_v8 = vrot.slane %v11578_v20, %v7201_v4 }
 0x7bd   : > { %7848 = vmatprep.mubr.bf16.mxu1 %v7634_v16  ;;  %vm7592_vm8 = vcmp.gt.f32.partialorder %v7456_v30, 0.0  ;;  %v7608_v33 = vmul.f32 0.2, %v7456_v30  ;;  %v7206_v10 = vrot.slane %v11578_v20, %v7205_v5  ;;  %v7230_v20 = vrot.slane %v11604_v7, %v7197_v38  ;;  %v7728_v32 = vld [vmem:[#allocation3 + $0x288] sm:$0xff]  ;;  %v7729_v38 = vld [vmem:[#allocation3 + $0x290] sm:$0xff] }
 0x7be   : > { %8562 = vmatpush3.bf16.msra.mxu1 %v7670_v17  ;;  %v7623_v34 = vsel %vm7591_vm7, %v7454_v27, %v7607_v19 }
 0x7bf   : > { %8591 = vmatprep.subr.bf16.mxu1 %v7703_v22  ;;  %v7639_v37 = vpack.c.bf16 %v7623_v34, %v7623_v34  ;;  %v7624_v39 = vsel %vm7592_vm8, %v7456_v30, %v7608_v33  ;;  %v7737_v34 = vld [vmem:[#allocation3 + $0x2d0] sm:$0xff] }
 0x7c0   : > { %v7640_v40 = vpack.c.bf16 %v7624_v39, %v7624_v39 }
 0x7c1   : > { %7849 = vmatmul.mubr.bf16.vlgmr.msra.gmra.mrb[44].mxu1 %v7633_v25 }
 0x7c2   : > { %8592 = vmatpush3.bf16.msra.mxu1 %v7695_v26  ;;  %7968 = vmatprep.mubr.bf16.mxu0 %v7640_v40  ;;  %v7226_v26 = vrot.slane %v11604_v7, %v7193_v62 }
 0x7c3   : > { %8593 = vmatprep.subr.bf16.mxu1 %v7704_v29  ;;  %7969 = vmatmul.mubr.bf16.vlgmr.msra.gmra.mrb[28].mxu0 %v7639_v37  ;;  %v7736_v29 = vld [vmem:[#allocation3 + $0x2c8] sm:$0xff] }
 0x7c4   : > { %8658 = vmatpush3.bf16.msra.mxu0 %v7743_v41 }
 0x7c5   : > { %8659 = vmatprep.subr.bf16.mxu0 %v7752_v43 }
 0x7c6   : > { %8594 = vmatpush3.bf16.msra.mxu1 %v7696_v21 }
 0x7c7   : > { %8595 = vmatprep.subr.bf16.mxu1 %v7705_v3 }
 0x7c8   : > { %8660 = vmatpush3.bf16.msra.mxu0 %v7744_v44  ;;  %v7739_v44 = vld [vmem:[#allocation3 + $0x2e0] sm:$0xff] }
 0x7c9   : > { %8661 = vmatprep.subr.bf16.mxu0 %v7753_v46  ;;  %v7740_v46 = vld [vmem:[#allocation3 + $0x2e8] sm:$0xff] }
 0x7ca   : > { %8596 = vmatpush3.bf16.msra.mxu1 %v7697_v42  ;;  %v7738_v42 = vld [vmem:[#allocation3 + $0x2d8] sm:$0xff] }
 0x7cb   : > { %8597 = vmatprep.subr.bf16.mxu1 %v7706_v11  ;;  %v7730_v11 = vld [vmem:[#allocation3 + $0x298] sm:$0xff] }
 0x7cc   : > { %8662 = vmatpush3.bf16.msra.mxu0 %v7745_v47  ;;  %v7741_v47 = vld [vmem:[#allocation3 + $0x2f0] sm:$0xff] }
 0x7cd   : > { %8663 = vmatprep.subr.bf16.mxu0 %v7754_v49  ;;  %v7742_v49 = vld [vmem:[#allocation3 + $0x2f8] sm:$0xff] }
 0x7ce   : > { %8598 = vmatpush3.bf16.msra.mxu1 %v7698_v45  ;;  %v7731_v45 = vld [vmem:[#allocation3 + $0x2a0] sm:$0xff] }
 0x7cf   : > { %8599 = vmatprep.subr.bf16.mxu1 %v7707_v12  ;;  %v7732_v12 = vld [vmem:[#allocation3 + $0x2a8] sm:$0xff] }
 0x7d0   : > { %8664 = vmatpush3.bf16.msra.mxu0 %v7746_v52  ;;  %v7767_v52 = vld [vmem:[#allocation3 + $0x3c0] sm:$0xff] }
 0x7d1   : > { %8665 = vmatprep.subr.bf16.mxu0 %v7755_v54  ;;  %v7222_v54 = vrot.slane %v11604_v7, %v7189_v50  ;;  %v7760_v50 = vld [vmem:[#allocation3 + $0x388] sm:$0xff] }
 0x7d2   : > { %8600 = vmatpush3.bf16.msra.mxu1 %v7699_v35  ;;  %v7733_v35 = vld [vmem:[#allocation3 + $0x2b0] sm:$0xff] }
 0x7d3   : > { %8601 = vmatprep.subr.bf16.mxu1 %v7708_v51  ;;  %v7734_v51 = vld [vmem:[#allocation3 + $0x2b8] sm:$0xff] }
 0x7d4   : > { %8666 = vmatpush3.bf16.msra.mxu0 %v7747_v57 }
 0x7d5   : > { %8667 = vmatprep.subr.bf16.mxu0 %v7756_v60 }
 0x7d6   : > { %8602 = vmatpush3.bf16.msra.mxu1 %v7700_v53  ;;  %v7218_v53 = vrot.slane %v11604_v7, %v7185_v48  ;;  %v7768_v48 = vld [vmem:[#allocation3 + $0x3c8] sm:$0xff] }
 0x7d7   : > { %8603 = vmatprep.subr.bf16.mxu1 %v7709_v55 }
 0x7d8   : > { %8668 = vmatpush3.bf16.msra.mxu0 %v7748_v56 }
 0x7d9   : > { %8669 = vmatprep.subr.bf16.mxu0 %v7757_v6 }
 0x7da   : > { %8604 = vmatpush3.bf16.msra.mxu1 %v7701_v58 }
 0x7db   : > { %8605 = vmatprep.subr.bf16.mxu1 %v7710_v36 }
 0x7dc   : > { %8670 = vmatpush3.bf16.msra.mxu0 %v7749_v0 }
 0x7dd   : > { %8671 = vmatprep.subr.bf16.mxu0 %v7758_v1 }
 0x7de   : > { %8606 = vmatpush3.bf16.msra.mxu1 %v7702_v61 }
 0x7df   : > { %8635 = vmatprep.subr.bf16.mxu1 %v7735_v63 }
 0x7e0   : > { %8672 = vmatpush3.bf16.msra.mxu0 %v7750_v2 }
 0x7f4   : > { %v7412_v13 = vpop.f32.mrb[32].mxu1 }
 0x7f5   : > { %v7413_v14 = vadd.f32 %v7412_v13, %v7202_v8  ;;  %v7414_v15 = vpop.f32.mrb[33].mxu1  ;;  %v7759_v8 = vld [vmem:[#allocation3 + $0x380] sm:$0xff]  ;;  %v7761_v13 = vld [vmem:[#allocation3 + $0x390] sm:$0xff] }
 0x7f6   : > { %v7415_v16 = vadd.f32 %v7414_v15, %v7206_v10  ;;  %v7416_v17 = vpop.f32.mrb[34].mxu1  ;;  %v7769_v10 = vld [vmem:[#allocation3 + $0x3d0] sm:$0xff]  ;;  %v7762_v15 = vld [vmem:[#allocation3 + $0x398] sm:$0xff] }
 0x7f7   : > { %vm7589_vm9 = vcmp.gt.f32.partialorder %v7413_v14, 0.0  ;;  %v7605_v18 = vmul.f32 0.2, %v7413_v14  ;;  %v7417_v9 = vpop.f32.mrb[35].mxu1  ;;  %v7763_v17 = vld [vmem:[#allocation3 + $0x3a0] sm:$0xff] }
 0x7f8   : > { %vm7590_vm10 = vcmp.gt.f32.partialorder %v7415_v16, 0.0  ;;  %v7606_v22 = vmul.f32 0.2, %v7415_v16  ;;  %v7764_v9 = vld [vmem:[#allocation3 + $0x3a8] sm:$0xff] }
 0x7f9   : > { %v7621_v23 = vsel %vm7589_vm9, %v7413_v14, %v7605_v18  ;;  %v7535_v30 = vpop.f32.mrb[16].mxu0  ;;  %v7770_v14 = vld [vmem:[#allocation3 + $0x3d8] sm:$0xff]  ;;  %v7772_v18 = vld [vmem:[#allocation3 + $0x3e8] sm:$0xff] }
 0x7fa   : > { %v7622_v24 = vsel %vm7590_vm10, %v7415_v16, %v7606_v22  ;;  %v7637_v27 = vpack.c.bf16 %v7621_v23, %v7621_v23  ;;  %v7536_v31 = vadd.f32 %v7535_v30, %v7226_v26  ;;  %v7537_v19 = vpop.f32.mrb[17].mxu0  ;;  %v7771_v16 = vld [vmem:[#allocation3 + $0x3e0] sm:$0xff]  ;;  %v7773_v23 = vld [vmem:[#allocation3 + $0x3f0] sm:$0xff]  ;;  %v7234_v30 = vrot.slane %v11604_v7, %v7201_v4 }
 0x7fb   : > { %v7638_v25 = vpack.c.bf16 %v7622_v24, %v7622_v24  ;;  %v7538_v33 = vadd.f32 %v7537_v19, %v7230_v20  ;;  %v7539_v21 = vpop.f32.mrb[18].mxu0  ;;  %v7774_v20 = vld [vmem:[#allocation3 + $0x3f8] sm:$0xff]  ;;  %v7238_v19 = vrot.slane %v11604_v7, %v7205_v5  ;;  %v7775_v7 = vld [vmem:[%s11661_s12] sm:$0x1] }
 0x7fc   : > { %vm7595_vm11 = vcmp.gt.f32.partialorder %v7536_v31, 0.0  ;;  %v7611_v62 = vmul.f32 0.2, %v7536_v31  ;;  %v7540_v3 = vpop.f32.mrb[19].mxu0 }
 0x7fd   : > { %7928 = vmatprep.mubr.bf16.mxu1 %v7638_v25  ;;  %vm7596_vm12 = vcmp.gt.f32.partialorder %v7538_v33, 0.0  ;;  %v7612_v37 = vmul.f32 0.2, %v7538_v33 }
 0x7fe   : > { %7929 = vmatmul.mubr.bf16.vlgmr.msra.gmra.mrb[48].mxu1 %v7637_v27  ;;  %v7627_v39 = vsel %vm7595_vm11, %v7536_v31, %v7611_v62 }
 0x7ff   : > { %8636 = vmatpush3.bf16.msra.mxu1 %v7727_v28  ;;  %v7643_v40 = vpack.c.bf16 %v7627_v39, %v7627_v39  ;;  %v7628_v41 = vsel %vm7596_vm12, %v7538_v33, %v7612_v37  ;;  %v7765_v28 = vld [vmem:[#allocation3 + $0x3b0] sm:$0xff] }
 0x800   : > { %8637 = vmatprep.subr.bf16.mxu1 %v7736_v29  ;;  %v7644_v43 = vpack.c.bf16 %v7628_v41, %v7628_v41  ;;  %v7766_v29 = vld [vmem:[#allocation3 + $0x3b8] sm:$0xff] }
 0x802   : > { %8048 = vmatprep.mubr.bf16.mxu0 %v7644_v43 }
 0x803   : > { %8638 = vmatpush3.bf16.msra.mxu1 %v7728_v32  ;;  %8049 = vmatmul.mubr.bf16.vlgmr.msra.gmra.mrb[32].mxu0 %v7643_v40 }
 0x804   : > { %8639 = vmatprep.subr.bf16.mxu1 %v7737_v34 }
 0x807   : > { %8640 = vmatpush3.bf16.msra.mxu1 %v7729_v38 }
 0x808   : > { %8641 = vmatprep.subr.bf16.mxu1 %v7738_v42 }
 0x80b   : > { %8642 = vmatpush3.bf16.msra.mxu1 %v7730_v11 }
 0x80c   : > { %8643 = vmatprep.subr.bf16.mxu1 %v7739_v44 }
 0x80f   : > { %8644 = vmatpush3.bf16.msra.mxu1 %v7731_v45 }
 0x810   : > { %8645 = vmatprep.subr.bf16.mxu1 %v7740_v46 }
 0x813   : > { %8646 = vmatpush3.bf16.msra.mxu1 %v7732_v12 }
 0x814   : > { %8647 = vmatprep.subr.bf16.mxu1 %v7741_v47 }
 0x817   : > { %8648 = vmatpush3.bf16.msra.mxu1 %v7733_v35 }
 0x818   : > { %8649 = vmatprep.subr.bf16.mxu1 %v7742_v49 }
 0x81b   : > { %8650 = vmatpush3.bf16.msra.mxu1 %v7734_v51 }
 0x81c   : > { %8679 = vmatprep.subr.bf16.mxu1 %v7767_v52 }
 0x834   : > { %v7494_v55 = vpop.f32.mrb[36].mxu1 }
 0x835   : > { %v7495_v57 = vadd.f32 %v7494_v55, %v7218_v53  ;;  %v7496_v58 = vpop.f32.mrb[37].mxu1 }
 0x836   : > { %v7497_v60 = vadd.f32 %v7496_v58, %v7222_v54  ;;  %v7498_v36 = vpop.f32.mrb[38].mxu1 }
 0x837   : > { %vm7593_vm13 = vcmp.gt.f32.partialorder %v7495_v57, 0.0  ;;  %v7609_v56 = vmul.f32 0.2, %v7495_v57  ;;  %v7499_v61 = vpop.f32.mrb[39].mxu1 }
 0x838   : > { %vm7594_vm14 = vcmp.gt.f32.partialorder %v7497_v60, 0.0  ;;  %v7610_v6 = vmul.f32 0.2, %v7497_v60 }
 0x839   : > { %v7625_v63 = vsel %vm7593_vm13, %v7495_v57, %v7609_v56 }
 0x83a   : > { %v7626_v0 = vsel %vm7594_vm14, %v7497_v60, %v7610_v6  ;;  %v7641_v2 = vpack.c.bf16 %v7625_v63, %v7625_v63 }
 0x83b   : > { %v7642_v1 = vpack.c.bf16 %v7626_v0, %v7626_v0 }
 0x83d   : > { %8008 = vmatprep.mubr.bf16.mxu1 %v7642_v1 }
 0x83e   : > { %8009 = vmatmul.mubr.bf16.vlgmr.msra.gmra.mrb[52].mxu1 %v7641_v2 }
 0x83f   : > { %8680 = vmatpush3.bf16.msra.mxu1 %v7759_v8 }
 0x840   : > { %8681 = vmatprep.subr.bf16.mxu1 %v7768_v48 }
 0x843   : > { %8682 = vmatpush3.bf16.msra.mxu1 %v7760_v50 }
 0x844   : > { %8683 = vmatprep.subr.bf16.mxu1 %v7769_v10 }
 0x847   : > { %8684 = vmatpush3.bf16.msra.mxu1 %v7761_v13 }
 0x848   : > { %8685 = vmatprep.subr.bf16.mxu1 %v7770_v14 }
 0x84b   : > { %8686 = vmatpush3.bf16.msra.mxu1 %v7762_v15 }
 0x84c   : > { %8687 = vmatprep.subr.bf16.mxu1 %v7771_v16 }
 0x84f   : > { %8688 = vmatpush3.bf16.msra.mxu1 %v7763_v17 }
 0x850   : > { %8689 = vmatprep.subr.bf16.mxu1 %v7772_v18 }
 0x851   : > { %v8541_v22 = vpop.f32.mrb[20].mxu0 }
 0x852   : > { %v8542_v24 = vpop.f32.mrb[21].mxu0 }
 0x853   : > { %v8543_v25 = vadd.f32 %v8542_v24, %v8541_v22  ;;  %v8544_v26 = vpop.f32.mrb[22].mxu0  ;;  %8690 = vmatpush3.bf16.msra.mxu1 %v7764_v9 }
 0x854   : > { %v8545_v27 = vpop.f32.mrb[23].mxu0  ;;  %8691 = vmatprep.subr.bf16.mxu1 %v7773_v23 }
 0x855   : > { %v7811_v45 = vadd.f32 %v8543_v25, %v7775_v7 }
 0x857   : > { %8692 = vmatpush3.bf16.msra.mxu1 %v7765_v28 }
 0x858   : > { %8693 = vmatprep.subr.bf16.mxu1 %v7774_v20 }
 0x85b   : > { %8694 = vmatpush3.bf16.msra.mxu1 %v7766_v29 }
 0x871   : > { %v8585_v31 = vpop.f32.mrb[24].mxu0 }
 0x872   : > { %v8586_v32 = vpop.f32.mrb[25].mxu0 }
 0x873   : > { %v8587_v33 = vadd.f32 %v8586_v32, %v8585_v31  ;;  %v8588_v21 = vpop.f32.mrb[26].mxu0 }
 0x874   : > { %v7576_v34 = vpop.f32.mrb[40].mxu1  ;;  %v8589_v62 = vpop.f32.mrb[27].mxu0 }
 0x875   : > { %v7577_v3 = vadd.f32 %v7576_v34, %v7234_v30  ;;  %v7578_v37 = vpop.f32.mrb[41].mxu1 }
 0x876   : > { %v7579_v39 = vadd.f32 %v7578_v37, %v7238_v19  ;;  %v7580_v38 = vpop.f32.mrb[42].mxu1 }
 0x877   : > { %vm7597_vm15 = vcmp.gt.f32.partialorder %v7577_v3, 0.0  ;;  %v7613_v40 = vmul.f32 0.2, %v7577_v3  ;;  %v7581_v41 = vpop.f32.mrb[43].mxu1 }
 0x878   : > { %vm7598_vm0 = vcmp.gt.f32.partialorder %v7579_v39, 0.0  ;;  %v7614_v42 = vmul.f32 0.2, %v7579_v39 }
 0x879   : > { %v7629_v4 = vsel %vm7597_vm15, %v7577_v3, %v7613_v40 }
 0x87a   : > { %v7630_v43 = vsel %vm7598_vm0, %v7579_v39, %v7614_v42  ;;  %v7645_v59 = vpack.c.bf16 %v7629_v4, %v7629_v4 }
 0x87b   : > { %v7646_v11 = vpack.c.bf16 %v7630_v43, %v7630_v43 }
 0x87d   : > { %8088 = vmatprep.mubr.bf16.mxu1 %v7646_v11 }
 0x87e   : > { %8089 = vmatmul.mubr.bf16.vlgmr.msra.gmra.mrb[56].mxu1 %v7645_v59 }
 0x894   : > { %v8563_v5 = vpop.f32.mrb[44].mxu1 }
 0x895   : > { %v8564_v44 = vpop.f32.mrb[45].mxu1 }
 0x896   : > { %v8565_v46 = vadd.f32 %v8564_v44, %v8563_v5  ;;  %v8566_v12 = vpop.f32.mrb[46].mxu1  ;;  %v8629_v51 = vpop.f32.mrb[28].mxu0 }
 0x897   : > { %v8567_v47 = vpop.f32.mrb[47].mxu1  ;;  %v8630_v52 = vpop.f32.mrb[29].mxu0 }
 0x898   : > { %v7851_v35 = vadd.f32 %v8565_v46, %v7811_v45  ;;  %v8631_v53 = vadd.f32 %v8630_v52, %v8629_v51  ;;  %v8632_v54 = vpop.f32.mrb[30].mxu0 }
 0x899   : > { %v8633_v55 = vpop.f32.mrb[31].mxu0 }
 0x89a   : > { %v7891_v49 = vadd.f32 %v8587_v33, %v7851_v35 }
 0x8d1   : > { %v8607_v57 = vpop.f32.mrb[48].mxu1 }
 0x8d2   : > { %v8608_v58 = vpop.f32.mrb[49].mxu1 }
 0x8d3   : > { %v8609_v60 = vadd.f32 %v8608_v58, %v8607_v57  ;;  %v8610_v36 = vpop.f32.mrb[50].mxu1 }
 0x8d4   : > { %v8611_v56 = vpop.f32.mrb[51].mxu1 }
 0x8d5   : > { %v7931_v61 = vadd.f32 %v8609_v60, %v7891_v49 }
 0x8d6   : > { %v8673_v63 = vpop.f32.mrb[32].mxu0 }
 0x8d7   : > { %v7971_v6 = vadd.f32 %v8631_v53, %v7931_v61  ;;  %v8674_v0 = vpop.f32.mrb[33].mxu0 }
 0x8d8   : > { %v8675_v1 = vadd.f32 %v8674_v0, %v8673_v63  ;;  %v8676_v2 = vpop.f32.mrb[34].mxu0 }
 0x8d9   : > { %v8677_v8 = vpop.f32.mrb[35].mxu0 }
 0x911   : > { %v8651_v48 = vpop.f32.mrb[52].mxu1 }
 0x912   : > { %v8652_v50 = vpop.f32.mrb[53].mxu1 }
 0x913   : > { %v8653_v10 = vadd.f32 %v8652_v50, %v8651_v48  ;;  %v8654_v13 = vpop.f32.mrb[54].mxu1 }
 0x914   : > { %v8655_v14 = vpop.f32.mrb[55].mxu1 }
 0x915   : > { %v8011_v15 = vadd.f32 %v8653_v10, %v7971_v6 }
 0x917   : > { %v8051_v16 = vadd.f32 %v8675_v1, %v8011_v15 }
 0x951   : > { %v8695_v17 = vpop.f32.mrb[56].mxu1 }
 0x952   : > { %v8696_v18 = vpop.f32.mrb[57].mxu1 }
 0x953   : > { %v8697_v9 = vadd.f32 %v8696_v18, %v8695_v17  ;;  %v8698_v22 = vpop.f32.mrb[58].mxu1 }
 0x954   : > { %v8699_v23 = vpop.f32.mrb[59].mxu1 }
 0x955   : > { %v8091_v24 = vadd.f32 %v8697_v9, %v8051_v16 }
 0x957   : > { %8097 = vst.msk [vmem:[%s412_s16] sm:$0x1] %vm8096_vm1, %v8091_v24 }
 0x958 PF: > { %s25_s25 = sadd.s32 1, %s9121_s25  }
 0x959   : > { %p22_p0 = scmp.ge.s32.totalorder %s25_s25, 4  }
 0x95b   :  { %24 = sbr.rel (!%p22_p0) target bundleno = 2 (0x2), region = 256 }
 0x962   :  { %8115 = vsyncpa [#allocation6], 1 }
 0x963   :  { %8117 = vsyncpa [#allocation6 + $0x1], 1 }
 0x964   :  { %8118 = vsyncpa [#allocation8], 1 }
 0x965   :  { %8119 = vsyncmov [#allocation4] }
 0x968   :  { %s8120_s14 = vpop.sfrf %8119 }
 0x969   :  { %p8422_p1 = scmp.ne.s32.totalorder %s8120_s14, 0 }
 0x96b   :  { %8124 = shalt.err (%p8422_p1)  }
 0x96c   :  { %8126 = vsyncmov [#allocation4 + $0x1] }
 0x96f   :  { %s8127_s30 = vpop.sfrf %8126 }
 0x970   :  { %p8423_p5 = scmp.ne.s32.totalorder %s8127_s30, 0 }
 0x972   :  { %8131 = shalt.err (%p8423_p5)  }

</bundles_post_ra>
